<compile_context>
chip_gen: v7x
topology: tpu7x:2x2x1
jax: 0.10.0
libtpu: 0.0.40
codegen_flags: <defaults>
</compile_context>

<pallas_src>
import functools

import jax
import jax.numpy as jnp
from jax.experimental import pallas as pl
from jax.experimental.pallas import tpu as pltpu

LANE = 128
VMEM_LIMIT = 32 * 1024 * 1024   # safe on v5e/v6e/v7x; our blocks are far smaller


def _round_up(x, m=LANE):
    return ((x + m - 1) // m) * m


# ----------------------------------------------------------------------------
# Kernel 1: fused cv1 + cv2 (two 1x1 convs + BN + SiLU sharing the same input)
#   o1 = SiLU(x @ w1 + b1),  o2 = SiLU(x @ w2 + b2)
# ----------------------------------------------------------------------------
def _mm_pair_silu_kernel(x_ref, w1_ref, b1_ref, w2_ref, b2_ref,
                         o1_ref, o2_ref, acc1_ref, acc2_ref):
    k = pl.program_id(2)

    @pl.when(k == 0)
    def _():
        acc1_ref[...] = jnp.zeros_like(acc1_ref)
        acc2_ref[...] = jnp.zeros_like(acc2_ref)

    x = x_ref[...]
    acc1_ref[...] += jnp.dot(x, w1_ref[...], preferred_element_type=jnp.float32)
    acc2_ref[...] += jnp.dot(x, w2_ref[...], preferred_element_type=jnp.float32)

    @pl.when(k == pl.num_programs(2) - 1)
    def _():
        a1 = acc1_ref[...] + b1_ref[...]
        a2 = acc2_ref[...] + b2_ref[...]
        o1_ref[...] = (a1 * jax.nn.sigmoid(a1)).astype(o1_ref.dtype)
        o2_ref[...] = (a2 * jax.nn.sigmoid(a2)).astype(o2_ref.dtype)


def matmul_pair_bias_silu(x2d, w1, b1, w2, b2):
    M, K = x2d.shape
    N = w1.shape[1]
    TM = 256 if M % 256 == 0 else (128 if M % 128 == 0 else M)
    TN = TK = LANE
    assert M % TM == 0 and K % TK == 0 and N % TN == 0
    grid = (M // TM, N // TN, K // TK)
    flops = 2 * 2 * M * N * K
    bytes_acc = 2 * (M * K + 2 * K * N + 2 * M * N) + 4 * 2 * N
    return pl.pallas_call(
        _mm_pair_silu_kernel,
        out_shape=(jax.ShapeDtypeStruct((M, N), jnp.bfloat16),
                   jax.ShapeDtypeStruct((M, N), jnp.bfloat16)),
        grid=grid,
        in_specs=[
            pl.BlockSpec((TM, TK), lambda i, j, k: (i, k)),
            pl.BlockSpec((TK, TN), lambda i, j, k: (k, j)),
            pl.BlockSpec((1, TN), lambda i, j, k: (0, j)),
            pl.BlockSpec((TK, TN), lambda i, j, k: (k, j)),
            pl.BlockSpec((1, TN), lambda i, j, k: (0, j)),
        ],
        out_specs=[pl.BlockSpec((TM, TN), lambda i, j, k: (i, j)),
                   pl.BlockSpec((TM, TN), lambda i, j, k: (i, j))],
        scratch_shapes=[pltpu.VMEM((TM, TN), jnp.float32),
                        pltpu.VMEM((TM, TN), jnp.float32)],
        compiler_params=pltpu.CompilerParams(
            dimension_semantics=("parallel", "parallel", "arbitrary"),
            vmem_limit_bytes=VMEM_LIMIT),
        cost_estimate=pl.CostEstimate(flops=flops, transcendentals=2 * M * N,
                                      bytes_accessed=bytes_acc),
    )(x2d, w1, b1.reshape(1, N), w2, b2.reshape(1, N))


# ----------------------------------------------------------------------------
# Kernel 2: cv3 without the torch.cat -> o = SiLU(x1 @ w1 + x2 @ w2 + b)
# ----------------------------------------------------------------------------
def _mm_dual_silu_kernel(x1_ref, w1_ref, x2_ref, w2_ref, b_ref, o_ref, acc_ref):
    k = pl.program_id(2)

    @pl.when(k == 0)
    def _():
        acc_ref[...] = jnp.zeros_like(acc_ref)

    acc_ref[...] += (
        jnp.dot(x1_ref[...], w1_ref[...], preferred_element_type=jnp.float32)
        + jnp.dot(x2_ref[...], w2_ref[...], preferred_element_type=jnp.float32))

    @pl.when(k == pl.num_programs(2) - 1)
    def _():
        a = acc_ref[...] + b_ref[...]
        o_ref[...] = (a * jax.nn.sigmoid(a)).astype(o_ref.dtype)


def matmul_dual_bias_silu(x1, w1, x2, w2, b, out_dtype=jnp.float32):
    M, K = x1.shape
    assert x2.shape == (M, K) and w1.shape[0] == K and w2.shape[0] == K
    N = w1.shape[1]
    TM = 256 if M % 256 == 0 else (128 if M % 128 == 0 else M)
    TN = TK = LANE
    assert M % TM == 0 and K % TK == 0 and N % TN == 0
    grid = (M // TM, N // TN, K // TK)
    flops = 2 * 2 * M * N * K
    bytes_acc = 2 * (2 * M * K + 2 * K * N) + 4 * (M * N + N)
    return pl.pallas_call(
        _mm_dual_silu_kernel,
        out_shape=jax.ShapeDtypeStruct((M, N), out_dtype),
        grid=grid,
        in_specs=[
            pl.BlockSpec((TM, TK), lambda i, j, k: (i, k)),
            pl.BlockSpec((TK, TN), lambda i, j, k: (k, j)),
            pl.BlockSpec((TM, TK), lambda i, j, k: (i, k)),
            pl.BlockSpec((TK, TN), lambda i, j, k: (k, j)),
            pl.BlockSpec((1, TN), lambda i, j, k: (0, j)),
        ],
        out_specs=pl.BlockSpec((TM, TN), lambda i, j, k: (i, j)),
        scratch_shapes=[pltpu.VMEM((TM, TN), jnp.float32)],
        compiler_params=pltpu.CompilerParams(
            dimension_semantics=("parallel", "parallel", "arbitrary"),
            vmem_limit_bytes=VMEM_LIMIT),
        cost_estimate=pl.CostEstimate(flops=flops, transcendentals=M * N,
                                      bytes_accessed=bytes_acc),
    )(x1, w1, x2, w2, b.reshape(1, N))


# ----------------------------------------------------------------------------
# Kernel 3: reparameterized RepVGG 3x3 conv + bias + ReLU (+ fused shortcut),
#           with im2col fused in-kernel (9 taps accumulated from one VMEM tile).
# ----------------------------------------------------------------------------
def _conv3x3_accumulate(xpad_ref, w_ref):
    _, Hp, Wp, C = xpad_ref.shape
    Ho, Wo = Hp - 2, Wp - 2
    N = w_ref.shape[-1]
    # Load the halo-padded tile once; keep slicing in f32 (simple sublane layout),
    # cast each window to bf16 right before the MXU dot.
    x = xpad_ref[...].astype(jnp.float32)[0]            # (Hp, Wp, C)
    acc = jnp.zeros((Ho * Wo, N), jnp.float32)
    for t in range(9):
        kh, kw = divmod(t, 3)
        win = x[kh:kh + Ho, kw:kw + Wo, :].reshape(Ho * Wo, C).astype(jnp.bfloat16)
        acc = acc + jnp.dot(win, w_ref[t], preferred_element_type=jnp.float32)
    return acc, Ho, Wo, N


def _conv3x3_relu_kernel(xpad_ref, w_ref, b_ref, o_ref):
    acc, Ho, Wo, N = _conv3x3_accumulate(xpad_ref, w_ref)
    y = jnp.maximum(acc + b_ref[...], 0.0)
    o_ref[...] = y.reshape(1, Ho, Wo, N).astype(o_ref.dtype)


def _conv3x3_relu_res_kernel(xpad_ref, w_ref, b_ref, res_ref, o_ref, *, alpha):
    acc, Ho, Wo, N = _conv3x3_accumulate(xpad_ref, w_ref)
    y = jnp.maximum(acc + b_ref[...], 0.0)
    r = res_ref[...].astype(jnp.float32).reshape(Ho * Wo, N)
    y = y + alpha * r                                    # BottleRep: post-ReLU add
    o_ref[...] = y.reshape(1, Ho, Wo, N).astype(o_ref.dtype)


def conv3x3_bias_relu(x, w9, b, residual=None, alpha=1.0):
    """x: (B,H,W,C) bf16, w9: (9,C,N) bf16, b: (N,) f32, stride 1, pad 1."""
    B, H, W, C = x.shape
    N = w9.shape[-1]
    TN = LANE
    assert N % TN == 0
    xpad = jnp.pad(x, ((0, 0), (1, 1), (1, 1), (0, 0)))
    grid = (B, N // TN)
    in_specs = [
        pl.BlockSpec((1, H + 2, W + 2, C), lambda bi, j: (bi, 0, 0, 0)),
        pl.BlockSpec((9, C, TN), lambda bi, j: (0, 0, j)),
        pl.BlockSpec((1, TN), lambda bi, j: (0, j)),
    ]
    args = [xpad, w9, b.reshape(1, N)]
    if residual is None:
        kernel = _conv3x3_relu_kernel
        res_bytes = 0
    else:
        kernel = functools.partial(_conv3x3_relu_res_kernel, alpha=float(alpha))
        in_specs.append(pl.BlockSpec((1, H, W, TN), lambda bi, j: (bi, 0, 0, j)))
        args.append(residual)
        res_bytes = 2 * B * H * W * N
    flops = 2 * B * H * W * N * 9 * C
    bytes_acc = (2 * (B * (H + 2) * (W + 2) * C + 9 * C * N + B * H * W * N)
                 + 4 * N + res_bytes)
    return pl.pallas_call(
        kernel,
        out_shape=jax.ShapeDtypeStruct((B, H, W, N), jnp.bfloat16),
        grid=grid,
        in_specs=in_specs,
        out_specs=pl.BlockSpec((1, H, W, TN), lambda bi, j: (bi, 0, 0, j)),
        compiler_params=pltpu.CompilerParams(
            dimension_semantics=("parallel", "parallel"),
            vmem_limit_bytes=VMEM_LIMIT),
        cost_estimate=pl.CostEstimate(flops=flops, transcendentals=0,
                                      bytes_accessed=bytes_acc),
    )(*args)


# ----------------------------------------------------------------------------
# Deterministic parameter construction: Conv+BN folding and RepVGG reparam.
# ----------------------------------------------------------------------------
def init_params(key, in_channels, out_channels, n, eps=1e-5):
    c_ = int(out_channels * 0.5)
    cin_p, c_p, cout_p = (_round_up(in_channels), _round_up(c_),
                          _round_up(out_channels))
    n_reps = 1 + max(n // 2 - 1, 0)          # BottleRepBlock: conv1 + (n//2 - 1)
    keys = jax.random.split(key, 3 + 2 * n_reps)

    def bn_fold(k, c):
        kg, kb, km, kv = jax.random.split(k, 4)
        gamma = 1.0 + 0.1 * jax.random.normal(kg, (c,), jnp.float32)
        beta = 0.1 * jax.random.normal(kb, (c,), jnp.float32)
        mean = 0.1 * jax.random.normal(km, (c,), jnp.float32)
        var = 1.0 + 0.1 * jax.random.uniform(kv, (c,), jnp.float32)
        scale = gamma / jnp.sqrt(var + eps)
        return scale, beta - mean * scale

    def conv1x1_bn(k, cin, cout):
        kw_, kbn = jax.random.split(k)
        w = jax.random.normal(kw_, (cin, cout), jnp.float32) * (cin ** -0.5)
        s, b = bn_fold(kbn, cout)
        return w * s, b

    def pad_w(w, kp, np_):
        return jnp.pad(w, ((0, kp - w.shape[0]),
                           (0, np_ - w.shape[1]))).astype(jnp.bfloat16)

    def pad_b(b, np_):
        return jnp.pad(b, (0, np_ - b.shape[0])).astype(jnp.float32)

    def repvgg(k, c):
        # rbr_dense (3x3 + BN) + rbr_1x1 (1x1 + BN) + rbr_identity (BN)
        # folded into one 3x3 kernel + bias (== switch_to_deploy), layout (kh,kw,cin,cout)
        kd, kdbn, k1, k1bn, kidbn = jax.random.split(k, 5)
        wd = jax.random.normal(kd, (3, 3, c, c), jnp.float32) * ((9 * c) ** -0.5)
        sd, bd = bn_fold(kdbn, c)
        w_eq = wd * sd
        b_eq = bd
        w1 = jax.random.normal(k1, (c, c), jnp.float32) * (c ** -0.5)
        s1, b1 = bn_fold(k1bn, c)
        w_eq = w_eq.at[1, 1].add(w1 * s1)
        b_eq = b_eq + b1
        sid, bid = bn_fold(kidbn, c)
        w_eq = w_eq.at[1, 1].add(jnp.diag(sid))
        b_eq = b_eq + bid
        w9 = jnp.pad(w_eq.reshape(9, c, c),
                     ((0, 0), (0, c_p - c), (0, c_p - c))).astype(jnp.bfloat16)
        return w9, pad_b(b_eq, c_p)

    w_cv1, b_cv1 = conv1x1_bn(keys[0], in_channels, c_)
    w_cv2, b_cv2 = conv1x1_bn(keys[1], in_channels, c_)
    w_cv3, b_cv3 = conv1x1_bn(keys[2], 2 * c_, out_channels)

    params = {
        "cv1_w": pad_w(w_cv1, cin_p, c_p), "cv1_b": pad_b(b_cv1, c_p),
        "cv2_w": pad_w(w_cv2, cin_p, c_p), "cv2_b": pad_b(b_cv2, c_p),
        # cat([m, cv2], C) @ w_cv3  ==  m @ w_cv3[:c_]  +  cv2 @ w_cv3[c_:]
        "cv3_wa": pad_w(w_cv3[:c_], c_p, cout_p),
        "cv3_wb": pad_w(w_cv3[c_:], c_p, cout_p),
        "cv3_b": pad_b(b_cv3, cout_p),
        "reps": [],
    }
    alphas = []
    for i in range(n_reps):
        w1, b1 = repvgg(keys[3 + 2 * i], c_)
        w2, b2 = repvgg(keys[4 + 2 * i], c_)
        params["reps"].append({"w1": w1, "b1": b1, "w2": w2, "b2": b2})
        alphas.append(1.0)       # BottleRep(weight=True): alpha = Parameter(ones(1))
    return params, tuple(alphas)


# ----------------------------------------------------------------------------
# CSPStackRep.forward (concat=True)
# ----------------------------------------------------------------------------
def csp_stack_rep_forward(x_nchw, params, *, alphas, out_channels):
    B, C, H, W = x_nchw.shape
    cin_p = params["cv1_w"].shape[0]
    c_p = params["cv1_w"].shape[1]
    cout_p = params["cv3_wa"].shape[1]

    # NCHW -> NHWC, pad channels to lane width, bf16 activations.
    x = jnp.transpose(x_nchw, (0, 2, 3, 1))
    x = jnp.pad(x, ((0, 0), (0, 0), (0, 0), (0, cin_p - C))).astype(jnp.bfloat16)
    x2d = x.reshape(B * H * W, cin_p)

    # cv1 & cv2 fused (1x1 conv + BN + SiLU), x read once.
    p1_2d, p2_2d = matmul_pair_bias_silu(x2d, params["cv1_w"], params["cv1_b"],
                                         params["cv2_w"], params["cv2_b"])
    m = p1_2d.reshape(B, H, W, c_p)

    # BottleRepBlock: chain of BottleReps, each = 2 reparameterized RepVGG blocks
    # with a post-activation shortcut  out = rv2(rv1(x)) + alpha * x.
    for rep, alpha in zip(params["reps"], alphas):
        y1 = conv3x3_bias_relu(m, rep["w1"], rep["b1"])
        m = conv3x3_bias_relu(y1, rep["w2"], rep["b2"], residual=m, alpha=alpha)

    # cv3 over the (never materialized) concat([m, cv2_out]).
    out2d = matmul_dual_bias_silu(m.reshape(B * H * W, c_p), params["cv3_wa"],
                                  p2_2d, params["cv3_wb"], params["cv3_b"],
                                  out_dtype=jnp.float32)
    out = out2d.reshape(B, H, W, cout_p)[..., :out_channels]
    return jnp.transpose(out, (0, 3, 1, 2))      # NHWC -> NCHW


if __name__ == "__main__":
    key = jax.random.PRNGKey(0)
    kx, kp = jax.random.split(key)

    B, Cin, Cout, H, W, n = 2, 16, 32, 16, 16, 4
    x = jax.random.normal(kx, (B, Cin, H, W), jnp.float32)

    params, alphas = init_params(kp, Cin, Cout, n)
    fwd = jax.jit(functools.partial(csp_stack_rep_forward,
                                    alphas=alphas, out_channels=Cout))
    out = jax.block_until_ready(fwd(x, params))

    assert out.shape == (B, Cout, H, W), out.shape
    assert bool(jnp.all(jnp.isfinite(out)))
    print("KERNEL_OK")
</pallas_src>

<mosaic_0001>
module attributes {stable_mosaic.version = 11 : i64} {
  func.func @_mm_pair_silu_kernel(%arg0: i32, %arg1: i32, %arg2: i32, %arg3: memref<256x128xbf16, #tpu.memory_space<vmem>>, %arg4: memref<128x128xbf16, #tpu.memory_space<vmem>>, %arg5: memref<1x128xf32, #tpu.memory_space<vmem>>, %arg6: memref<128x128xbf16, #tpu.memory_space<vmem>>, %arg7: memref<1x128xf32, #tpu.memory_space<vmem>>, %arg8: memref<256x128xbf16, #tpu.memory_space<vmem>>, %arg9: memref<256x128xbf16, #tpu.memory_space<vmem>>, %arg10: memref<256x128xf32, #tpu.memory_space<vmem>>, %arg11: memref<256x128xf32, #tpu.memory_space<vmem>>) attributes {dimension_semantics = [#tpu.dimension_semantics<parallel>, #tpu.dimension_semantics<parallel>, #tpu.dimension_semantics<arbitrary>], iteration_bounds = array<i64: 2, 1, 1>, scalar_prefetch = 0 : i64, scratch_operands = 2 : i64, tpu.core_type = #tpu.core_type<tc>, window_params = [{transform_indices = @transform_0, window_bounds = array<i64: 256, 128>}, {transform_indices = @transform_1, window_bounds = array<i64: 128, 128>}, {transform_indices = @transform_2, window_bounds = array<i64: 1, 128>}, {transform_indices = @transform_3, window_bounds = array<i64: 128, 128>}, {transform_indices = @transform_4, window_bounds = array<i64: 1, 128>}, {transform_indices = @transform_5, window_bounds = array<i64: 256, 128>}, {transform_indices = @transform_6, window_bounds = array<i64: 256, 128>}]} {
    %c0_i32 = arith.constant 0 : i32
    %0 = arith.cmpi eq, %arg2, %c0_i32 : i32
    %1 = arith.extui %0 : i1 to i32
    %c0_i32_0 = arith.constant 0 : i32
    %2 = arith.cmpi ne, %1, %c0_i32_0 : i32
    scf.if %2 {
      %cst_17 = arith.constant 0.000000e+00 : f32
      %17 = vector.broadcast %cst_17 : f32 to vector<256x128xf32>
      %c0_18 = arith.constant 0 : index
      %c0_19 = arith.constant 0 : index
      %18 = vector.load %arg10[%c0_18, %c0_19] : memref<256x128xf32, #tpu.memory_space<vmem>>, vector<256x128xf32>
      tpu.vector_store %arg10[%c0_18, %c0_19], %17 {strides = array<i32>} : memref<256x128xf32, #tpu.memory_space<vmem>>, vector<256x128xf32>,
      %cst_20 = arith.constant 0.000000e+00 : f32
      %19 = vector.broadcast %cst_20 : f32 to vector<256x128xf32>
      %c0_21 = arith.constant 0 : index
      %c0_22 = arith.constant 0 : index
      %20 = vector.load %arg11[%c0_21, %c0_22] : memref<256x128xf32, #tpu.memory_space<vmem>>, vector<256x128xf32>
      tpu.vector_store %arg11[%c0_21, %c0_22], %19 {strides = array<i32>} : memref<256x128xf32, #tpu.memory_space<vmem>>, vector<256x128xf32>,
    } else {
    }
    %c0 = arith.constant 0 : index
    %c0_1 = arith.constant 0 : index
    %3 = vector.load %arg3[%c0, %c0_1] : memref<256x128xbf16, #tpu.memory_space<vmem>>, vector<256x128xbf16>
    %c0_2 = arith.constant 0 : index
    %c0_3 = arith.constant 0 : index
    %4 = vector.load %arg10[%c0_2, %c0_3] : memref<256x128xf32, #tpu.memory_space<vmem>>, vector<256x128xf32>
    %c0_4 = arith.constant 0 : index
    %c0_5 = arith.constant 0 : index
    %5 = vector.load %arg4[%c0_4, %c0_5] : memref<128x128xbf16, #tpu.memory_space<vmem>>, vector<128x128xbf16>
    %cst = arith.constant dense<0.000000e+00> : vector<256x128xf32>
    %6 = tpu.matmul %3, %5, %cst {dimension_numbers = #tpu.dot_dimension_numbers<[1], [0], [0], [1], [0, 0, 1, 1], [], []>} : vector<256x128xbf16>, vector<128x128xbf16>, vector<256x128xf32> -> vector<256x128xf32>
    %7 = arith.addf %4, %6 : vector<256x128xf32>
    %c0_6 = arith.constant 0 : index
    %c0_7 = arith.constant 0 : index
    %8 = vector.load %arg10[%c0_6, %c0_7] : memref<256x128xf32, #tpu.memory_space<vmem>>, vector<256x128xf32>
    tpu.vector_store %arg10[%c0_6, %c0_7], %7 {strides = array<i32>} : memref<256x128xf32, #tpu.memory_space<vmem>>, vector<256x128xf32>,
    %c0_8 = arith.constant 0 : index
    %c0_9 = arith.constant 0 : index
    %9 = vector.load %arg11[%c0_8, %c0_9] : memref<256x128xf32, #tpu.memory_space<vmem>>, vector<256x128xf32>
    %c0_10 = arith.constant 0 : index
    %c0_11 = arith.constant 0 : index
    %10 = vector.load %arg6[%c0_10, %c0_11] : memref<128x128xbf16, #tpu.memory_space<vmem>>, vector<128x128xbf16>
    %cst_12 = arith.constant dense<0.000000e+00> : vector<256x128xf32>
    %11 = tpu.matmul %3, %10, %cst_12 {dimension_numbers = #tpu.dot_dimension_numbers<[1], [0], [0], [1], [0, 0, 1, 1], [], []>} : vector<256x128xbf16>, vector<128x128xbf16>, vector<256x128xf32> -> vector<256x128xf32>
    %12 = arith.addf %9, %11 : vector<256x128xf32>
    %c0_13 = arith.constant 0 : index
    %c0_14 = arith.constant 0 : index
    %13 = vector.load %arg11[%c0_13, %c0_14] : memref<256x128xf32, #tpu.memory_space<vmem>>, vector<256x128xf32>
    tpu.vector_store %arg11[%c0_13, %c0_14], %12 {strides = array<i32>} : memref<256x128xf32, #tpu.memory_space<vmem>>, vector<256x128xf32>,
    %c0_i32_15 = arith.constant 0 : i32
    %14 = arith.cmpi eq, %arg2, %c0_i32_15 : i32
    %15 = arith.extui %14 : i1 to i32
    %c0_i32_16 = arith.constant 0 : i32
    %16 = arith.cmpi ne, %15, %c0_i32_16 : i32
    scf.if %16 {
      %c0_17 = arith.constant 0 : index
      %c0_18 = arith.constant 0 : index
      %17 = vector.load %arg10[%c0_17, %c0_18] : memref<256x128xf32, #tpu.memory_space<vmem>>, vector<256x128xf32>
      %c0_19 = arith.constant 0 : index
      %c0_20 = arith.constant 0 : index
      %18 = vector.load %arg5[%c0_19, %c0_20] : memref<1x128xf32, #tpu.memory_space<vmem>>, vector<1x128xf32>
      %19 = vector.broadcast %18 : vector<1x128xf32> to vector<256x128xf32>
      %20 = arith.addf %17, %19 : vector<256x128xf32>
      %c0_21 = arith.constant 0 : index
      %c0_22 = arith.constant 0 : index
      %21 = vector.load %arg11[%c0_21, %c0_22] : memref<256x128xf32, #tpu.memory_space<vmem>>, vector<256x128xf32>
      %c0_23 = arith.constant 0 : index
      %c0_24 = arith.constant 0 : index
      %22 = vector.load %arg7[%c0_23, %c0_24] : memref<1x128xf32, #tpu.memory_space<vmem>>, vector<1x128xf32>
      %23 = vector.broadcast %22 : vector<1x128xf32> to vector<256x128xf32>
      %24 = arith.addf %21, %23 : vector<256x128xf32>
      %25 = arith.negf %20 : vector<256x128xf32>
      %26 = math.exp %25 : vector<256x128xf32>
      %cst_25 = arith.constant 1.000000e+00 : f32
      %27 = vector.broadcast %cst_25 : f32 to vector<256x128xf32>
      %28 = arith.addf %27, %26 : vector<256x128xf32>
      %29 = arith.divf %27, %28 : vector<256x128xf32>
      %30 = arith.mulf %20, %29 : vector<256x128xf32>
      %31 = arith.truncf %30 : vector<256x128xf32> to vector<256x128xbf16>
      %c0_26 = arith.constant 0 : index
      %c0_27 = arith.constant 0 : index
      %32 = vector.load %arg8[%c0_26, %c0_27] : memref<256x128xbf16, #tpu.memory_space<vmem>>, vector<256x128xbf16>
      tpu.vector_store %arg8[%c0_26, %c0_27], %31 {strides = array<i32>} : memref<256x128xbf16, #tpu.memory_space<vmem>>, vector<256x128xbf16>,
      %33 = arith.negf %24 : vector<256x128xf32>
      %34 = math.exp %33 : vector<256x128xf32>
      %cst_28 = arith.constant 1.000000e+00 : f32
      %35 = vector.broadcast %cst_28 : f32 to vector<256x128xf32>
      %36 = arith.addf %35, %34 : vector<256x128xf32>
      %37 = arith.divf %35, %36 : vector<256x128xf32>
      %38 = arith.mulf %24, %37 : vector<256x128xf32>
      %39 = arith.truncf %38 : vector<256x128xf32> to vector<256x128xbf16>
      %c0_29 = arith.constant 0 : index
      %c0_30 = arith.constant 0 : index
      %40 = vector.load %arg9[%c0_29, %c0_30] : memref<256x128xbf16, #tpu.memory_space<vmem>>, vector<256x128xbf16>
      tpu.vector_store %arg9[%c0_29, %c0_30], %39 {strides = array<i32>} : memref<256x128xbf16, #tpu.memory_space<vmem>>, vector<256x128xbf16>,
    } else {
    }
    return
  }
  func.func @transform_0(%arg0: i32, %arg1: i32, %arg2: i32) -> (i32, i32) {
    %c0_i32 = arith.constant 0 : i32
    return %arg0, %arg2 : i32, i32
  }
  func.func @transform_1(%arg0: i32, %arg1: i32, %arg2: i32) -> (i32, i32) {
    %c0_i32 = arith.constant 0 : i32
    return %arg2, %arg1 : i32, i32
  }
  func.func @transform_2(%arg0: i32, %arg1: i32, %arg2: i32) -> (i32, i32) {
    %c0_i32 = arith.constant 0 : i32
    %c0_i32_0 = arith.constant 0 : i32
    return %c0_i32, %arg1 : i32, i32
  }
  func.func @transform_3(%arg0: i32, %arg1: i32, %arg2: i32) -> (i32, i32) {
    %c0_i32 = arith.constant 0 : i32
    return %arg2, %arg1 : i32, i32
  }
  func.func @transform_4(%arg0: i32, %arg1: i32, %arg2: i32) -> (i32, i32) {
    %c0_i32 = arith.constant 0 : i32
    %c0_i32_0 = arith.constant 0 : i32
    return %c0_i32, %arg1 : i32, i32
  }
  func.func @transform_5(%arg0: i32, %arg1: i32, %arg2: i32) -> (i32, i32) {
    %c0_i32 = arith.constant 0 : i32
    return %arg0, %arg1 : i32, i32
  }
  func.func @transform_6(%arg0: i32, %arg1: i32, %arg2: i32) -> (i32, i32) {
    %c0_i32 = arith.constant 0 : i32
    return %arg0, %arg1 : i32, i32
  }
}

module attributes {stable_mosaic.version = 11 : i64} {
  func.func @_conv3x3_relu_res_kernel(%arg0: i32, %arg1: i32, %arg2: memref<1x18x18x128xbf16, #tpu.memory_space<vmem>>, %arg3: memref<9x128x128xbf16, #tpu.memory_space<vmem>>, %arg4: memref<1x128xf32, #tpu.memory_space<vmem>>, %arg5: memref<1x16x16x128xbf16, #tpu.memory_space<vmem>>, %arg6: memref<1x16x16x128xbf16, #tpu.memory_space<vmem>>) attributes {dimension_semantics = [#tpu.dimension_semantics<parallel>, #tpu.dimension_semantics<parallel>], iteration_bounds = array<i64: 2, 1>, scalar_prefetch = 0 : i64, scratch_operands = 0 : i64, tpu.core_type = #tpu.core_type<tc>, window_params = [{transform_indices = @transform_0, window_bounds = array<i64: 1, 18, 18, 128>}, {transform_indices = @transform_1, window_bounds = array<i64: 9, 128, 128>}, {transform_indices = @transform_2, window_bounds = array<i64: 1, 128>}, {transform_indices = @transform_3, window_bounds = array<i64: 1, 16, 16, 128>}, {transform_indices = @transform_4, window_bounds = array<i64: 1, 16, 16, 128>}]} {
    %c0 = arith.constant 0 : index
    %c0_0 = arith.constant 0 : index
    %c0_1 = arith.constant 0 : index
    %c0_2 = arith.constant 0 : index
    %0 = vector.load %arg2[%c0, %c0_0, %c0_1, %c0_2] : memref<1x18x18x128xbf16, #tpu.memory_space<vmem>>, vector<1x18x18x128xbf16>
    %1 = arith.extf %0 : vector<1x18x18x128xbf16> to vector<1x18x18x128xf32>
    %2 = vector.shape_cast %1 : vector<1x18x18x128xf32> to vector<18x18x128xf32>
    %cst = arith.constant 0.000000e+00 : f32
    %3 = vector.broadcast %cst : f32 to vector<256x128xf32>
    %4 = vector.extract_strided_slice %2 {offsets = [0, 0, 0], sizes = [16, 16, 128], strides = [1, 1, 1]} : vector<18x18x128xf32> to vector<16x16x128xf32>
    %5 = vector.shape_cast %4 : vector<16x16x128xf32> to vector<256x128xf32>
    %6 = arith.truncf %5 : vector<256x128xf32> to vector<256x128xbf16>
    %c0_3 = arith.constant 0 : index
    %c0_4 = arith.constant 0 : index
    %c0_5 = arith.constant 0 : index
    %7 = vector.load %arg3[%c0_3, %c0_4, %c0_5] : memref<9x128x128xbf16, #tpu.memory_space<vmem>>, vector<1x128x128xbf16>
    %8 = vector.shape_cast %7 : vector<1x128x128xbf16> to vector<128x128xbf16>
    %cst_6 = arith.constant dense<0.000000e+00> : vector<256x128xf32>
    %9 = tpu.matmul %6, %8, %cst_6 {dimension_numbers = #tpu.dot_dimension_numbers<[1], [0], [0], [1], [0, 0, 1, 1], [], []>} : vector<256x128xbf16>, vector<128x128xbf16>, vector<256x128xf32> -> vector<256x128xf32>
    %10 = arith.addf %3, %9 : vector<256x128xf32>
    %11 = vector.extract_strided_slice %2 {offsets = [0, 1, 0], sizes = [16, 16, 128], strides = [1, 1, 1]} : vector<18x18x128xf32> to vector<16x16x128xf32>
    %12 = vector.shape_cast %11 : vector<16x16x128xf32> to vector<256x128xf32>
    %13 = arith.truncf %12 : vector<256x128xf32> to vector<256x128xbf16>
    %c1 = arith.constant 1 : index
    %c0_7 = arith.constant 0 : index
    %c0_8 = arith.constant 0 : index
    %14 = vector.load %arg3[%c1, %c0_7, %c0_8] : memref<9x128x128xbf16, #tpu.memory_space<vmem>>, vector<1x128x128xbf16>
    %15 = vector.shape_cast %14 : vector<1x128x128xbf16> to vector<128x128xbf16>
    %cst_9 = arith.constant dense<0.000000e+00> : vector<256x128xf32>
    %16 = tpu.matmul %13, %15, %cst_9 {dimension_numbers = #tpu.dot_dimension_numbers<[1], [0], [0], [1], [0, 0, 1, 1], [], []>} : vector<256x128xbf16>, vector<128x128xbf16>, vector<256x128xf32> -> vector<256x128xf32>
    %17 = arith.addf %10, %16 : vector<256x128xf32>
    %18 = vector.extract_strided_slice %2 {offsets = [0, 2, 0], sizes = [16, 16, 128], strides = [1, 1, 1]} : vector<18x18x128xf32> to vector<16x16x128xf32>
    %19 = vector.shape_cast %18 : vector<16x16x128xf32> to vector<256x128xf32>
    %20 = arith.truncf %19 : vector<256x128xf32> to vector<256x128xbf16>
    %c2 = arith.constant 2 : index
    %c0_10 = arith.constant 0 : index
    %c0_11 = arith.constant 0 : index
    %21 = vector.load %arg3[%c2, %c0_10, %c0_11] : memref<9x128x128xbf16, #tpu.memory_space<vmem>>, vector<1x128x128xbf16>
    %22 = vector.shape_cast %21 : vector<1x128x128xbf16> to vector<128x128xbf16>
    %cst_12 = arith.constant dense<0.000000e+00> : vector<256x128xf32>
    %23 = tpu.matmul %20, %22, %cst_12 {dimension_numbers = #tpu.dot_dimension_numbers<[1], [0], [0], [1], [0, 0, 1, 1], [], []>} : vector<256x128xbf16>, vector<128x128xbf16>, vector<256x128xf32> -> vector<256x128xf32>
    %24 = arith.addf %17, %23 : vector<256x128xf32>
    %25 = vector.extract_strided_slice %2 {offsets = [1, 0, 0], sizes = [16, 16, 128], strides = [1, 1, 1]} : vector<18x18x128xf32> to vector<16x16x128xf32>
    %26 = vector.shape_cast %25 : vector<16x16x128xf32> to vector<256x128xf32>
    %27 = arith.truncf %26 : vector<256x128xf32> to vector<256x128xbf16>
    %c3 = arith.constant 3 : index
    %c0_13 = arith.constant 0 : index
    %c0_14 = arith.constant 0 : index
    %28 = vector.load %arg3[%c3, %c0_13, %c0_14] : memref<9x128x128xbf16, #tpu.memory_space<vmem>>, vector<1x128x128xbf16>
    %29 = vector.shape_cast %28 : vector<1x128x128xbf16> to vector<128x128xbf16>
    %cst_15 = arith.constant dense<0.000000e+00> : vector<256x128xf32>
    %30 = tpu.matmul %27, %29, %cst_15 {dimension_numbers = #tpu.dot_dimension_numbers<[1], [0], [0], [1], [0, 0, 1, 1], [], []>} : vector<256x128xbf16>, vector<128x128xbf16>, vector<256x128xf32> -> vector<256x128xf32>
    %31 = arith.addf %24, %30 : vector<256x128xf32>
    %32 = vector.extract_strided_slice %2 {offsets = [1, 1, 0], sizes = [16, 16, 128], strides = [1, 1, 1]} : vector<18x18x128xf32> to vector<16x16x128xf32>
    %33 = vector.shape_cast %32 : vector<16x16x128xf32> to vector<256x128xf32>
    %34 = arith.truncf %33 : vector<256x128xf32> to vector<256x128xbf16>
    %c4 = arith.constant 4 : index
    %c0_16 = arith.constant 0 : index
    %c0_17 = arith.constant 0 : index
    %35 = vector.load %arg3[%c4, %c0_16, %c0_17] : memref<9x128x128xbf16, #tpu.memory_space<vmem>>, vector<1x128x128xbf16>
    %36 = vector.shape_cast %35 : vector<1x128x128xbf16> to vector<128x128xbf16>
    %cst_18 = arith.constant dense<0.000000e+00> : vector<256x128xf32>
    %37 = tpu.matmul %34, %36, %cst_18 {dimension_numbers = #tpu.dot_dimension_numbers<[1], [0], [0], [1], [0, 0, 1, 1], [], []>} : vector<256x128xbf16>, vector<128x128xbf16>, vector<256x128xf32> -> vector<256x128xf32>
    %38 = arith.addf %31, %37 : vector<256x128xf32>
    %39 = vector.extract_strided_slice %2 {offsets = [1, 2, 0], sizes = [16, 16, 128], strides = [1, 1, 1]} : vector<18x18x128xf32> to vector<16x16x128xf32>
    %40 = vector.shape_cast %39 : vector<16x16x128xf32> to vector<256x128xf32>
    %41 = arith.truncf %40 : vector<256x128xf32> to vector<256x128xbf16>
    %c5 = arith.constant 5 : index
    %c0_19 = arith.constant 0 : index
    %c0_20 = arith.constant 0 : index
    %42 = vector.load %arg3[%c5, %c0_19, %c0_20] : memref<9x128x128xbf16, #tpu.memory_space<vmem>>, vector<1x128x128xbf16>
    %43 = vector.shape_cast %42 : vector<1x128x128xbf16> to vector<128x128xbf16>
    %cst_21 = arith.constant dense<0.000000e+00> : vector<256x128xf32>
    %44 = tpu.matmul %41, %43, %cst_21 {dimension_numbers = #tpu.dot_dimension_numbers<[1], [0], [0], [1], [0, 0, 1, 1], [], []>} : vector<256x128xbf16>, vector<128x128xbf16>, vector<256x128xf32> -> vector<256x128xf32>
    %45 = arith.addf %38, %44 : vector<256x128xf32>
    %46 = vector.extract_strided_slice %2 {offsets = [2, 0, 0], sizes = [16, 16, 128], strides = [1, 1, 1]} : vector<18x18x128xf32> to vector<16x16x128xf32>
    %47 = vector.shape_cast %46 : vector<16x16x128xf32> to vector<256x128xf32>
    %48 = arith.truncf %47 : vector<256x128xf32> to vector<256x128xbf16>
    %c6 = arith.constant 6 : index
    %c0_22 = arith.constant 0 : index
    %c0_23 = arith.constant 0 : index
    %49 = vector.load %arg3[%c6, %c0_22, %c0_23] : memref<9x128x128xbf16, #tpu.memory_space<vmem>>, vector<1x128x128xbf16>
    %50 = vector.shape_cast %49 : vector<1x128x128xbf16> to vector<128x128xbf16>
    %cst_24 = arith.constant dense<0.000000e+00> : vector<256x128xf32>
    %51 = tpu.matmul %48, %50, %cst_24 {dimension_numbers = #tpu.dot_dimension_numbers<[1], [0], [0], [1], [0, 0, 1, 1], [], []>} : vector<256x128xbf16>, vector<128x128xbf16>, vector<256x128xf32> -> vector<256x128xf32>
    %52 = arith.addf %45, %51 : vector<256x128xf32>
    %53 = vector.extract_strided_slice %2 {offsets = [2, 1, 0], sizes = [16, 16, 128], strides = [1, 1, 1]} : vector<18x18x128xf32> to vector<16x16x128xf32>
    %54 = vector.shape_cast %53 : vector<16x16x128xf32> to vector<256x128xf32>
    %55 = arith.truncf %54 : vector<256x128xf32> to vector<256x128xbf16>
    %c7 = arith.constant 7 : index
    %c0_25 = arith.constant 0 : index
    %c0_26 = arith.constant 0 : index
    %56 = vector.load %arg3[%c7, %c0_25, %c0_26] : memref<9x128x128xbf16, #tpu.memory_space<vmem>>, vector<1x128x128xbf16>
    %57 = vector.shape_cast %56 : vector<1x128x128xbf16> to vector<128x128xbf16>
    %cst_27 = arith.constant dense<0.000000e+00> : vector<256x128xf32>
    %58 = tpu.matmul %55, %57, %cst_27 {dimension_numbers = #tpu.dot_dimension_numbers<[1], [0], [0], [1], [0, 0, 1, 1], [], []>} : vector<256x128xbf16>, vector<128x128xbf16>, vector<256x128xf32> -> vector<256x128xf32>
    %59 = arith.addf %52, %58 : vector<256x128xf32>
    %60 = vector.extract_strided_slice %2 {offsets = [2, 2, 0], sizes = [16, 16, 128], strides = [1, 1, 1]} : vector<18x18x128xf32> to vector<16x16x128xf32>
    %61 = vector.shape_cast %60 : vector<16x16x128xf32> to vector<256x128xf32>
    %62 = arith.truncf %61 : vector<256x128xf32> to vector<256x128xbf16>
    %c8 = arith.constant 8 : index
    %c0_28 = arith.constant 0 : index
    %c0_29 = arith.constant 0 : index
    %63 = vector.load %arg3[%c8, %c0_28, %c0_29] : memref<9x128x128xbf16, #tpu.memory_space<vmem>>, vector<1x128x128xbf16>
    %64 = vector.shape_cast %63 : vector<1x128x128xbf16> to vector<128x128xbf16>
    %cst_30 = arith.constant dense<0.000000e+00> : vector<256x128xf32>
    %65 = tpu.matmul %62, %64, %cst_30 {dimension_numbers = #tpu.dot_dimension_numbers<[1], [0], [0], [1], [0, 0, 1, 1], [], []>} : vector<256x128xbf16>, vector<128x128xbf16>, vector<256x128xf32> -> vector<256x128xf32>
    %66 = arith.addf %59, %65 : vector<256x128xf32>
    %c0_31 = arith.constant 0 : index
    %c0_32 = arith.constant 0 : index
    %67 = vector.load %arg4[%c0_31, %c0_32] : memref<1x128xf32, #tpu.memory_space<vmem>>, vector<1x128xf32>
    %68 = vector.broadcast %67 : vector<1x128xf32> to vector<256x128xf32>
    %69 = arith.addf %66, %68 : vector<256x128xf32>
    %cst_33 = arith.constant 0.000000e+00 : f32
    %70 = vector.broadcast %cst_33 : f32 to vector<256x128xf32>
    %71 = arith.maximumf %69, %70 : vector<256x128xf32>
    %c0_34 = arith.constant 0 : index
    %c0_35 = arith.constant 0 : index
    %c0_36 = arith.constant 0 : index
    %c0_37 = arith.constant 0 : index
    %72 = vector.load %arg5[%c0_34, %c0_35, %c0_36, %c0_37] : memref<1x16x16x128xbf16, #tpu.memory_space<vmem>>, vector<1x16x16x128xbf16>
    %73 = arith.extf %72 : vector<1x16x16x128xbf16> to vector<1x16x16x128xf32>
    %74 = vector.shape_cast %73 : vector<1x16x16x128xf32> to vector<256x128xf32>
    %cst_38 = arith.constant 1.000000e+00 : f32
    %75 = vector.broadcast %cst_38 : f32 to vector<256x128xf32>
    %76 = arith.mulf %75, %74 : vector<256x128xf32>
    %77 = arith.addf %71, %76 : vector<256x128xf32>
    %78 = vector.shape_cast %77 : vector<256x128xf32> to vector<1x16x16x128xf32>
    %79 = arith.truncf %78 : vector<1x16x16x128xf32> to vector<1x16x16x128xbf16>
    %c0_39 = arith.constant 0 : index
    %c0_40 = arith.constant 0 : index
    %c0_41 = arith.constant 0 : index
    %c0_42 = arith.constant 0 : index
    %80 = vector.load %arg6[%c0_39, %c0_40, %c0_41, %c0_42] : memref<1x16x16x128xbf16, #tpu.memory_space<vmem>>, vector<1x16x16x128xbf16>
    tpu.vector_store %arg6[%c0_39, %c0_40, %c0_41, %c0_42], %79 {strides = array<i32>} : memref<1x16x16x128xbf16, #tpu.memory_space<vmem>>, vector<1x16x16x128xbf16>,
    return
  }
  func.func @transform_0(%arg0: i32, %arg1: i32) -> (i32, i32, i32, i32) {
    %c0_i32 = arith.constant 0 : i32
    %c0_i32_0 = arith.constant 0 : i32
    %c0_i32_1 = arith.constant 0 : i32
    %c0_i32_2 = arith.constant 0 : i32
    return %arg0, %c0_i32, %c0_i32_0, %c0_i32_1 : i32, i32, i32, i32
  }
  func.func @transform_1(%arg0: i32, %arg1: i32) -> (i32, i32, i32) {
    %c0_i32 = arith.constant 0 : i32
    %c0_i32_0 = arith.constant 0 : i32
    %c0_i32_1 = arith.constant 0 : i32
    return %c0_i32, %c0_i32_0, %arg1 : i32, i32, i32
  }
  func.func @transform_2(%arg0: i32, %arg1: i32) -> (i32, i32) {
    %c0_i32 = arith.constant 0 : i32
    %c0_i32_0 = arith.constant 0 : i32
    return %c0_i32, %arg1 : i32, i32
  }
  func.func @transform_3(%arg0: i32, %arg1: i32) -> (i32, i32, i32, i32) {
    %c0_i32 = arith.constant 0 : i32
    %c0_i32_0 = arith.constant 0 : i32
    %c0_i32_1 = arith.constant 0 : i32
    return %arg0, %c0_i32, %c0_i32_0, %arg1 : i32, i32, i32, i32
  }
  func.func @transform_4(%arg0: i32, %arg1: i32) -> (i32, i32, i32, i32) {
    %c0_i32 = arith.constant 0 : i32
    %c0_i32_0 = arith.constant 0 : i32
    %c0_i32_1 = arith.constant 0 : i32
    return %arg0, %c0_i32, %c0_i32_0, %arg1 : i32, i32, i32, i32
  }
}

module attributes {stable_mosaic.version = 11 : i64} {
  func.func @_conv3x3_relu_kernel(%arg0: i32, %arg1: i32, %arg2: memref<1x18x18x128xbf16, #tpu.memory_space<vmem>>, %arg3: memref<9x128x128xbf16, #tpu.memory_space<vmem>>, %arg4: memref<1x128xf32, #tpu.memory_space<vmem>>, %arg5: memref<1x16x16x128xbf16, #tpu.memory_space<vmem>>) attributes {dimension_semantics = [#tpu.dimension_semantics<parallel>, #tpu.dimension_semantics<parallel>], iteration_bounds = array<i64: 2, 1>, scalar_prefetch = 0 : i64, scratch_operands = 0 : i64, tpu.core_type = #tpu.core_type<tc>, window_params = [{transform_indices = @transform_0, window_bounds = array<i64: 1, 18, 18, 128>}, {transform_indices = @transform_1, window_bounds = array<i64: 9, 128, 128>}, {transform_indices = @transform_2, window_bounds = array<i64: 1, 128>}, {transform_indices = @transform_3, window_bounds = array<i64: 1, 16, 16, 128>}]} {
    %c0 = arith.constant 0 : index
    %c0_0 = arith.constant 0 : index
    %c0_1 = arith.constant 0 : index
    %c0_2 = arith.constant 0 : index
    %0 = vector.load %arg2[%c0, %c0_0, %c0_1, %c0_2] : memref<1x18x18x128xbf16, #tpu.memory_space<vmem>>, vector<1x18x18x128xbf16>
    %1 = arith.extf %0 : vector<1x18x18x128xbf16> to vector<1x18x18x128xf32>
    %2 = vector.shape_cast %1 : vector<1x18x18x128xf32> to vector<18x18x128xf32>
    %cst = arith.constant 0.000000e+00 : f32
    %3 = vector.broadcast %cst : f32 to vector<256x128xf32>
    %4 = vector.extract_strided_slice %2 {offsets = [0, 0, 0], sizes = [16, 16, 128], strides = [1, 1, 1]} : vector<18x18x128xf32> to vector<16x16x128xf32>
    %5 = vector.shape_cast %4 : vector<16x16x128xf32> to vector<256x128xf32>
    %6 = arith.truncf %5 : vector<256x128xf32> to vector<256x128xbf16>
    %c0_3 = arith.constant 0 : index
    %c0_4 = arith.constant 0 : index
    %c0_5 = arith.constant 0 : index
    %7 = vector.load %arg3[%c0_3, %c0_4, %c0_5] : memref<9x128x128xbf16, #tpu.memory_space<vmem>>, vector<1x128x128xbf16>
    %8 = vector.shape_cast %7 : vector<1x128x128xbf16> to vector<128x128xbf16>
    %cst_6 = arith.constant dense<0.000000e+00> : vector<256x128xf32>
    %9 = tpu.matmul %6, %8, %cst_6 {dimension_numbers = #tpu.dot_dimension_numbers<[1], [0], [0], [1], [0, 0, 1, 1], [], []>} : vector<256x128xbf16>, vector<128x128xbf16>, vector<256x128xf32> -> vector<256x128xf32>
    %10 = arith.addf %3, %9 : vector<256x128xf32>
    %11 = vector.extract_strided_slice %2 {offsets = [0, 1, 0], sizes = [16, 16, 128], strides = [1, 1, 1]} : vector<18x18x128xf32> to vector<16x16x128xf32>
    %12 = vector.shape_cast %11 : vector<16x16x128xf32> to vector<256x128xf32>
    %13 = arith.truncf %12 : vector<256x128xf32> to vector<256x128xbf16>
    %c1 = arith.constant 1 : index
    %c0_7 = arith.constant 0 : index
    %c0_8 = arith.constant 0 : index
    %14 = vector.load %arg3[%c1, %c0_7, %c0_8] : memref<9x128x128xbf16, #tpu.memory_space<vmem>>, vector<1x128x128xbf16>
    %15 = vector.shape_cast %14 : vector<1x128x128xbf16> to vector<128x128xbf16>
    %cst_9 = arith.constant dense<0.000000e+00> : vector<256x128xf32>
    %16 = tpu.matmul %13, %15, %cst_9 {dimension_numbers = #tpu.dot_dimension_numbers<[1], [0], [0], [1], [0, 0, 1, 1], [], []>} : vector<256x128xbf16>, vector<128x128xbf16>, vector<256x128xf32> -> vector<256x128xf32>
    %17 = arith.addf %10, %16 : vector<256x128xf32>
    %18 = vector.extract_strided_slice %2 {offsets = [0, 2, 0], sizes = [16, 16, 128], strides = [1, 1, 1]} : vector<18x18x128xf32> to vector<16x16x128xf32>
    %19 = vector.shape_cast %18 : vector<16x16x128xf32> to vector<256x128xf32>
    %20 = arith.truncf %19 : vector<256x128xf32> to vector<256x128xbf16>
    %c2 = arith.constant 2 : index
    %c0_10 = arith.constant 0 : index
    %c0_11 = arith.constant 0 : index
    %21 = vector.load %arg3[%c2, %c0_10, %c0_11] : memref<9x128x128xbf16, #tpu.memory_space<vmem>>, vector<1x128x128xbf16>
    %22 = vector.shape_cast %21 : vector<1x128x128xbf16> to vector<128x128xbf16>
    %cst_12 = arith.constant dense<0.000000e+00> : vector<256x128xf32>
    %23 = tpu.matmul %20, %22, %cst_12 {dimension_numbers = #tpu.dot_dimension_numbers<[1], [0], [0], [1], [0, 0, 1, 1], [], []>} : vector<256x128xbf16>, vector<128x128xbf16>, vector<256x128xf32> -> vector<256x128xf32>
    %24 = arith.addf %17, %23 : vector<256x128xf32>
    %25 = vector.extract_strided_slice %2 {offsets = [1, 0, 0], sizes = [16, 16, 128], strides = [1, 1, 1]} : vector<18x18x128xf32> to vector<16x16x128xf32>
    %26 = vector.shape_cast %25 : vector<16x16x128xf32> to vector<256x128xf32>
    %27 = arith.truncf %26 : vector<256x128xf32> to vector<256x128xbf16>
    %c3 = arith.constant 3 : index
    %c0_13 = arith.constant 0 : index
    %c0_14 = arith.constant 0 : index
    %28 = vector.load %arg3[%c3, %c0_13, %c0_14] : memref<9x128x128xbf16, #tpu.memory_space<vmem>>, vector<1x128x128xbf16>
    %29 = vector.shape_cast %28 : vector<1x128x128xbf16> to vector<128x128xbf16>
    %cst_15 = arith.constant dense<0.000000e+00> : vector<256x128xf32>
    %30 = tpu.matmul %27, %29, %cst_15 {dimension_numbers = #tpu.dot_dimension_numbers<[1], [0], [0], [1], [0, 0, 1, 1], [], []>} : vector<256x128xbf16>, vector<128x128xbf16>, vector<256x128xf32> -> vector<256x128xf32>
    %31 = arith.addf %24, %30 : vector<256x128xf32>
    %32 = vector.extract_strided_slice %2 {offsets = [1, 1, 0], sizes = [16, 16, 128], strides = [1, 1, 1]} : vector<18x18x128xf32> to vector<16x16x128xf32>
    %33 = vector.shape_cast %32 : vector<16x16x128xf32> to vector<256x128xf32>
    %34 = arith.truncf %33 : vector<256x128xf32> to vector<256x128xbf16>
    %c4 = arith.constant 4 : index
    %c0_16 = arith.constant 0 : index
    %c0_17 = arith.constant 0 : index
    %35 = vector.load %arg3[%c4, %c0_16, %c0_17] : memref<9x128x128xbf16, #tpu.memory_space<vmem>>, vector<1x128x128xbf16>
    %36 = vector.shape_cast %35 : vector<1x128x128xbf16> to vector<128x128xbf16>
    %cst_18 = arith.constant dense<0.000000e+00> : vector<256x128xf32>
    %37 = tpu.matmul %34, %36, %cst_18 {dimension_numbers = #tpu.dot_dimension_numbers<[1], [0], [0], [1], [0, 0, 1, 1], [], []>} : vector<256x128xbf16>, vector<128x128xbf16>, vector<256x128xf32> -> vector<256x128xf32>
    %38 = arith.addf %31, %37 : vector<256x128xf32>
    %39 = vector.extract_strided_slice %2 {offsets = [1, 2, 0], sizes = [16, 16, 128], strides = [1, 1, 1]} : vector<18x18x128xf32> to vector<16x16x128xf32>
    %40 = vector.shape_cast %39 : vector<16x16x128xf32> to vector<256x128xf32>
    %41 = arith.truncf %40 : vector<256x128xf32> to vector<256x128xbf16>
    %c5 = arith.constant 5 : index
    %c0_19 = arith.constant 0 : index
    %c0_20 = arith.constant 0 : index
    %42 = vector.load %arg3[%c5, %c0_19, %c0_20] : memref<9x128x128xbf16, #tpu.memory_space<vmem>>, vector<1x128x128xbf16>
    %43 = vector.shape_cast %42 : vector<1x128x128xbf16> to vector<128x128xbf16>
    %cst_21 = arith.constant dense<0.000000e+00> : vector<256x128xf32>
    %44 = tpu.matmul %41, %43, %cst_21 {dimension_numbers = #tpu.dot_dimension_numbers<[1], [0], [0], [1], [0, 0, 1, 1], [], []>} : vector<256x128xbf16>, vector<128x128xbf16>, vector<256x128xf32> -> vector<256x128xf32>
    %45 = arith.addf %38, %44 : vector<256x128xf32>
    %46 = vector.extract_strided_slice %2 {offsets = [2, 0, 0], sizes = [16, 16, 128], strides = [1, 1, 1]} : vector<18x18x128xf32> to vector<16x16x128xf32>
    %47 = vector.shape_cast %46 : vector<16x16x128xf32> to vector<256x128xf32>
    %48 = arith.truncf %47 : vector<256x128xf32> to vector<256x128xbf16>
    %c6 = arith.constant 6 : index
    %c0_22 = arith.constant 0 : index
    %c0_23 = arith.constant 0 : index
    %49 = vector.load %arg3[%c6, %c0_22, %c0_23] : memref<9x128x128xbf16, #tpu.memory_space<vmem>>, vector<1x128x128xbf16>
    %50 = vector.shape_cast %49 : vector<1x128x128xbf16> to vector<128x128xbf16>
    %cst_24 = arith.constant dense<0.000000e+00> : vector<256x128xf32>
    %51 = tpu.matmul %48, %50, %cst_24 {dimension_numbers = #tpu.dot_dimension_numbers<[1], [0], [0], [1], [0, 0, 1, 1], [], []>} : vector<256x128xbf16>, vector<128x128xbf16>, vector<256x128xf32> -> vector<256x128xf32>
    %52 = arith.addf %45, %51 : vector<256x128xf32>
    %53 = vector.extract_strided_slice %2 {offsets = [2, 1, 0], sizes = [16, 16, 128], strides = [1, 1, 1]} : vector<18x18x128xf32> to vector<16x16x128xf32>
    %54 = vector.shape_cast %53 : vector<16x16x128xf32> to vector<256x128xf32>
    %55 = arith.truncf %54 : vector<256x128xf32> to vector<256x128xbf16>
    %c7 = arith.constant 7 : index
    %c0_25 = arith.constant 0 : index
    %c0_26 = arith.constant 0 : index
    %56 = vector.load %arg3[%c7, %c0_25, %c0_26] : memref<9x128x128xbf16, #tpu.memory_space<vmem>>, vector<1x128x128xbf16>
    %57 = vector.shape_cast %56 : vector<1x128x128xbf16> to vector<128x128xbf16>
    %cst_27 = arith.constant dense<0.000000e+00> : vector<256x128xf32>
    %58 = tpu.matmul %55, %57, %cst_27 {dimension_numbers = #tpu.dot_dimension_numbers<[1], [0], [0], [1], [0, 0, 1, 1], [], []>} : vector<256x128xbf16>, vector<128x128xbf16>, vector<256x128xf32> -> vector<256x128xf32>
    %59 = arith.addf %52, %58 : vector<256x128xf32>
    %60 = vector.extract_strided_slice %2 {offsets = [2, 2, 0], sizes = [16, 16, 128], strides = [1, 1, 1]} : vector<18x18x128xf32> to vector<16x16x128xf32>
    %61 = vector.shape_cast %60 : vector<16x16x128xf32> to vector<256x128xf32>
    %62 = arith.truncf %61 : vector<256x128xf32> to vector<256x128xbf16>
    %c8 = arith.constant 8 : index
    %c0_28 = arith.constant 0 : index
    %c0_29 = arith.constant 0 : index
    %63 = vector.load %arg3[%c8, %c0_28, %c0_29] : memref<9x128x128xbf16, #tpu.memory_space<vmem>>, vector<1x128x128xbf16>
    %64 = vector.shape_cast %63 : vector<1x128x128xbf16> to vector<128x128xbf16>
    %cst_30 = arith.constant dense<0.000000e+00> : vector<256x128xf32>
    %65 = tpu.matmul %62, %64, %cst_30 {dimension_numbers = #tpu.dot_dimension_numbers<[1], [0], [0], [1], [0, 0, 1, 1], [], []>} : vector<256x128xbf16>, vector<128x128xbf16>, vector<256x128xf32> -> vector<256x128xf32>
    %66 = arith.addf %59, %65 : vector<256x128xf32>
    %c0_31 = arith.constant 0 : index
    %c0_32 = arith.constant 0 : index
    %67 = vector.load %arg4[%c0_31, %c0_32] : memref<1x128xf32, #tpu.memory_space<vmem>>, vector<1x128xf32>
    %68 = vector.broadcast %67 : vector<1x128xf32> to vector<256x128xf32>
    %69 = arith.addf %66, %68 : vector<256x128xf32>
    %cst_33 = arith.constant 0.000000e+00 : f32
    %70 = vector.broadcast %cst_33 : f32 to vector<256x128xf32>
    %71 = arith.maximumf %69, %70 : vector<256x128xf32>
    %72 = vector.shape_cast %71 : vector<256x128xf32> to vector<1x16x16x128xf32>
    %73 = arith.truncf %72 : vector<1x16x16x128xf32> to vector<1x16x16x128xbf16>
    %c0_34 = arith.constant 0 : index
    %c0_35 = arith.constant 0 : index
    %c0_36 = arith.constant 0 : index
    %c0_37 = arith.constant 0 : index
    %74 = vector.load %arg5[%c0_34, %c0_35, %c0_36, %c0_37] : memref<1x16x16x128xbf16, #tpu.memory_space<vmem>>, vector<1x16x16x128xbf16>
    tpu.vector_store %arg5[%c0_34, %c0_35, %c0_36, %c0_37], %73 {strides = array<i32>} : memref<1x16x16x128xbf16, #tpu.memory_space<vmem>>, vector<1x16x16x128xbf16>,
    return
  }
  func.func @transform_0(%arg0: i32, %arg1: i32) -> (i32, i32, i32, i32) {
    %c0_i32 = arith.constant 0 : i32
    %c0_i32_0 = arith.constant 0 : i32
    %c0_i32_1 = arith.constant 0 : i32
    %c0_i32_2 = arith.constant 0 : i32
    return %arg0, %c0_i32, %c0_i32_0, %c0_i32_1 : i32, i32, i32, i32
  }
  func.func @transform_1(%arg0: i32, %arg1: i32) -> (i32, i32, i32) {
    %c0_i32 = arith.constant 0 : i32
    %c0_i32_0 = arith.constant 0 : i32
    %c0_i32_1 = arith.constant 0 : i32
    return %c0_i32, %c0_i32_0, %arg1 : i32, i32, i32
  }
  func.func @transform_2(%arg0: i32, %arg1: i32) -> (i32, i32) {
    %c0_i32 = arith.constant 0 : i32
    %c0_i32_0 = arith.constant 0 : i32
    return %c0_i32, %arg1 : i32, i32
  }
  func.func @transform_3(%arg0: i32, %arg1: i32) -> (i32, i32, i32, i32) {
    %c0_i32 = arith.constant 0 : i32
    %c0_i32_0 = arith.constant 0 : i32
    %c0_i32_1 = arith.constant 0 : i32
    return %arg0, %c0_i32, %c0_i32_0, %arg1 : i32, i32, i32, i32
  }
}

module attributes {stable_mosaic.version = 11 : i64} {
  func.func @_mm_dual_silu_kernel(%arg0: i32, %arg1: i32, %arg2: i32, %arg3: memref<256x128xbf16, #tpu.memory_space<vmem>>, %arg4: memref<128x128xbf16, #tpu.memory_space<vmem>>, %arg5: memref<256x128xbf16, #tpu.memory_space<vmem>>, %arg6: memref<128x128xbf16, #tpu.memory_space<vmem>>, %arg7: memref<1x128xf32, #tpu.memory_space<vmem>>, %arg8: memref<256x128xf32, #tpu.memory_space<vmem>>, %arg9: memref<256x128xf32, #tpu.memory_space<vmem>>) attributes {dimension_semantics = [#tpu.dimension_semantics<parallel>, #tpu.dimension_semantics<parallel>, #tpu.dimension_semantics<arbitrary>], iteration_bounds = array<i64: 2, 1, 1>, scalar_prefetch = 0 : i64, scratch_operands = 1 : i64, tpu.core_type = #tpu.core_type<tc>, window_params = [{transform_indices = @transform_0, window_bounds = array<i64: 256, 128>}, {transform_indices = @transform_1, window_bounds = array<i64: 128, 128>}, {transform_indices = @transform_2, window_bounds = array<i64: 256, 128>}, {transform_indices = @transform_3, window_bounds = array<i64: 128, 128>}, {transform_indices = @transform_4, window_bounds = array<i64: 1, 128>}, {transform_indices = @transform_5, window_bounds = array<i64: 256, 128>}]} {
    %c0_i32 = arith.constant 0 : i32
    %0 = arith.cmpi eq, %arg2, %c0_i32 : i32
    %1 = arith.extui %0 : i1 to i32
    %c0_i32_0 = arith.constant 0 : i32
    %2 = arith.cmpi ne, %1, %c0_i32_0 : i32
    scf.if %2 {
      %cst_15 = arith.constant 0.000000e+00 : f32
      %16 = vector.broadcast %cst_15 : f32 to vector<256x128xf32>
      %c0_16 = arith.constant 0 : index
      %c0_17 = arith.constant 0 : index
      %17 = vector.load %arg9[%c0_16, %c0_17] : memref<256x128xf32, #tpu.memory_space<vmem>>, vector<256x128xf32>
      tpu.vector_store %arg9[%c0_16, %c0_17], %16 {strides = array<i32>} : memref<256x128xf32, #tpu.memory_space<vmem>>, vector<256x128xf32>,
    } else {
    }
    %c0 = arith.constant 0 : index
    %c0_1 = arith.constant 0 : index
    %3 = vector.load %arg9[%c0, %c0_1] : memref<256x128xf32, #tpu.memory_space<vmem>>, vector<256x128xf32>
    %c0_2 = arith.constant 0 : index
    %c0_3 = arith.constant 0 : index
    %4 = vector.load %arg3[%c0_2, %c0_3] : memref<256x128xbf16, #tpu.memory_space<vmem>>, vector<256x128xbf16>
    %c0_4 = arith.constant 0 : index
    %c0_5 = arith.constant 0 : index
    %5 = vector.load %arg4[%c0_4, %c0_5] : memref<128x128xbf16, #tpu.memory_space<vmem>>, vector<128x128xbf16>
    %cst = arith.constant dense<0.000000e+00> : vector<256x128xf32>
    %6 = tpu.matmul %4, %5, %cst {dimension_numbers = #tpu.dot_dimension_numbers<[1], [0], [0], [1], [0, 0, 1, 1], [], []>} : vector<256x128xbf16>, vector<128x128xbf16>, vector<256x128xf32> -> vector<256x128xf32>
    %c0_6 = arith.constant 0 : index
    %c0_7 = arith.constant 0 : index
    %7 = vector.load %arg5[%c0_6, %c0_7] : memref<256x128xbf16, #tpu.memory_space<vmem>>, vector<256x128xbf16>
    %c0_8 = arith.constant 0 : index
    %c0_9 = arith.constant 0 : index
    %8 = vector.load %arg6[%c0_8, %c0_9] : memref<128x128xbf16, #tpu.memory_space<vmem>>, vector<128x128xbf16>
    %cst_10 = arith.constant dense<0.000000e+00> : vector<256x128xf32>
    %9 = tpu.matmul %7, %8, %cst_10 {dimension_numbers = #tpu.dot_dimension_numbers<[1], [0], [0], [1], [0, 0, 1, 1], [], []>} : vector<256x128xbf16>, vector<128x128xbf16>, vector<256x128xf32> -> vector<256x128xf32>
    %10 = arith.addf %6, %9 : vector<256x128xf32>
    %11 = arith.addf %3, %10 : vector<256x128xf32>
    %c0_11 = arith.constant 0 : index
    %c0_12 = arith.constant 0 : index
    %12 = vector.load %arg9[%c0_11, %c0_12] : memref<256x128xf32, #tpu.memory_space<vmem>>, vector<256x128xf32>
    tpu.vector_store %arg9[%c0_11, %c0_12], %11 {strides = array<i32>} : memref<256x128xf32, #tpu.memory_space<vmem>>, vector<256x128xf32>,
    %c0_i32_13 = arith.constant 0 : i32
    %13 = arith.cmpi eq, %arg2, %c0_i32_13 : i32
    %14 = arith.extui %13 : i1 to i32
    %c0_i32_14 = arith.constant 0 : i32
    %15 = arith.cmpi ne, %14, %c0_i32_14 : i32
    scf.if %15 {
      %c0_15 = arith.constant 0 : index
      %c0_16 = arith.constant 0 : index
      %16 = vector.load %arg9[%c0_15, %c0_16] : memref<256x128xf32, #tpu.memory_space<vmem>>, vector<256x128xf32>
      %c0_17 = arith.constant 0 : index
      %c0_18 = arith.constant 0 : index
      %17 = vector.load %arg7[%c0_17, %c0_18] : memref<1x128xf32, #tpu.memory_space<vmem>>, vector<1x128xf32>
      %18 = vector.broadcast %17 : vector<1x128xf32> to vector<256x128xf32>
      %19 = arith.addf %16, %18 : vector<256x128xf32>
      %20 = arith.negf %19 : vector<256x128xf32>
      %21 = math.exp %20 : vector<256x128xf32>
      %cst_19 = arith.constant 1.000000e+00 : f32
      %22 = vector.broadcast %cst_19 : f32 to vector<256x128xf32>
      %23 = arith.addf %22, %21 : vector<256x128xf32>
      %24 = arith.divf %22, %23 : vector<256x128xf32>
      %25 = arith.mulf %19, %24 : vector<256x128xf32>
      %c0_20 = arith.constant 0 : index
      %c0_21 = arith.constant 0 : index
      %26 = vector.load %arg8[%c0_20, %c0_21] : memref<256x128xf32, #tpu.memory_space<vmem>>, vector<256x128xf32>
      tpu.vector_store %arg8[%c0_20, %c0_21], %25 {strides = array<i32>} : memref<256x128xf32, #tpu.memory_space<vmem>>, vector<256x128xf32>,
    } else {
    }
    return
  }
  func.func @transform_0(%arg0: i32, %arg1: i32, %arg2: i32) -> (i32, i32) {
    %c0_i32 = arith.constant 0 : i32
    return %arg0, %arg2 : i32, i32
  }
  func.func @transform_1(%arg0: i32, %arg1: i32, %arg2: i32) -> (i32, i32) {
    %c0_i32 = arith.constant 0 : i32
    return %arg2, %arg1 : i32, i32
  }
  func.func @transform_2(%arg0: i32, %arg1: i32, %arg2: i32) -> (i32, i32) {
    %c0_i32 = arith.constant 0 : i32
    return %arg0, %arg2 : i32, i32
  }
  func.func @transform_3(%arg0: i32, %arg1: i32, %arg2: i32) -> (i32, i32) {
    %c0_i32 = arith.constant 0 : i32
    return %arg2, %arg1 : i32, i32
  }
  func.func @transform_4(%arg0: i32, %arg1: i32, %arg2: i32) -> (i32, i32) {
    %c0_i32 = arith.constant 0 : i32
    %c0_i32_0 = arith.constant 0 : i32
    return %c0_i32, %arg1 : i32, i32
  }
  func.func @transform_5(%arg0: i32, %arg1: i32, %arg2: i32) -> (i32, i32) {
    %c0_i32 = arith.constant 0 : i32
    return %arg0, %arg1 : i32, i32
  }
}

</mosaic_0001>

<bundles_post_ra>
// kernel: csp_stack_rep_forward.6
= control target key start
LH: loop header
LB: loop body
LE: loop exit
PB: predicated region body
PF: predicated region fallthrough
CT: control target
= control target key end

     0   :  { %s3296_s21 = smov 0   ;;  %s3298_s22 = smov 0   ;;  %s3908_s0 = inlined_call_operand.vmem [shape: bf16[512,128], index: 0, kind: input, shape index: {}]   ;;  %s3909_s1 = inlined_call_operand.vmem [shape: bf16[128,128], index: 1, kind: input, shape index: {}]   ;;  %s3910_s2 = inlined_call_operand.vmem [shape: f32[1,128], index: 2, kind: input, shape index: {}]   ;;  %s3911_s3 = inlined_call_operand.vmem [shape: bf16[128,128], index: 3, kind: input, shape index: {}]   ;;  %s3912_s4 = inlined_call_operand.vmem [shape: f32[1,128], index: 4, kind: input, shape index: {}]   ;;  %s3913_s5 = inlined_call_operand.vmem [shape: bf16[512,128], index: 5, kind: output, shape index: {0}]   ;;  %s3914_s6 = inlined_call_operand.vmem [shape: bf16[512,128], index: 6, kind: output, shape index: {1}]  }
   0x1   :  { %s3300_s23 = smov 0  }
   0x2 LB: > { %s36_s24 = sadd.s32 1, %s3255_s22  ;;  %p2354_p0 = scmp.ge.s32.totalorder %s3259_s23, 1  ;;  %s3259_s23 = sphi %s3300_s23, %s17_s23   ;;  %s3255_s22 = sphi %s3298_s22, %s3932_s22   ;;  %s3251_s21 = sphi %s3296_s21, %s3931_s21  }
   0x3   : > { %p38_p1 = scmp.ge.s32.totalorder %s36_s24, 2  ;;  %p292_p2 = scmp.lt.s32.totalorder %s3259_s23, 3 }
   0x5   : > { %s3934_s24 = smov (%p38_p1, %s36_s24), 0  ;;  %p293_p3 = pnand %p2354_p0, %p292_p2 }
   0x7   : > { %296 = sbr.rel (%p293_p3) target bundleno = 408 (0x198), region = 40 }
   0xe   : > { %v2947_v0 = vld [vmem:[%s3909_s1] sm:$0xff]   ;;  %s2355_s27 = sshll.u32 %s3251_s21, 5  ;;  %v2949_v2 = vld [vmem:[%s3909_s1 + $0x8] sm:$0xff]   ;;  %v2951_v4 = vld [vmem:[%s3909_s1 + $0x10] sm:$0xff]  }
   0xf   : > { %v2948_v1 = vld [vmem:[%s3911_s3] sm:$0xff]   ;;  %2827 = vmatprep.subr.bf16.mxu0 %v2947_v0  ;;  %p359_p4 = scmp.lt.s32.totalorder %s2355_s27, 63  ;;  %v2950_v3 = vld [vmem:[%s3911_s3 + $0x8] sm:$0xff]   ;;  %v2952_v5 = vld [vmem:[%s3911_s3 + $0x10] sm:$0xff]  }
  0x10   : > { %2875 = vmatprep.subr.bf16.mxu1 %v2948_v1  ;;  %2828 = vmatpush3.bf16.msra.mxu0 %v2947_v0  ;;  %v2953_v6 = vld [vmem:[%s3909_s1 + $0x18] sm:$0xff]   ;;  %v2955_v8 = vld [vmem:[%s3909_s1 + $0x20] sm:$0xff]   ;;  %v2957_v10 = vld [vmem:[%s3909_s1 + $0x28] sm:$0xff]  }
  0x11   : > { %2876 = vmatpush3.bf16.msra.mxu1 %v2948_v1  ;;  %2829 = vmatprep.subr.bf16.mxu0 %v2949_v2  ;;  %s3936_s27 = smov (!%p359_p4, %s2355_s27), 63  ;;  %v2954_v7 = vld [vmem:[%s3911_s3 + $0x18] sm:$0xff]   ;;  %v2956_v9 = vld [vmem:[%s3911_s3 + $0x20] sm:$0xff]   ;;  %v2958_v12 = vld [vmem:[%s3911_s3 + $0x28] sm:$0xff]  }
  0x12   : > { %2877 = vmatprep.subr.bf16.mxu1 %v2950_v3  ;;  %s3338_s18 = sshll.u32 %s3936_s27, 2  ;;  %v2959_v13 = vld [vmem:[%s3909_s1 + $0x30] sm:$0xff]   ;;  %v2961_v15 = vld [vmem:[%s3909_s1 + $0x38] sm:$0xff]   ;;  %v3389_v32 = vld [vmem:[%s3910_s2] ss:$0 sm:$0xff] }
  0x13   : > { %s3350_s29 = scalar_lea.vmem %s3908_s0, %s3338_s18  ;;  %v2960_v14 = vld [vmem:[%s3911_s3 + $0x30] sm:$0xff]   ;;  %v2962_v16 = vld [vmem:[%s3911_s3 + $0x38] sm:$0xff]   ;;  %v3394_v33 = vld [vmem:[%s3912_s4] ss:$0 sm:$0xff]  ;;  %s3519_s28 = scalar_lea.vmem %s3913_s5, %s3338_s18 }
  0x14   : > { %2830 = vmatpush3.bf16.msra.mxu0 %v2949_v2  ;;  %v2963_v11 = vld [vmem:[%s3350_s29] sm:$0xff]   ;;  %v2964_v17 = vld [vmem:[%s3350_s29 + $0x8] sm:$0xff]   ;;  %v2965_v18 = vld [vmem:[%s3350_s29 + $0x10] sm:$0xff]   ;;  %s3534_s30 = scalar_lea.vmem %s3914_s6, %s3338_s18 }
  0x15   : > { %2878 = vmatpush3.bf16.msra.mxu1 %v2950_v3  ;;  %2831 = vmatprep.subr.bf16.mxu0 %v2951_v4  ;;  %v2966_v19 = vld [vmem:[%s3350_s29 + $0x18] sm:$0xff]   ;;  %v2967_v20 = vld [vmem:[%s3350_s29 + $0x20] sm:$0xff]   ;;  %v2968_v21 = vld [vmem:[%s3350_s29 + $0x28] sm:$0xff]  }
  0x16   : > { %2879 = vmatprep.subr.bf16.mxu1 %v2952_v5  ;;  %2843 = vmatprep.mubr.bf16.mxu0 %v2963_v11  ;;  %v2969_v22 = vld [vmem:[%s3350_s29 + $0x30] sm:$0xff]   ;;  %v2970_v23 = vld [vmem:[%s3350_s29 + $0x38] sm:$0xff]   ;;  %v2971_v24 = vld [vmem:[%s3350_s29 + $0x40] sm:$0xff]  }
  0x17   : > { %2891 = vmatprep.mubr.bf16.mxu1 %v2963_v11  ;;  %v2972_v25 = vld [vmem:[%s3350_s29 + $0x48] sm:$0xff]   ;;  %v2973_v26 = vld [vmem:[%s3350_s29 + $0x50] sm:$0xff]   ;;  %v2974_v27 = vld [vmem:[%s3350_s29 + $0x58] sm:$0xff]  }
  0x18   : > { %2832 = vmatpush3.bf16.msra.mxu0 %v2951_v4  ;;  %v2975_v28 = vld [vmem:[%s3350_s29 + $0x60] sm:$0xff]   ;;  %v2976_v29 = vld [vmem:[%s3350_s29 + $0x68] sm:$0xff]   ;;  %v2977_v30 = vld [vmem:[%s3350_s29 + $0x70] sm:$0xff]  }
  0x19   : > { %2880 = vmatpush3.bf16.msra.mxu1 %v2952_v5  ;;  %2833 = vmatprep.subr.bf16.mxu0 %v2953_v6  ;;  %v2978_v31 = vld [vmem:[%s3350_s29 + $0x78] sm:$0xff]  }
  0x1a   : > { %2881 = vmatprep.subr.bf16.mxu1 %v2954_v7 }
  0x1c   : > { %2834 = vmatpush3.bf16.msra.mxu0 %v2953_v6 }
  0x1d   : > { %2882 = vmatpush3.bf16.msra.mxu1 %v2954_v7  ;;  %2835 = vmatprep.subr.bf16.mxu0 %v2955_v8 }
  0x1e   : > { %2883 = vmatprep.subr.bf16.mxu1 %v2956_v9 }
  0x20   : > { %2836 = vmatpush3.bf16.msra.mxu0 %v2955_v8 }
  0x21   : > { %2884 = vmatpush3.bf16.msra.mxu1 %v2956_v9  ;;  %2837 = vmatprep.subr.bf16.mxu0 %v2957_v10 }
  0x22   : > { %2885 = vmatprep.subr.bf16.mxu1 %v2958_v12 }
  0x24   : > { %2838 = vmatpush3.bf16.msra.mxu0 %v2957_v10 }
  0x25   : > { %2886 = vmatpush3.bf16.msra.mxu1 %v2958_v12  ;;  %2839 = vmatprep.subr.bf16.mxu0 %v2959_v13 }
  0x26   : > { %2887 = vmatprep.subr.bf16.mxu1 %v2960_v14 }
  0x28   : > { %2840 = vmatpush3.bf16.msra.mxu0 %v2959_v13 }
  0x29   : > { %2888 = vmatpush3.bf16.msra.mxu1 %v2960_v14  ;;  %2841 = vmatprep.subr.bf16.mxu0 %v2961_v15 }
  0x2a   : > { %2889 = vmatprep.subr.bf16.mxu1 %v2962_v16 }
  0x2c   : > { %2842 = vmatpush3.bf16.msra.mxu0 %v2961_v15 }
  0x2d   : > { %2890 = vmatpush3.bf16.msra.mxu1 %v2962_v16 }
  0x2f   : > { %2844 = vmatmul.mubr.bf16.vlgmr.msra.gmra.mrb[0].mxu0 %v2964_v17 }
  0x30   : > { %2892 = vmatmul.mubr.bf16.vlgmr.msra.gmra.mrb[0].mxu1 %v2964_v17  ;;  %2847 = vmatprep.mubr.bf16.mxu0 %v2965_v18 }
  0x31   : > { %2895 = vmatprep.mubr.bf16.mxu1 %v2965_v18 }
  0x37   : > { %2848 = vmatmul.mubr.bf16.gmra.mrb[4].mxu0 %v2966_v19 }
  0x38   : > { %2896 = vmatmul.mubr.bf16.gmra.mrb[4].mxu1 %v2966_v19  ;;  %2851 = vmatprep.mubr.bf16.mxu0 %v2967_v20 }
  0x39   : > { %2899 = vmatprep.mubr.bf16.mxu1 %v2967_v20 }
  0x3f   : > { %2852 = vmatmul.mubr.bf16.gmra.mrb[8].mxu0 %v2968_v21 }
  0x40   : > { %2900 = vmatmul.mubr.bf16.gmra.mrb[8].mxu1 %v2968_v21  ;;  %2855 = vmatprep.mubr.bf16.mxu0 %v2969_v22 }
  0x41   : > { %2903 = vmatprep.mubr.bf16.mxu1 %v2969_v22 }
  0x47   : > { %2856 = vmatmul.mubr.bf16.gmra.mrb[12].mxu0 %v2970_v23 }
  0x48   : > { %2904 = vmatmul.mubr.bf16.gmra.mrb[12].mxu1 %v2970_v23  ;;  %2859 = vmatprep.mubr.bf16.mxu0 %v2971_v24 }
  0x49   : > { %2907 = vmatprep.mubr.bf16.mxu1 %v2971_v24 }
  0x4f   : > { %2860 = vmatmul.mubr.bf16.gmra.mrb[16].mxu0 %v2972_v25 }
  0x50   : > { %2908 = vmatmul.mubr.bf16.gmra.mrb[16].mxu1 %v2972_v25  ;;  %2863 = vmatprep.mubr.bf16.mxu0 %v2973_v26 }
  0x51   : > { %2911 = vmatprep.mubr.bf16.mxu1 %v2973_v26 }
  0x57   : > { %2864 = vmatmul.mubr.bf16.gmra.mrb[20].mxu0 %v2974_v27 }
  0x58   : > { %2912 = vmatmul.mubr.bf16.gmra.mrb[20].mxu1 %v2974_v27  ;;  %2867 = vmatprep.mubr.bf16.mxu0 %v2975_v28 }
  0x59   : > { %2915 = vmatprep.mubr.bf16.mxu1 %v2975_v28 }
  0x5f   : > { %2868 = vmatmul.mubr.bf16.gmra.mrb[24].mxu0 %v2976_v29 }
  0x60   : > { %2916 = vmatmul.mubr.bf16.gmra.mrb[24].mxu1 %v2976_v29  ;;  %2871 = vmatprep.mubr.bf16.mxu0 %v2977_v30 }
  0x61   : > { %2919 = vmatprep.mubr.bf16.mxu1 %v2977_v30 }
  0x67   : > { %2872 = vmatmul.mubr.bf16.gmra.mrb[28].mxu0 %v2978_v31 }
  0x68   : > { %2920 = vmatmul.mubr.bf16.gmra.mrb[28].mxu1 %v2978_v31 }
 0x102   : > { %v2845_v34 = vpop.f32.mrb[0].mxu0 }
 0x103   : > { %v3397_v35 = vadd.f32 %v2845_v34, %v3389_v32  ;;  %v2893_v36 = vpop.f32.mrb[0].mxu1  ;;  %v736_v37 = vpop.f32.mrb[1].mxu0 }
 0x104   : > { %v3400_v38 = vadd.f32 %v2893_v36, %v3394_v33  ;;  %v3403_v39 = vadd.f32 %v3389_v32, %v736_v37  ;;  %v1057_v40 = vpop.f32.mrb[1].mxu1  ;;  %v2846_v41 = vpop.f32.mrb[2].mxu0 }
 0x105   : > { %v2397_v42 = vmul.f32 -1.442695, %v3397_v35  ;;  %v3407_v43 = vadd.f32 %v3394_v33, %v1057_v40  ;;  %v3410_v44 = vadd.f32 %v2846_v41, %v3389_v32  ;;  %v2894_v45 = vpop.f32.mrb[2].mxu1  ;;  %v739_v46 = vpop.f32.mrb[3].mxu0 }
 0x106   : > { %v2461_v47 = vmul.f32 -1.442695, %v3400_v38  ;;  %v2395_v48 = vmul.f32 -1.442695, %v3403_v39  ;;  %v3415_v49 = vadd.f32 %v2894_v45, %v3394_v33  ;;  %v3418_v50 = vadd.f32 %v3389_v32, %v739_v46  ;;  %v1060_v51 = vpop.f32.mrb[3].mxu1 }
 0x107   : > { %2979 = vpow2.f32 %v2397_v42  ;;  %v2459_v52 = vmul.f32 -1.442695, %v3407_v43  ;;  %v2398_v53 = vmul.f32 -1.442695, %v3410_v44  ;;  %v3423_v54 = vadd.f32 %v3394_v33, %v1060_v51 }
 0x108   : > { %2981 = vpow2.f32 %v2461_v47  ;;  %v2462_v55 = vmul.f32 -1.442695, %v3415_v49  ;;  %v2396_v56 = vmul.f32 -1.442695, %v3418_v50 }
 0x109   : > { %2983 = vpow2.f32 %v2395_v48  ;;  %v2460_v57 = vmul.f32 -1.442695, %v3423_v54 }
 0x10a   : > { %2985 = vpow2.f32 %v2459_v52  ;;  %v2849_v58 = vpop.f32.mrb[4].mxu0 }
 0x10b   : > { %2987 = vpow2.f32 %v2398_v53  ;;  %v3429_v59 = vadd.f32 %v2849_v58, %v3389_v32  ;;  %v2897_v60 = vpop.f32.mrb[4].mxu1  ;;  %v752_v61 = vpop.f32.mrb[5].mxu0 }
 0x10c   : > { %2989 = vpow2.f32 %v2462_v55  ;;  %v3432_v62 = vadd.f32 %v2897_v60, %v3394_v33  ;;  %v3435_v63 = vadd.f32 %v3389_v32, %v752_v61  ;;  %v1073_v0 = vpop.f32.mrb[5].mxu1  ;;  %v2850_v1 = vpop.f32.mrb[6].mxu0 }
 0x10d   : > { %2991 = vpow2.f32 %v2396_v56  ;;  %v2401_v2 = vmul.f32 -1.442695, %v3429_v59  ;;  %v3439_v3 = vadd.f32 %v3394_v33, %v1073_v0  ;;  %v3442_v4 = vadd.f32 %v2850_v1, %v3389_v32  ;;  %v2898_v5 = vpop.f32.mrb[6].mxu1  ;;  %v755_v6 = vpop.f32.mrb[7].mxu0 }
 0x10e   : > { %2993 = vpow2.f32 %v2460_v57  ;;  %v2465_v7 = vmul.f32 -1.442695, %v3432_v62  ;;  %v2399_v8 = vmul.f32 -1.442695, %v3435_v63  ;;  %v1076_v9 = vpop.f32.mrb[7].mxu1  ;;  %v3449_v30 = vadd.f32 %v2898_v5, %v3394_v33 }
 0x10f   : > { %2995 = vpow2.f32 %v2401_v2  ;;  %v2463_v10 = vmul.f32 -1.442695, %v3439_v3  ;;  %v2402_v11 = vmul.f32 -1.442695, %v3442_v4  ;;  %v3452_v37 = vadd.f32 %v3389_v32, %v755_v6 }
 0x110   : > { %2997 = vpow2.f32 %v2465_v7  ;;  %v2466_v48 = vmul.f32 -1.442695, %v3449_v30  ;;  %v3456_v51 = vadd.f32 %v3394_v33, %v1076_v9 }
 0x111   : > { %v2980_v12 = vpop.eup %2979  ;;  %2999 = vpow2.f32 %v2399_v8  ;;  %v2400_v56 = vmul.f32 -1.442695, %v3452_v37 }
 0x112   : > { %v2982_v13 = vpop.eup %2981  ;;  %v1491_v14 = vadd.f32 1.0, %v2980_v12  ;;  %3001 = vpow2.f32 %v2463_v10  ;;  %v2853_v15 = vpop.f32.mrb[8].mxu0 }
 0x113   : > { %v2984_v16 = vpop.eup %2983  ;;  %v1875_v17 = vadd.f32 1.0, %v2982_v13  ;;  %3003 = vpow2.f32 %v2402_v11  ;;  %v2901_v18 = vpop.f32.mrb[8].mxu1  ;;  %v3460_v57 = vadd.f32 %v2853_v15, %v3389_v32 }
 0x114   : > { %v768_v19 = vpop.f32.mrb[9].mxu0  ;;  %v2986_v20 = vpop.eup %2985  ;;  %3005 = vrcp.f32 %v1491_v14  ;;  %v1489_v21 = vadd.f32 1.0, %v2984_v16  ;;  %v3465_v1 = vadd.f32 %v2901_v18, %v3394_v33 }
 0x115   : > { %v1089_v22 = vpop.f32.mrb[9].mxu1  ;;  %v2854_v23 = vpop.f32.mrb[10].mxu0  ;;  %3007 = vrcp.f32 %v1875_v17  ;;  %v1873_v25 = vadd.f32 1.0, %v2986_v20  ;;  %v3468_v2 = vadd.f32 %v3389_v32, %v768_v19  ;;  %v2464_v19 = vmul.f32 -1.442695, %v3456_v51 }
 0x116   : > { %v2988_v24 = vpop.eup %2987  ;;  %v2902_v26 = vpop.f32.mrb[10].mxu1  ;;  %3009 = vrcp.f32 %v1489_v21  ;;  %v3475_v9 = vadd.f32 %v3394_v33, %v1089_v22  ;;  %v3478_v10 = vadd.f32 %v2854_v23, %v3389_v32  ;;  %v2405_v21 = vmul.f32 -1.442695, %v3460_v57 }
 0x117   : > { %v771_v27 = vpop.f32.mrb[11].mxu0  ;;  %v2990_v28 = vpop.eup %2989  ;;  %v1492_v29 = vadd.f32 1.0, %v2988_v24  ;;  %3011 = vrcp.f32 %v1873_v25  ;;  %v3485_v15 = vadd.f32 %v2902_v26, %v3394_v33  ;;  %v2469_v22 = vmul.f32 -1.442695, %v3465_v1 }
 0x118   : > { %v1092_v31 = vpop.f32.mrb[11].mxu1  ;;  %v2992_v34 = vpop.eup %2991  ;;  %v1876_v36 = vadd.f32 1.0, %v2990_v28  ;;  %v3488_v16 = vadd.f32 %v3389_v32, %v771_v27  ;;  %v2403_v24 = vmul.f32 -1.442695, %v3468_v2  ;;  %v2467_v25 = vmul.f32 -1.442695, %v3475_v9 }
 0x119   : > { %v2994_v40 = vpop.eup %2993  ;;  %3013 = vrcp.f32 %v1492_v29  ;;  %v1490_v41 = vadd.f32 1.0, %v2992_v34  ;;  %v2406_v26 = vmul.f32 -1.442695, %v3478_v10  ;;  %v2470_v28 = vmul.f32 -1.442695, %v3485_v15 }
 0x11a   : > { %v2996_v42 = vpop.eup %2995  ;;  %3015 = vrcp.f32 %v1876_v36  ;;  %v1874_v45 = vadd.f32 1.0, %v2994_v40  ;;  %v2857_v52 = vpop.f32.mrb[12].mxu0  ;;  %v2404_v29 = vmul.f32 -1.442695, %v3488_v16  ;;  %v3501_v34 = vadd.f32 %v3394_v33, %v1092_v31 }
 0x11b   : > { %v2998_v46 = vpop.eup %2997  ;;  %3017 = vrcp.f32 %v1490_v41  ;;  %v1495_v47 = vadd.f32 1.0, %v2996_v42  ;;  %v2905_v58 = vpop.f32.mrb[12].mxu1 }
 0x11c   : > { %v3000_v53 = vpop.eup %2999  ;;  %3019 = vrcp.f32 %v1874_v45  ;;  %v1879_v55 = vadd.f32 1.0, %v2998_v46  ;;  %v3462_v60 = vpop.f32.mrb[13].mxu0  ;;  %v3508_v45 = vadd.f32 %v2857_v52, %v3389_v32 }
 0x11d   : > { %v3002_v61 = vpop.eup %3001  ;;  %3021 = vrcp.f32 %v1495_v47  ;;  %v1493_v0 = vadd.f32 1.0, %v3000_v53  ;;  %v3470_v5 = vpop.f32.mrb[13].mxu1 }
 0x11e   : > { %v3472_v6 = vpop.f32.mrb[14].mxu0  ;;  %v3004_v7 = vpop.eup %3003  ;;  %3023 = vrcp.f32 %v1879_v55  ;;  %v1877_v8 = vadd.f32 1.0, %v3002_v61 }
 0x11f   : > { %v3480_v11 = vpop.f32.mrb[14].mxu1  ;;  %v3482_v12 = vpop.f32.mrb[15].mxu0  ;;  %3025 = vrcp.f32 %v1493_v0  ;;  %v1496_v14 = vadd.f32 1.0, %v3004_v7 }
 0x120   : > { %v3006_v13 = vpop.eup %3005  ;;  %v3490_v17 = vpop.f32.mrb[15].mxu1  ;;  %3027 = vrcp.f32 %v1877_v8 }
 0x121   : > { %v3008_v18 = vpop.eup %3007  ;;  %3029 = vrcp.f32 %v1496_v14  ;;  %v1587_v41 = vmul.f32 %v3006_v13, %v3397_v35 }
 0x122   : > { %v3010_v20 = vpop.eup %3009  ;;  %3031 = vpow2.f32 %v2466_v48  ;;  %v3503_v36 = vpop.f32.mrb[16].mxu0  ;;  %v1971_v31 = vmul.f32 %v3008_v18, %v3400_v38  ;;  %v2468_v18 = vmul.f32 -1.442695, %v3501_v34 }
 0x123   : > { %v3012_v23 = vpop.eup %3011  ;;  %3033 = vpow2.f32 %v2400_v56  ;;  %v3510_v46 = vpop.f32.mrb[16].mxu1  ;;  %v1585_v56 = vmul.f32 %v3010_v20, %v3403_v39 }
 0x124   : > { %v3014_v27 = vpop.eup %3013  ;;  %3035 = vpow2.f32 %v2464_v19  ;;  %v3512_v47 = vpop.f32.mrb[17].mxu0  ;;  %v1969_v7 = vmul.f32 %v3012_v23, %v3407_v43  ;;  %v2409_v43 = vmul.f32 -1.442695, %v3508_v45 }
 0x125   : > { %v3016_v40 = vpop.eup %3015  ;;  %v1588_v42 = vmul.f32 %v3014_v27, %v3410_v44  ;;  %3037 = vpow2.f32 %v2405_v21  ;;  %v3523_v44 = vadd.f32 %v2905_v58, %v3394_v33  ;;  %v3525_v52 = vpop.f32.mrb[17].mxu1 }
 0x126   : > { %v3018_v48 = vpop.eup %3017  ;;  %v1972_v35 = vmul.f32 %v3016_v40, %v3415_v49  ;;  %v3527_v53 = vpop.f32.mrb[18].mxu0  ;;  %3039 = vpow2.f32 %v2469_v22 }
 0x127   : > { %v3020_v55 = vpop.eup %3019  ;;  %v2597_v38 = vpack.c.bf16 %v1588_v42, %v1587_v41  ;;  %v1586_v49 = vmul.f32 %v3018_v48, %v3418_v50  ;;  %v3537_v58 = vpop.f32.mrb[18].mxu1  ;;  %3041 = vpow2.f32 %v2403_v24 }
 0x128   : > { %v3539_v61 = vpop.f32.mrb[19].mxu0  ;;  %v3022_v0 = vpop.eup %3021  ;;  %v2677_v8 = vpack.c.bf16 %v1972_v35, %v1971_v31  ;;  %v1970_v39 = vmul.f32 %v3020_v55, %v3423_v54  ;;  %3043 = vpow2.f32 %v2467_v25  ;;  %v2473_v54 = vmul.f32 -1.442695, %v3523_v44 }
 0x129   : > { %v3543_v13 = vpop.f32.mrb[19].mxu1  ;;  %v3545_v14 = vpop.eup %3023  ;;  %2749 = vst [vmem:[%s3519_s28 + $0x8] sm:$0xff] %v2597_v38   ;;  %v2592_v50 = vpack.c.bf16 %v1586_v49, %v1585_v56  ;;  %3045 = vpow2.f32 %v2406_v26  ;;  %v1591_v25 = vmul.f32 %v3022_v0, %v3429_v59 }
 0x12a   : > { %v3549_v19 = vpop.eup %3025  ;;  %2764 = vst [vmem:[%s3534_s30 + $0x8] sm:$0xff] %v2677_v8   ;;  %v2672_v20 = vpack.c.bf16 %v1970_v39, %v1969_v7  ;;  %3047 = vpow2.f32 %v2470_v28  ;;  %v3558_v23 = vpop.f32.mrb[20].mxu0  ;;  %v3579_v7 = vadd.f32 %v3389_v32, %v3462_v60  ;;  %v3591_v60 = vadd.f32 %v3480_v11, %v3394_v33 }
 0x12b   : > { %v3553_v21 = vpop.eup %3027  ;;  %2593 = vst [vmem:[%s3519_s28] sm:$0xff] %v2592_v50   ;;  %3049 = vpow2.f32 %v2404_v29  ;;  %v3562_v26 = vpop.f32.mrb[20].mxu1  ;;  %v3583_v50 = vadd.f32 %v3394_v33, %v3470_v5 }
 0x12c   : > { %v3030_v22 = vpop.eup %3029  ;;  %2673 = vst [vmem:[%s3534_s30] sm:$0xff] %v2672_v20   ;;  %3051 = vpow2.f32 %v2468_v18  ;;  %v3564_v40 = vpop.f32.mrb[21].mxu0 }
 0x12d   : > { %v3032_v24 = vpop.eup %3031  ;;  %v1592_v27 = vmul.f32 %v3030_v22, %v3442_v4  ;;  %3053 = vpow2.f32 %v2409_v43  ;;  %v3566_v42 = vpop.f32.mrb[21].mxu1  ;;  %v3587_v43 = vadd.f32 %v3472_v6, %v3389_v32  ;;  %v2471_v11 = vmul.f32 -1.442695, %v3583_v50 }
 0x12e   : > { %v3034_v41 = vpop.eup %3033  ;;  %v1880_v28 = vadd.f32 1.0, %v3032_v24  ;;  %v3568_v48 = vpop.f32.mrb[22].mxu0  ;;  %3055 = vpow2.f32 %v2473_v54 }
 0x12f   : > { %v3036_v29 = vpop.eup %3035  ;;  %v2607_v31 = vpack.c.bf16 %v1592_v27, %v1591_v25  ;;  %v1494_v35 = vadd.f32 1.0, %v3034_v41  ;;  %v3570_v59 = vpop.f32.mrb[22].mxu1  ;;  %v2407_v27 = vmul.f32 -1.442695, %v3579_v7  ;;  %v3598_v41 = vadd.f32 %v3389_v32, %v3482_v12 }
 0x130   : > { %v3572_v4 = vpop.f32.mrb[23].mxu0  ;;  %v3038_v55 = vpop.eup %3037  ;;  %3057 = vrcp.f32 %v1880_v28  ;;  %v1878_v56 = vadd.f32 1.0, %v3036_v29 }
 0x131   : > { %v3574_v38 = vpop.f32.mrb[23].mxu1  ;;  %v3040_v49 = vpop.eup %3039  ;;  %2751 = vst [vmem:[%s3519_s28 + $0x18] sm:$0xff] %v2607_v31   ;;  %3059 = vrcp.f32 %v1494_v35  ;;  %v1499_v0 = vadd.f32 1.0, %v3038_v55 }
 0x132   : > { %v3042_v8 = vpop.eup %3041  ;;  %3061 = vrcp.f32 %v1878_v56  ;;  %v1883_v39 = vadd.f32 1.0, %v3040_v49  ;;  %v3593_v24 = vpop.f32.mrb[24].mxu0 }
 0x133   : > { %v3044_v18 = vpop.eup %3043  ;;  %3063 = vrcp.f32 %v1499_v0  ;;  %v1497_v20 = vadd.f32 1.0, %v3042_v8  ;;  %v3600_v6 = vpop.f32.mrb[24].mxu1  ;;  %v2410_v0 = vmul.f32 -1.442695, %v3587_v43 }
 0x134   : > { %v3046_v54 = vpop.eup %3045  ;;  %3065 = vrcp.f32 %v1883_v39  ;;  %v1881_v22 = vadd.f32 1.0, %v3044_v18  ;;  %v3602_v28 = vpop.f32.mrb[25].mxu0 }
 0x135   : > { %v3048_v25 = vpop.eup %3047  ;;  %3067 = vrcp.f32 %v1497_v20  ;;  %v1500_v5 = vadd.f32 1.0, %v3046_v54  ;;  %v3605_v35 = vpop.f32.mrb[25].mxu1  ;;  %v2474_v20 = vmul.f32 -1.442695, %v3591_v60  ;;  %v3617_v54 = vadd.f32 %v3394_v33, %v3490_v17 }
 0x136   : > { %v3050_v29 = vpop.eup %3049  ;;  %3069 = vrcp.f32 %v1881_v22  ;;  %v1884_v31 = vadd.f32 1.0, %v3048_v25  ;;  %v3607_v55 = vpop.f32.mrb[26].mxu0  ;;  %v3632_v17 = vadd.f32 %v3389_v32, %v3512_v47  ;;  %v3646_v47 = vadd.f32 %v3527_v53, %v3389_v32 }
 0x137   : > { %3915 = vst [vmem:[#allocation4_spill] sm:$0xff] %v3607_v55  ;;  %v3052_v56 = vpop.eup %3051  ;;  %3071 = vrcp.f32 %v1500_v5  ;;  %v1498_v49 = vadd.f32 1.0, %v3050_v29  ;;  %v3610_v12 = vpop.f32.mrb[26].mxu1  ;;  %v2408_v29 = vmul.f32 -1.442695, %v3598_v41 }
 0x138   : > { %3916 = vst [vmem:[#allocation5_spill] sm:$0xff] %v3610_v12  ;;  %v3612_v8 = vpop.f32.mrb[27].mxu0  ;;  %v3054_v39 = vpop.eup %3053  ;;  %3073 = vrcp.f32 %v1884_v31  ;;  %v1882_v18 = vadd.f32 1.0, %v3052_v56  ;;  %v3624_v12 = vadd.f32 %v3503_v36, %v3389_v32  ;;  %v3628_v56 = vadd.f32 %v3510_v46, %v3394_v33 }
 0x139   : > { %3917 = vst [vmem:[#allocation6_spill] sm:$0xff] %v3612_v8  ;;  %v3619_v22 = vpop.f32.mrb[27].mxu1  ;;  %v3056_v25 = vpop.eup %3055  ;;  %3075 = vrcp.f32 %v1498_v49  ;;  %v1503_v5 = vadd.f32 1.0, %v3054_v39  ;;  %v1975_v49 = vmul.f32 %v3545_v14, %v3432_v62  ;;  %v3639_v36 = vadd.f32 %v3394_v33, %v3525_v52 }
 0x13a   : > { %3918 = vst [vmem:[#allocation7_spill] sm:$0xff] %v3619_v22  ;;  %v3058_v8 = vpop.eup %3057  ;;  %3077 = vrcp.f32 %v1882_v18  ;;  %v1887_v31 = vadd.f32 1.0, %v3056_v25  ;;  %v1589_v46 = vmul.f32 %v3549_v19, %v3435_v63  ;;  %v3648_v55 = vpop.f32.mrb[28].mxu0  ;;  %v2472_v53 = vmul.f32 -1.442695, %v3617_v54 }
 0x13b   : > { %v3060_v22 = vpop.eup %3059  ;;  %v1976_v39 = vmul.f32 %v3058_v8, %v3449_v30  ;;  %3079 = vrcp.f32 %v1503_v5  ;;  %v1973_v30 = vmul.f32 %v3553_v21, %v3439_v3  ;;  %v3653_v8 = vpop.f32.mrb[28].mxu1 }
 0x13c   : > { %v3062_v18 = vpop.eup %3061  ;;  %v1590_v25 = vmul.f32 %v3060_v22, %v3452_v37  ;;  %3081 = vrcp.f32 %v1887_v31  ;;  %v3655_v63 = vpop.f32.mrb[29].mxu0  ;;  %v3660_v22 = vadd.f32 %v3537_v58, %v3394_v33 }
 0x13d   : > { %v3064_v62 = vpop.eup %3063  ;;  %v2687_v52 = vpack.c.bf16 %v1976_v39, %v1975_v49  ;;  %v1974_v14 = vmul.f32 %v3062_v18, %v3456_v51  ;;  %3083 = vpow2.f32 %v2407_v27  ;;  %v3662_v5 = vpop.f32.mrb[29].mxu1  ;;  %v2413_v27 = vmul.f32 -1.442695, %v3624_v12 }
 0x13e   : > { %v3066_v37 = vpop.eup %3065  ;;  %v2602_v19 = vpack.c.bf16 %v1590_v25, %v1589_v46  ;;  %3085 = vpow2.f32 %v2471_v11  ;;  %v3664_v3 = vpop.f32.mrb[30].mxu0  ;;  %v3670_v11 = vadd.f32 %v3389_v32, %v3539_v61  ;;  %v2477_v39 = vmul.f32 -1.442695, %v3628_v56 }
 0x13f   : > { %3919 = vst [vmem:[#allocation8_spill] sm:$0xff] %v3664_v3  ;;  %v3068_v51 = vpop.eup %3067  ;;  %2766 = vst [vmem:[%s3534_s30 + $0x18] sm:$0xff] %v2687_v52   ;;  %v2682_v21 = vpack.c.bf16 %v1974_v14, %v1973_v30  ;;  %3087 = vpow2.f32 %v2410_v0  ;;  %v3672_v31 = vpop.f32.mrb[30].mxu1  ;;  %v2411_v0 = vmul.f32 -1.442695, %v3632_v17  ;;  %v1595_v52 = vmul.f32 %v3064_v62, %v3460_v57 }
 0x140   : > { %3920 = vst [vmem:[#allocation9_spill] sm:$0xff] %v3672_v31  ;;  %v3674_v49 = vpop.f32.mrb[31].mxu0  ;;  %v3070_v58 = vpop.eup %3069  ;;  %2750 = vst [vmem:[%s3519_s28 + $0x10] sm:$0xff] %v2602_v19   ;;  %3089 = vpow2.f32 %v2474_v20  ;;  %v2475_v25 = vmul.f32 -1.442695, %v3639_v36  ;;  %v1593_v31 = vmul.f32 %v3068_v51, %v3468_v2 }
 0x141   : > { %3921 = vst [vmem:[#allocation10_spill] sm:$0xff] %v3674_v49  ;;  %v3678_v18 = vpop.f32.mrb[31].mxu1  ;;  %v3072_v46 = vpop.eup %3071  ;;  %2765 = vst [vmem:[%s3534_s30 + $0x10] sm:$0xff] %v2682_v21   ;;  %3091 = vpow2.f32 %v2408_v29  ;;  %v2414_v61 = vmul.f32 -1.442695, %v3646_v47  ;;  %v1977_v62 = vmul.f32 %v3070_v58, %v3475_v9 }
 0x142   : > { %3922 = vst [vmem:[#allocation11_spill] sm:$0xff] %v3678_v18  ;;  %v3074_v30 = vpop.eup %3073  ;;  %v1596_v14 = vmul.f32 %v3072_v46, %v3478_v10  ;;  %3093 = vpow2.f32 %v2472_v53  ;;  %v2478_v20 = vmul.f32 -1.442695, %v3660_v22  ;;  %v1979_v18 = vmul.f32 %v3066_v37, %v3465_v1 }
 0x143   : > { %v3076_v19 = vpop.eup %3075  ;;  %v1980_v29 = vmul.f32 %v3074_v30, %v3485_v15  ;;  %3095 = vpow2.f32 %v2413_v27  ;;  %v2412_v21 = vmul.f32 -1.442695, %v3670_v11  ;;  %v3704_v30 = vadd.f32 %v3394_v33, %v3543_v13 }
 0x144   : > { %v3078_v49 = vpop.eup %3077  ;;  %v2617_v3 = vpack.c.bf16 %v1596_v14, %v1595_v52  ;;  %v1594_v57 = vmul.f32 %v3076_v19, %v3488_v16  ;;  %3097 = vpow2.f32 %v2477_v39  ;;  %v3712_v19 = vadd.f32 %v3562_v26, %v3394_v33 }
 0x145   : > { %v3692_v10 = vpop.eup %3079  ;;  %v2697_v53 = vpack.c.bf16 %v1980_v29, %v1979_v18  ;;  %v1978_v1 = vmul.f32 %v3078_v49, %v3501_v34  ;;  %3099 = vpow2.f32 %v2411_v0  ;;  %v3720_v13 = vadd.f32 %v3394_v33, %v3566_v42 }
 0x146   : > { %v3696_v15 = vpop.eup %3081  ;;  %2753 = vst [vmem:[%s3519_s28 + $0x28] sm:$0xff] %v2617_v3   ;;  %v2612_v37 = vpack.c.bf16 %v1594_v57, %v1593_v31  ;;  %3101 = vpow2.f32 %v2475_v25  ;;  %v3716_v57 = vadd.f32 %v3389_v32, %v3564_v40  ;;  %v3728_v26 = vadd.f32 %v3570_v59, %v3394_v33 }
 0x147   : > { %v3084_v2 = vpop.eup %3083  ;;  %2768 = vst [vmem:[%s3534_s30 + $0x28] sm:$0xff] %v2697_v53   ;;  %v2692_v51 = vpack.c.bf16 %v1978_v1, %v1977_v62  ;;  %3103 = vpow2.f32 %v2414_v61  ;;  %v3732_v40 = vadd.f32 %v3389_v32, %v3572_v4  ;;  %v2481_v59 = vmul.f32 -1.442695, %v3712_v19 }
 0x148   : > { %v3086_v16 = vpop.eup %3085  ;;  %2752 = vst [vmem:[%s3519_s28 + $0x20] sm:$0xff] %v2612_v37   ;;  %v1501_v27 = vadd.f32 1.0, %v3084_v2  ;;  %3105 = vpow2.f32 %v2478_v20  ;;  %v3708_v20 = vadd.f32 %v3558_v23, %v3389_v32  ;;  %v3724_v23 = vadd.f32 %v3568_v48, %v3389_v32 }
 0x149   : > { %v3088_v39 = vpop.eup %3087  ;;  %2767 = vst [vmem:[%s3534_s30 + $0x20] sm:$0xff] %v2692_v51   ;;  %v1885_v9 = vadd.f32 1.0, %v3086_v16  ;;  %3107 = vpow2.f32 %v2412_v21  ;;  %v2476_v51 = vmul.f32 -1.442695, %v3704_v30 }
 0x14a   : > { %v3090_v58 = vpop.eup %3089  ;;  %3109 = vrcp.f32 %v1501_v27  ;;  %v1504_v34 = vadd.f32 1.0, %v3088_v39  ;;  %v2417_v16 = vmul.f32 -1.442695, %v3708_v20  ;;  %v2415_v39 = vmul.f32 -1.442695, %v3716_v57 }
 0x14b   : > { %v3092_v49 = vpop.eup %3091  ;;  %3111 = vrcp.f32 %v1885_v9  ;;  %v1888_v3 = vadd.f32 1.0, %v3090_v58  ;;  %v2479_v58 = vmul.f32 -1.442695, %v3720_v13  ;;  %v2418_v4 = vmul.f32 -1.442695, %v3724_v23 }
 0x14c   : > { %v3094_v31 = vpop.eup %3093  ;;  %3113 = vrcp.f32 %v1504_v34  ;;  %v1502_v18 = vadd.f32 1.0, %v3092_v49  ;;  %v2482_v34 = vmul.f32 -1.442695, %v3728_v26 }
 0x14d   : > { %v3096_v46 = vpop.eup %3095  ;;  %3115 = vrcp.f32 %v1888_v3  ;;  %v1886_v0 = vadd.f32 1.0, %v3094_v31  ;;  %v2416_v3 = vmul.f32 -1.442695, %v3732_v40  ;;  %v3744_v31 = vadd.f32 %v3394_v33, %v3574_v38 }
 0x14e   : > { %v3098_v25 = vpop.eup %3097  ;;  %3117 = vrcp.f32 %v1502_v18  ;;  %v1507_v61 = vadd.f32 1.0, %v3096_v46  ;;  %v3748_v18 = vadd.f32 %v3593_v24, %v3389_v32  ;;  %v1983_v38 = vmul.f32 %v3696_v15, %v3523_v44 }
 0x14f   : > { %v3100_v52 = vpop.eup %3099  ;;  %3119 = vrcp.f32 %v1886_v0  ;;  %v1891_v14 = vadd.f32 1.0, %v3098_v25  ;;  %v1599_v0 = vmul.f32 %v3692_v10, %v3508_v45  ;;  %v3762_v24 = vadd.f32 %v3389_v32, %v3602_v28 }
 0x150   : > { %v3102_v29 = vpop.eup %3101  ;;  %3121 = vrcp.f32 %v1507_v61  ;;  %v1505_v21 = vadd.f32 1.0, %v3100_v52  ;;  %v3755_v61 = vadd.f32 %v3600_v6, %v3394_v33 }
 0x151   : > { %v3104_v62 = vpop.eup %3103  ;;  %3123 = vrcp.f32 %v1891_v14  ;;  %v1889_v53 = vadd.f32 1.0, %v3102_v29 }
 0x152   : > { %v3106_v1 = vpop.eup %3105  ;;  %3125 = vrcp.f32 %v1505_v21  ;;  %v1508_v37 = vadd.f32 1.0, %v3104_v62  ;;  %v3772_v62 = vadd.f32 %v3394_v33, %v3605_v35 }
 0x153   : > { %v3108_v42 = vpop.eup %3107  ;;  %3127 = vrcp.f32 %v1889_v53  ;;  %v1892_v2 = vadd.f32 1.0, %v3106_v1 }
 0x154   : > { %v3110_v48 = vpop.eup %3109  ;;  %3129 = vrcp.f32 %v1508_v37  ;;  %v1506_v27 = vadd.f32 1.0, %v3108_v42  ;;  %v2419_v42 = vmul.f32 -1.442695, %v3762_v24 }
 0x155   : > { %v3112_v9 = vpop.eup %3111  ;;  %3131 = vrcp.f32 %v1892_v2 }
 0x156   : > { %v3114_v49 = vpop.eup %3113  ;;  %3133 = vrcp.f32 %v1506_v27  ;;  %v1981_v21 = vmul.f32 %v3112_v9, %v3583_v50  ;;  %v2421_v50 = vmul.f32 -1.442695, %v3748_v18 }
 0x157   : > { %v3116_v46 = vpop.eup %3115  ;;  %v1600_v25 = vmul.f32 %v3114_v49, %v3587_v43  ;;  %3135 = vpow2.f32 %v2476_v51  ;;  %v1597_v43 = vmul.f32 %v3110_v48, %v3579_v7  ;;  %v2480_v7 = vmul.f32 -1.442695, %v3744_v31 }
 0x158   : > { %v3118_v52 = vpop.eup %3117  ;;  %v1984_v14 = vmul.f32 %v3116_v46, %v3591_v60  ;;  %3137 = vpow2.f32 %v2417_v16  ;;  %v2483_v16 = vmul.f32 -1.442695, %v3772_v62 }
 0x159   : > { %v3120_v45 = vpop.eup %3119  ;;  %v2627_v10 = vpack.c.bf16 %v1600_v25, %v1599_v0  ;;  %v1598_v6 = vmul.f32 %v3118_v52, %v3598_v41  ;;  %3139 = vpow2.f32 %v2481_v59 }
 0x15a   : > { %v3122_v29 = vpop.eup %3121  ;;  %v2707_v44 = vpack.c.bf16 %v1984_v14, %v1983_v38  ;;  %v1982_v60 = vmul.f32 %v3120_v45, %v3617_v54  ;;  %3141 = vpow2.f32 %v2415_v39  ;;  %v2485_v54 = vmul.f32 -1.442695, %v3755_v61 }
 0x15b   : > { %v3124_v15 = vpop.eup %3123  ;;  %2755 = vst [vmem:[%s3519_s28 + $0x38] sm:$0xff] %v2627_v10   ;;  %v2622_v28 = vpack.c.bf16 %v1598_v6, %v1597_v43  ;;  %3143 = vpow2.f32 %v2479_v58  ;;  %v1603_v35 = vmul.f32 %v3122_v29, %v3624_v12  ;;  %v3923_v43 = vld [vmem:[#allocation4_spill] sm:$0xff] }
 0x15c   : > { %v3126_v41 = vpop.eup %3125  ;;  %2770 = vst [vmem:[%s3534_s30 + $0x38] sm:$0xff] %v2707_v44   ;;  %v2702_v53 = vpack.c.bf16 %v1982_v60, %v1981_v21  ;;  %3145 = vpow2.f32 %v2418_v4  ;;  %v1987_v27 = vmul.f32 %v3124_v15, %v3628_v56  ;;  %v3794_v10 = vadd.f32 %v3923_v43, %v3389_v32  ;;  %v3924_v21 = vld [vmem:[#allocation5_spill] sm:$0xff]  ;;  %v3925_v60 = vld [vmem:[#allocation6_spill] sm:$0xff] }
 0x15d   : > { %v3776_v1 = vpop.eup %3127  ;;  %2754 = vst [vmem:[%s3519_s28 + $0x30] sm:$0xff] %v2622_v28   ;;  %3147 = vpow2.f32 %v2482_v34  ;;  %v1601_v9 = vmul.f32 %v3126_v41, %v3632_v17  ;;  %v3798_v44 = vadd.f32 %v3924_v21, %v3394_v33  ;;  %v3802_v15 = vadd.f32 %v3389_v32, %v3925_v60 }
 0x15e   : > { %v3130_v37 = vpop.eup %3129  ;;  %2769 = vst [vmem:[%s3534_s30 + $0x30] sm:$0xff] %v2702_v53   ;;  %3149 = vpow2.f32 %v2416_v3 }
 0x15f   : > { %v3132_v2 = vpop.eup %3131  ;;  %v1604_v51 = vmul.f32 %v3130_v37, %v3646_v47  ;;  %3151 = vpow2.f32 %v2480_v7  ;;  %v2422_v37 = vmul.f32 -1.442695, %v3794_v10 }
 0x160   : > { %v3134_v48 = vpop.eup %3133  ;;  %v1988_v59 = vmul.f32 %v3132_v2, %v3660_v22  ;;  %3153 = vpow2.f32 %v2421_v50 }
 0x161   : > { %v3136_v39 = vpop.eup %3135  ;;  %v2637_v58 = vpack.c.bf16 %v1604_v51, %v1603_v35  ;;  %v1602_v4 = vmul.f32 %v3134_v48, %v3670_v11  ;;  %3155 = vpow2.f32 %v2485_v54  ;;  %v2420_v48 = vmul.f32 -1.442695, %v3802_v15 }
 0x162   : > { %v3138_v12 = vpop.eup %3137  ;;  %v2717_v47 = vpack.c.bf16 %v1988_v59, %v1987_v27  ;;  %v1890_v34 = vadd.f32 1.0, %v3136_v39  ;;  %3157 = vpow2.f32 %v2419_v42  ;;  %v3926_v42 = vld [vmem:[#allocation7_spill] sm:$0xff]  ;;  %v3815_v27 = vadd.f32 %v3648_v55, %v3389_v32 }
 0x163   : > { %v3140_v49 = vpop.eup %3139  ;;  %2757 = vst [vmem:[%s3519_s28 + $0x48] sm:$0xff] %v2637_v58   ;;  %v2632_v3 = vpack.c.bf16 %v1602_v4, %v1601_v9  ;;  %v1511_v56 = vadd.f32 1.0, %v3138_v12  ;;  %3159 = vpow2.f32 %v2483_v16  ;;  %v3807_v2 = vadd.f32 %v3394_v33, %v3926_v42 }
 0x164   : > { %v3142_v22 = vpop.eup %3141  ;;  %2772 = vst [vmem:[%s3534_s30 + $0x48] sm:$0xff] %v2717_v47   ;;  %3161 = vrcp.f32 %v1890_v34  ;;  %v1895_v46 = vadd.f32 1.0, %v3140_v49  ;;  %v2486_v16 = vmul.f32 -1.442695, %v3798_v44  ;;  %v3819_v39 = vadd.f32 %v3653_v8, %v3394_v33  ;;  %v3927_v47 = vld [vmem:[#allocation8_spill] sm:$0xff]  ;;  %v3928_v49 = vld [vmem:[#allocation9_spill] sm:$0xff] }
 0x165   : > { %v3144_v0 = vpop.eup %3143  ;;  %2756 = vst [vmem:[%s3519_s28 + $0x40] sm:$0xff] %v2632_v3   ;;  %3163 = vrcp.f32 %v1511_v56  ;;  %v1509_v17 = vadd.f32 1.0, %v3142_v22  ;;  %v3823_v9 = vadd.f32 %v3389_v32, %v3655_v63  ;;  %v3827_v58 = vadd.f32 %v3394_v33, %v3662_v5 }
 0x166   : > { %v3146_v11 = vpop.eup %3145  ;;  %3165 = vrcp.f32 %v1895_v46  ;;  %v1893_v25 = vadd.f32 1.0, %v3144_v0  ;;  %v1985_v12 = vmul.f32 %v3776_v1, %v3639_v36  ;;  %v3834_v34 = vadd.f32 %v3927_v47, %v3389_v32  ;;  %v3929_v32 = vld [vmem:[#allocation10_spill] sm:$0xff] }
 0x167   : > { %v3148_v52 = vpop.eup %3147  ;;  %3167 = vrcp.f32 %v1509_v17  ;;  %v1512_v38 = vadd.f32 1.0, %v3146_v11  ;;  %v2484_v63 = vmul.f32 -1.442695, %v3807_v2  ;;  %v3839_v5 = vadd.f32 %v3928_v49, %v3394_v33 }
 0x168   : > { %v3150_v14 = vpop.eup %3149  ;;  %3169 = vrcp.f32 %v1893_v25  ;;  %v1896_v45 = vadd.f32 1.0, %v3148_v52  ;;  %v2425_v36 = vmul.f32 -1.442695, %v3815_v27  ;;  %v2489_v46 = vmul.f32 -1.442695, %v3819_v39  ;;  %v3930_v52 = vld [vmem:[#allocation11_spill] sm:$0xff] }
 0x169   : > { %v3152_v6 = vpop.eup %3151  ;;  %3171 = vrcp.f32 %v1512_v38  ;;  %v1510_v29 = vadd.f32 1.0, %v3150_v14  ;;  %v2423_v0 = vmul.f32 -1.442695, %v3823_v9  ;;  %v2487_v17 = vmul.f32 -1.442695, %v3827_v58 }
 0x16a   : > { %v3154_v28 = vpop.eup %3153  ;;  %3173 = vrcp.f32 %v1896_v45  ;;  %v1894_v7 = vadd.f32 1.0, %v3152_v6  ;;  %v2426_v11 = vmul.f32 -1.442695, %v3834_v34  ;;  %v3236_v25 = vld [vmem:[%s3912_s4] ss:$0 sm:$0xff] }
 0x16b   : > { %v3156_v41 = vpop.eup %3155  ;;  %3175 = vrcp.f32 %v1510_v29  ;;  %v1515_v53 = vadd.f32 1.0, %v3154_v28  ;;  %v3857_v38 = vadd.f32 %v3236_v25, %v3930_v52  ;;  %v2490_v6 = vmul.f32 -1.442695, %v3839_v5 }
 0x16c   : > { %v3158_v50 = vpop.eup %3157  ;;  %3177 = vrcp.f32 %v1894_v7  ;;  %v1899_v54 = vadd.f32 1.0, %v3156_v41 }
 0x16d   : > { %v3809_v35 = vpop.eup %3159  ;;  %v1513_v51 = vadd.f32 1.0, %v3158_v50  ;;  %3179 = vrcp.f32 %v1515_v53 }
 0x16e   : > { %v3162_v59 = vpop.eup %3161  ;;  %3181 = vrcp.f32 %v1899_v54 }
 0x16f   : > { %v3164_v4 = vpop.eup %3163  ;;  %v1986_v55 = vmul.f32 %v3162_v59, %v3704_v30  ;;  %3183 = vrcp.f32 %v1513_v51  ;;  %v3235_v30 = vld [vmem:[%s3910_s2] ss:$0 sm:$0xff] }
 0x170   : > { %v3166_v8 = vpop.eup %3165  ;;  %3185 = vpow2.f32 %v2422_v37  ;;  %v3846_v1 = vadd.f32 %v3235_v30, %v3929_v32  ;;  %v1607_v45 = vmul.f32 %v3164_v4, %v3708_v20  ;;  %v2488_v37 = vmul.f32 -1.442695, %v3857_v38 }
 0x171   : > { %v3168_v3 = vpop.eup %3167  ;;  %v2712_v56 = vpack.c.bf16 %v1986_v55, %v1985_v12  ;;  %3187 = vpow2.f32 %v2486_v16  ;;  %v1991_v21 = vmul.f32 %v3166_v8, %v3712_v19 }
 0x172   : > { %v3170_v22 = vpop.eup %3169  ;;  %3189 = vpow2.f32 %v2420_v48  ;;  %v2424_v28 = vmul.f32 -1.442695, %v3846_v1  ;;  %v1605_v41 = vmul.f32 %v3168_v3, %v3716_v57 }
 0x173   : > { %v3172_v33 = vpop.eup %3171  ;;  %2771 = vst [vmem:[%s3534_s30 + $0x40] sm:$0xff] %v2712_v56   ;;  %3191 = vpow2.f32 %v2484_v63 }
 0x174   : > { %v3174_v14 = vpop.eup %3173  ;;  %v1608_v43 = vmul.f32 %v3172_v33, %v3724_v23  ;;  %3193 = vpow2.f32 %v2425_v36  ;;  %v1989_v23 = vmul.f32 %v3170_v22, %v3720_v13 }
 0x175   : > { %v3176_v29 = vpop.eup %3175  ;;  %v1992_v60 = vmul.f32 %v3174_v14, %v3728_v26  ;;  %3195 = vpow2.f32 %v2489_v46 }
 0x176   : > { %v3178_v7 = vpop.eup %3177  ;;  %v2647_v53 = vpack.c.bf16 %v1608_v43, %v1607_v45  ;;  %v1606_v20 = vmul.f32 %v3176_v29, %v3732_v40  ;;  %3197 = vpow2.f32 %v2423_v0  ;;  %v1897_v40 = vadd.f32 1.0, %v3809_v35 }
 0x177   : > { %v2727_v50 = vpack.c.bf16 %v1992_v60, %v1991_v21  ;;  %v1990_v54 = vmul.f32 %v3178_v7, %v3744_v31  ;;  %v3180_v19 = vpop.eup %3179  ;;  %3199 = vpow2.f32 %v2487_v17 }
 0x178   : > { %2759 = vst [vmem:[%s3519_s28 + $0x58] sm:$0xff] %v2647_v53   ;;  %v2642_v26 = vpack.c.bf16 %v1606_v20, %v1605_v41  ;;  %v3182_v42 = vpop.eup %3181  ;;  %3201 = vpow2.f32 %v2426_v11  ;;  %v1611_v45 = vmul.f32 %v3180_v19, %v3748_v18 }
 0x179   : > { %2774 = vst [vmem:[%s3534_s30 + $0x58] sm:$0xff] %v2727_v50   ;;  %v2722_v57 = vpack.c.bf16 %v1990_v54, %v1989_v23  ;;  %v3184_v51 = vpop.eup %3183  ;;  %3203 = vpow2.f32 %v2490_v6  ;;  %v1995_v29 = vmul.f32 %v3182_v42, %v3755_v61 }
 0x17a   : > { %2758 = vst [vmem:[%s3519_s28 + $0x50] sm:$0xff] %v2642_v26   ;;  %v3186_v13 = vpop.eup %3185  ;;  %3205 = vpow2.f32 %v2424_v28  ;;  %v1609_v28 = vmul.f32 %v3184_v51, %v3762_v24 }
 0x17b   : > { %2773 = vst [vmem:[%s3534_s30 + $0x50] sm:$0xff] %v2722_v57   ;;  %v3188_v31 = vpop.eup %3187  ;;  %v1516_v16 = vadd.f32 1.0, %v3186_v13  ;;  %3207 = vpow2.f32 %v2488_v37 }
 0x17c   : > { %v3190_v48 = vpop.eup %3189  ;;  %3209 = vrcp.f32 %v1897_v40  ;;  %v1900_v59 = vadd.f32 1.0, %v3188_v31 }
 0x17d   : > { %v3192_v4 = vpop.eup %3191  ;;  %3211 = vrcp.f32 %v1516_v16  ;;  %v1514_v12 = vadd.f32 1.0, %v3190_v48 }
 0x17e   : > { %v3194_v55 = vpop.eup %3193  ;;  %3213 = vrcp.f32 %v1900_v59  ;;  %v1898_v47 = vadd.f32 1.0, %v3192_v4 }
 0x17f   : > { %v3196_v35 = vpop.eup %3195  ;;  %3215 = vrcp.f32 %v1514_v12  ;;  %v1519_v8 = vadd.f32 1.0, %v3194_v55 }
 0x180   : > { %v3198_v63 = vpop.eup %3197  ;;  %3217 = vrcp.f32 %v1898_v47  ;;  %v1903_v49 = vadd.f32 1.0, %v3196_v35 }
 0x181   : > { %v3200_v3 = vpop.eup %3199  ;;  %3219 = vrcp.f32 %v1519_v8  ;;  %v1517_v56 = vadd.f32 1.0, %v3198_v63 }
 0x182   : > { %v3202_v36 = vpop.eup %3201  ;;  %3221 = vrcp.f32 %v1903_v49  ;;  %v1901_v30 = vadd.f32 1.0, %v3200_v3 }
 0x183   : > { %v3204_v32 = vpop.eup %3203  ;;  %3223 = vrcp.f32 %v1517_v56  ;;  %v1520_v22 = vadd.f32 1.0, %v3202_v36 }
 0x184   : > { %v3206_v46 = vpop.eup %3205  ;;  %3225 = vrcp.f32 %v1901_v30  ;;  %v1904_v0 = vadd.f32 1.0, %v3204_v32 }
 0x185   : > { %v3208_v33 = vpop.eup %3207  ;;  %3227 = vrcp.f32 %v1520_v22  ;;  %v1518_v17 = vadd.f32 1.0, %v3206_v46 }
 0x186   : > { %v3210_v11 = vpop.eup %3209  ;;  %3229 = vrcp.f32 %v1904_v0  ;;  %v1902_v25 = vadd.f32 1.0, %v3208_v33 }
 0x187   : > { %v3212_v52 = vpop.eup %3211  ;;  %3231 = vrcp.f32 %v1518_v17  ;;  %v1993_v18 = vmul.f32 %v3210_v11, %v3772_v62 }
 0x188   : > { %v3214_v14 = vpop.eup %3213  ;;  %v1612_v43 = vmul.f32 %v3212_v52, %v3794_v10  ;;  %3233 = vrcp.f32 %v1902_v25 }
 0x189   : > { %v3216_v6 = vpop.eup %3215  ;;  %v1996_v21 = vmul.f32 %v3214_v14, %v3798_v44 }
 0x18a   : > { %v3218_v60 = vpop.eup %3217  ;;  %v2657_v7 = vpack.c.bf16 %v1612_v43, %v1611_v45  ;;  %v1610_v41 = vmul.f32 %v3216_v6, %v3802_v15 }
 0x18b   : > { %v3220_v53 = vpop.eup %3219  ;;  %v2737_v20 = vpack.c.bf16 %v1996_v21, %v1995_v29  ;;  %v1994_v10 = vmul.f32 %v3218_v60, %v3807_v2 }
 0x18c   : > { %v3222_v23 = vpop.eup %3221  ;;  %2761 = vst [vmem:[%s3519_s28 + $0x68] sm:$0xff] %v2657_v7   ;;  %v2652_v50 = vpack.c.bf16 %v1610_v41, %v1609_v28  ;;  %v1615_v15 = vmul.f32 %v3220_v53, %v3815_v27 }
 0x18d   : > { %v3224_v61 = vpop.eup %3223  ;;  %2776 = vst [vmem:[%s3534_s30 + $0x68] sm:$0xff] %v2737_v20   ;;  %v2732_v44 = vpack.c.bf16 %v1994_v10, %v1993_v18  ;;  %v1999_v26 = vmul.f32 %v3222_v23, %v3819_v39 }
 0x18e   : > { %v3226_v54 = vpop.eup %3225  ;;  %2760 = vst [vmem:[%s3519_s28 + $0x60] sm:$0xff] %v2652_v50   ;;  %v1613_v57 = vmul.f32 %v3224_v61, %v3823_v9 }
 0x18f   : > { %v3228_v24 = vpop.eup %3227  ;;  %2775 = vst [vmem:[%s3534_s30 + $0x60] sm:$0xff] %v2732_v44   ;;  %v1997_v13 = vmul.f32 %v3226_v54, %v3827_v58 }
 0x190   : > { %v3230_v19 = vpop.eup %3229  ;;  %v1616_v62 = vmul.f32 %v3228_v24, %v3834_v34 }
 0x191   : > { %v3232_v2 = vpop.eup %3231  ;;  %v2000_v37 = vmul.f32 %v3230_v19, %v3839_v5 }
 0x192   : > { %v3234_v42 = vpop.eup %3233  ;;  %v2667_v40 = vpack.c.bf16 %v1616_v62, %v1615_v15  ;;  %v1614_v51 = vmul.f32 %v3232_v2, %v3846_v1 }
 0x193   : > { %v2747_v31 = vpack.c.bf16 %v2000_v37, %v1999_v26  ;;  %v1998_v27 = vmul.f32 %v3234_v42, %v3857_v38 }
 0x194   : > { %2763 = vst [vmem:[%s3519_s28 + $0x78] sm:$0xff] %v2667_v40   ;;  %v2662_v16 = vpack.c.bf16 %v1614_v51, %v1613_v57 }
 0x195   : > { %2778 = vst [vmem:[%s3534_s30 + $0x78] sm:$0xff] %v2747_v31   ;;  %v2742_v34 = vpack.c.bf16 %v1998_v27, %v1997_v13 }
 0x196   : > { %2762 = vst [vmem:[%s3519_s28 + $0x70] sm:$0xff] %v2662_v16  }
 0x197   : > { %2777 = vst [vmem:[%s3534_s30 + $0x70] sm:$0xff] %v2742_v34  }
 0x198 PF: > { %s17_s23 = sadd.s32 1, %s3259_s23   ;;  %s3931_s21 = smov %s3255_s22 }
 0x199   : > { %p14_p5 = scmp.ge.s32.totalorder %s17_s23, 4   ;;  %s3932_s22 = smov %s3934_s24 }
 0x19b   :  { %16 = sbr.rel (!%p14_p5) target bundleno = 2 (0x2), region = 102 }

// kernel: csp_stack_rep_forward.11
= control target key start
LH: loop header
LB: loop body
LE: loop exit
PB: predicated region body
PF: predicated region fallthrough
CT: control target
= control target key end

     0   :  { %s2219_s18 = smov 0   ;;  %s2221_s19 = smov 0   ;;  %s2542_s0 = inlined_call_operand.vmem [shape: bf16[512,128], index: 0, kind: input, shape index: {}]   ;;  %s2543_s1 = inlined_call_operand.vmem [shape: bf16[128,128], index: 1, kind: input, shape index: {}]   ;;  %s2544_s2 = inlined_call_operand.vmem [shape: bf16[512,128], index: 2, kind: input, shape index: {}]   ;;  %s2545_s3 = inlined_call_operand.vmem [shape: bf16[128,128], index: 3, kind: input, shape index: {}]   ;;  %s2546_s4 = inlined_call_operand.vmem [shape: f32[1,128], index: 4, kind: input, shape index: {}]   ;;  %s2547_s5 = inlined_call_operand.vmem [shape: f32[512,128], index: 5, kind: output, shape index: {}]  }
   0x1   :  { %s2223_s20 = smov 0  }
   0x2 LB: > { %s34_s21 = sadd.s32 1, %s2183_s19  ;;  %p1699_p0 = scmp.ge.s32.totalorder %s2187_s20, 1  ;;  %s2187_s20 = sphi %s2223_s20, %s15_s20   ;;  %s2183_s19 = sphi %s2221_s19, %s2549_s19   ;;  %s2179_s18 = sphi %s2219_s18, %s2548_s18  }
   0x3   : > { %p36_p1 = scmp.ge.s32.totalorder %s34_s21, 2  ;;  %p270_p2 = scmp.lt.s32.totalorder %s2187_s20, 3 }
   0x5   : > { %s2551_s21 = smov (%p36_p1, %s34_s21), 0  ;;  %p271_p3 = pnand %p1699_p0, %p270_p2 }
   0x6   : > { %v1989_v0 = vld [vmem:[%s2545_s3] sm:$0xff] (!%p271_p3)   ;;  %s1700_s24 = sshll.u32 (!%p271_p3), %s2179_s18, 5  ;;  %v1991_v2 = vld [vmem:[%s2545_s3 + $0x8] sm:$0xff] (!%p271_p3)   ;;  %v1993_v4 = vld [vmem:[%s2545_s3 + $0x10] sm:$0xff] (!%p271_p3)  }
   0x7   : > { %274 = sbr.rel (%p271_p3) target bundleno = 349 (0x15d), region = 40  ;;  %v1990_v1 = vld [vmem:[%s2543_s1] sm:$0xff] (!%p271_p3)   ;;  %1837 = vmatprep.subr.bf16.mxu1 (!%p271_p3), %v1989_v0  ;;  %p332_p4 = scmp.lt.s32.totalorder (!%p271_p3), %s1700_s24, 63  ;;  %v1992_v3 = vld [vmem:[%s2543_s1 + $0x8] sm:$0xff] (!%p271_p3)   ;;  %v1994_v5 = vld [vmem:[%s2543_s1 + $0x10] sm:$0xff] (!%p271_p3)  }
   0x8   : > { %1885 = vmatprep.subr.bf16.mxu0 (!%p271_p3), %v1990_v1  ;;  %1838 = vmatpush3.bf16.msra.mxu1 (!%p271_p3), %v1989_v0  ;;  %v1995_v6 = vld [vmem:[%s2545_s3 + $0x18] sm:$0xff] (!%p271_p3)   ;;  %v1997_v8 = vld [vmem:[%s2545_s3 + $0x20] sm:$0xff] (!%p271_p3)   ;;  %v1999_v10 = vld [vmem:[%s2545_s3 + $0x28] sm:$0xff] (!%p271_p3)  }
   0x9   : > { %1886 = vmatpush3.bf16.msra.mxu0 (!%p271_p3), %v1990_v1  ;;  %1839 = vmatprep.subr.bf16.mxu1 (!%p271_p3), %v1991_v2  ;;  %v1996_v7 = vld [vmem:[%s2543_s1 + $0x18] sm:$0xff] (!%p271_p3)   ;;  %v1998_v9 = vld [vmem:[%s2543_s1 + $0x20] sm:$0xff] (!%p271_p3)   ;;  %v2000_v11 = vld [vmem:[%s2543_s1 + $0x28] sm:$0xff] (!%p271_p3)  }
   0xa   : > { %1887 = vmatprep.subr.bf16.mxu0 (!%p271_p3), %v1992_v3  ;;  %v2001_v14 = vld [vmem:[%s2545_s3 + $0x30] sm:$0xff] (!%p271_p3)   ;;  %v2003_v16 = vld [vmem:[%s2545_s3 + $0x38] sm:$0xff] (!%p271_p3)   ;;  %v2333_v50 = vld [vmem:[%s2546_s4] ss:$0 sm:$0xff] (!%p271_p3) }
   0xb   : > { %v2002_v15 = vld [vmem:[%s2543_s1 + $0x30] sm:$0xff] (!%p271_p3)   ;;  %v2004_v17 = vld [vmem:[%s2543_s1 + $0x38] sm:$0xff] (!%p271_p3)  }
   0xc   : > { %1840 = vmatpush3.bf16.msra.mxu1 (!%p271_p3), %v1991_v2 }
   0xd   : > { %1888 = vmatpush3.bf16.msra.mxu0 (!%p271_p3), %v1992_v3  ;;  %1841 = vmatprep.subr.bf16.mxu1 (!%p271_p3), %v1993_v4 }
   0xe   : > { %s2553_s24 = smov (!%p332_p4, %s1700_s24), 63  ;;  %1889 = vmatprep.subr.bf16.mxu0 %v1994_v5 }
   0xf   : > { %s1701_s14 = sshll.u32 %s2553_s24, 2  ;;  %s1705_s18 = sshll.u32 %s2553_s24, 3 }
  0x10   : > { %1842 = vmatpush3.bf16.msra.mxu1 %v1993_v4  ;;  %s2273_s25 = scalar_lea.vmem %s2544_s2, %s1701_s14  ;;  %s2281_s30 = scalar_lea.vmem %s2542_s0, %s1701_s14 }
  0x11   : > { %1890 = vmatpush3.bf16.msra.mxu0 %v1994_v5  ;;  %1843 = vmatprep.subr.bf16.mxu1 %v1995_v6  ;;  %v2005_v12 = vld [vmem:[%s2273_s25] sm:$0xff]   ;;  %v2007_v18 = vld [vmem:[%s2273_s25 + $0x8] sm:$0xff]   ;;  %v2009_v20 = vld [vmem:[%s2273_s25 + $0x10] sm:$0xff]   ;;  %s2397_s23 = scalar_lea.vmem %s2547_s5, %s1705_s18 }
  0x12   : > { %1891 = vmatprep.subr.bf16.mxu0 %v1996_v7  ;;  %v2006_v13 = vld [vmem:[%s2281_s30] sm:$0xff]   ;;  %1853 = vmatprep.mubr.bf16.mxu1 %v2005_v12  ;;  %v2008_v19 = vld [vmem:[%s2281_s30 + $0x8] sm:$0xff]   ;;  %v2010_v21 = vld [vmem:[%s2281_s30 + $0x10] sm:$0xff]  }
  0x13   : > { %1901 = vmatprep.mubr.bf16.mxu0 %v2006_v13  ;;  %v2011_v22 = vld [vmem:[%s2273_s25 + $0x18] sm:$0xff]   ;;  %v2013_v24 = vld [vmem:[%s2273_s25 + $0x20] sm:$0xff]   ;;  %v2015_v26 = vld [vmem:[%s2273_s25 + $0x28] sm:$0xff]  }
  0x14   : > { %1844 = vmatpush3.bf16.msra.mxu1 %v1995_v6  ;;  %v2012_v23 = vld [vmem:[%s2281_s30 + $0x18] sm:$0xff]   ;;  %v2014_v25 = vld [vmem:[%s2281_s30 + $0x20] sm:$0xff]   ;;  %v2016_v27 = vld [vmem:[%s2281_s30 + $0x28] sm:$0xff]  }
  0x15   : > { %1892 = vmatpush3.bf16.msra.mxu0 %v1996_v7  ;;  %1845 = vmatprep.subr.bf16.mxu1 %v1997_v8  ;;  %v2017_v28 = vld [vmem:[%s2273_s25 + $0x30] sm:$0xff]   ;;  %v2019_v30 = vld [vmem:[%s2273_s25 + $0x38] sm:$0xff]   ;;  %v2021_v32 = vld [vmem:[%s2273_s25 + $0x40] sm:$0xff]  }
  0x16   : > { %1893 = vmatprep.subr.bf16.mxu0 %v1998_v9  ;;  %v2018_v29 = vld [vmem:[%s2281_s30 + $0x30] sm:$0xff]   ;;  %v2020_v31 = vld [vmem:[%s2281_s30 + $0x38] sm:$0xff]   ;;  %v2022_v33 = vld [vmem:[%s2281_s30 + $0x40] sm:$0xff]  }
  0x17   : > { %v2023_v34 = vld [vmem:[%s2273_s25 + $0x48] sm:$0xff]   ;;  %v2025_v36 = vld [vmem:[%s2273_s25 + $0x50] sm:$0xff]   ;;  %v2027_v38 = vld [vmem:[%s2273_s25 + $0x58] sm:$0xff]  }
  0x18   : > { %1846 = vmatpush3.bf16.msra.mxu1 %v1997_v8  ;;  %v2024_v35 = vld [vmem:[%s2281_s30 + $0x48] sm:$0xff]   ;;  %v2026_v37 = vld [vmem:[%s2281_s30 + $0x50] sm:$0xff]   ;;  %v2028_v39 = vld [vmem:[%s2281_s30 + $0x58] sm:$0xff]  }
  0x19   : > { %1894 = vmatpush3.bf16.msra.mxu0 %v1998_v9  ;;  %1847 = vmatprep.subr.bf16.mxu1 %v1999_v10  ;;  %v2029_v40 = vld [vmem:[%s2273_s25 + $0x60] sm:$0xff]   ;;  %v2031_v42 = vld [vmem:[%s2273_s25 + $0x68] sm:$0xff]   ;;  %v2033_v44 = vld [vmem:[%s2273_s25 + $0x70] sm:$0xff]  }
  0x1a   : > { %1895 = vmatprep.subr.bf16.mxu0 %v2000_v11  ;;  %v2030_v41 = vld [vmem:[%s2281_s30 + $0x60] sm:$0xff]   ;;  %v2032_v43 = vld [vmem:[%s2281_s30 + $0x68] sm:$0xff]   ;;  %v2034_v45 = vld [vmem:[%s2281_s30 + $0x70] sm:$0xff]  }
  0x1b   : > { %v2035_v46 = vld [vmem:[%s2273_s25 + $0x78] sm:$0xff]  }
  0x1c   : > { %1848 = vmatpush3.bf16.msra.mxu1 %v1999_v10  ;;  %v2036_v47 = vld [vmem:[%s2281_s30 + $0x78] sm:$0xff]  }
  0x1d   : > { %1896 = vmatpush3.bf16.msra.mxu0 %v2000_v11  ;;  %1849 = vmatprep.subr.bf16.mxu1 %v2001_v14 }
  0x1e   : > { %1897 = vmatprep.subr.bf16.mxu0 %v2002_v15 }
  0x20   : > { %1850 = vmatpush3.bf16.msra.mxu1 %v2001_v14 }
  0x21   : > { %1898 = vmatpush3.bf16.msra.mxu0 %v2002_v15  ;;  %1851 = vmatprep.subr.bf16.mxu1 %v2003_v16 }
  0x22   : > { %1899 = vmatprep.subr.bf16.mxu0 %v2004_v17 }
  0x24   : > { %1852 = vmatpush3.bf16.msra.mxu1 %v2003_v16 }
  0x25   : > { %1900 = vmatpush3.bf16.msra.mxu0 %v2004_v17 }
  0x27   : > { %1854 = vmatmul.mubr.bf16.vlgmr.msra.gmra.mrb[0].mxu1 %v2007_v18 }
  0x28   : > { %1902 = vmatmul.mubr.bf16.vlgmr.msra.gmra.mrb[0].mxu0 %v2008_v19  ;;  %1857 = vmatprep.mubr.bf16.mxu1 %v2009_v20 }
  0x29   : > { %1905 = vmatprep.mubr.bf16.mxu0 %v2010_v21 }
  0x2f   : > { %1858 = vmatmul.mubr.bf16.gmra.mrb[4].mxu1 %v2011_v22 }
  0x30   : > { %1906 = vmatmul.mubr.bf16.gmra.mrb[4].mxu0 %v2012_v23  ;;  %1861 = vmatprep.mubr.bf16.mxu1 %v2013_v24 }
  0x31   : > { %1909 = vmatprep.mubr.bf16.mxu0 %v2014_v25 }
  0x37   : > { %1862 = vmatmul.mubr.bf16.gmra.mrb[8].mxu1 %v2015_v26 }
  0x38   : > { %1910 = vmatmul.mubr.bf16.gmra.mrb[8].mxu0 %v2016_v27  ;;  %1865 = vmatprep.mubr.bf16.mxu1 %v2017_v28 }
  0x39   : > { %1913 = vmatprep.mubr.bf16.mxu0 %v2018_v29 }
  0x3f   : > { %1866 = vmatmul.mubr.bf16.gmra.mrb[12].mxu1 %v2019_v30 }
  0x40   : > { %1914 = vmatmul.mubr.bf16.gmra.mrb[12].mxu0 %v2020_v31  ;;  %1869 = vmatprep.mubr.bf16.mxu1 %v2021_v32 }
  0x41   : > { %1917 = vmatprep.mubr.bf16.mxu0 %v2022_v33 }
  0x47   : > { %1870 = vmatmul.mubr.bf16.gmra.mrb[16].mxu1 %v2023_v34 }
  0x48   : > { %1918 = vmatmul.mubr.bf16.gmra.mrb[16].mxu0 %v2024_v35  ;;  %1873 = vmatprep.mubr.bf16.mxu1 %v2025_v36 }
  0x49   : > { %1921 = vmatprep.mubr.bf16.mxu0 %v2026_v37 }
  0x4f   : > { %1874 = vmatmul.mubr.bf16.gmra.mrb[20].mxu1 %v2027_v38 }
  0x50   : > { %1922 = vmatmul.mubr.bf16.gmra.mrb[20].mxu0 %v2028_v39  ;;  %1877 = vmatprep.mubr.bf16.mxu1 %v2029_v40 }
  0x51   : > { %1925 = vmatprep.mubr.bf16.mxu0 %v2030_v41 }
  0x57   : > { %1878 = vmatmul.mubr.bf16.gmra.mrb[24].mxu1 %v2031_v42 }
  0x58   : > { %1926 = vmatmul.mubr.bf16.gmra.mrb[24].mxu0 %v2032_v43  ;;  %1881 = vmatprep.mubr.bf16.mxu1 %v2033_v44 }
  0x59   : > { %1929 = vmatprep.mubr.bf16.mxu0 %v2034_v45 }
  0x5f   : > { %1882 = vmatmul.mubr.bf16.gmra.mrb[28].mxu1 %v2035_v46 }
  0x60   : > { %1930 = vmatmul.mubr.bf16.gmra.mrb[28].mxu0 %v2036_v47 }
  0xfa   : > { %v1855_v48 = vpop.f32.mrb[0].mxu1 }
  0xfb   : > { %v1903_v49 = vpop.f32.mrb[0].mxu0  ;;  %v722_v51 = vpop.f32.mrb[1].mxu1 }
  0xfc   : > { %v1036_v52 = vadd.f32 %v1903_v49, %v1855_v48  ;;  %v1027_v53 = vpop.f32.mrb[1].mxu0  ;;  %v1856_v54 = vpop.f32.mrb[2].mxu1 }
  0xfd   : > { %v1028_v55 = vadd.f32 %v1027_v53, %v722_v51  ;;  %v1904_v56 = vpop.f32.mrb[2].mxu0  ;;  %v725_v57 = vpop.f32.mrb[3].mxu1 }
  0xfe   : > { %v2336_v58 = vadd.f32 %v2333_v50, %v1036_v52  ;;  %v1039_v59 = vadd.f32 %v1904_v56, %v1856_v54  ;;  %v1030_v60 = vpop.f32.mrb[3].mxu0 }
  0xff   : > { %v2339_v61 = vadd.f32 %v2333_v50, %v1028_v55  ;;  %v1031_v62 = vadd.f32 %v1030_v60, %v725_v57 }
 0x100   : > { %v1757_v63 = vmul.f32 -1.442695, %v2336_v58  ;;  %v2343_v0 = vadd.f32 %v2333_v50, %v1039_v59 }
 0x101   : > { %v1755_v1 = vmul.f32 -1.442695, %v2339_v61  ;;  %v2347_v2 = vadd.f32 %v2333_v50, %v1031_v62 }
 0x102   : > { %2037 = vpow2.f32 %v1757_v63  ;;  %v1758_v3 = vmul.f32 -1.442695, %v2343_v0  ;;  %v1859_v4 = vpop.f32.mrb[4].mxu1 }
 0x103   : > { %2039 = vpow2.f32 %v1755_v1  ;;  %v1756_v5 = vmul.f32 -1.442695, %v2347_v2  ;;  %v1907_v6 = vpop.f32.mrb[4].mxu0  ;;  %v738_v7 = vpop.f32.mrb[5].mxu1 }
 0x104   : > { %2041 = vpow2.f32 %v1758_v3  ;;  %v1052_v8 = vadd.f32 %v1907_v6, %v1859_v4  ;;  %v1043_v9 = vpop.f32.mrb[5].mxu0  ;;  %v1860_v10 = vpop.f32.mrb[6].mxu1 }
 0x105   : > { %2043 = vpow2.f32 %v1756_v5  ;;  %v1044_v11 = vadd.f32 %v1043_v9, %v738_v7  ;;  %v1908_v12 = vpop.f32.mrb[6].mxu0  ;;  %v741_v13 = vpop.f32.mrb[7].mxu1 }
 0x106   : > { %v2352_v14 = vadd.f32 %v2333_v50, %v1052_v8  ;;  %v1055_v15 = vadd.f32 %v1908_v12, %v1860_v10  ;;  %v1046_v16 = vpop.f32.mrb[7].mxu0 }
 0x107   : > { %v2355_v17 = vadd.f32 %v2333_v50, %v1044_v11  ;;  %v1047_v18 = vadd.f32 %v1046_v16, %v741_v13 }
 0x108   : > { %v1761_v19 = vmul.f32 -1.442695, %v2352_v14  ;;  %v2359_v20 = vadd.f32 %v2333_v50, %v1055_v15 }
 0x109   : > { %v1759_v21 = vmul.f32 -1.442695, %v2355_v17  ;;  %v2363_v22 = vadd.f32 %v2333_v50, %v1047_v18 }
 0x10a   : > { %2045 = vpow2.f32 %v1761_v19  ;;  %v1762_v23 = vmul.f32 -1.442695, %v2359_v20  ;;  %v1863_v24 = vpop.f32.mrb[8].mxu1 }
 0x10b   : > { %2047 = vpow2.f32 %v1759_v21  ;;  %v1760_v25 = vmul.f32 -1.442695, %v2363_v22  ;;  %v1911_v26 = vpop.f32.mrb[8].mxu0  ;;  %v754_v27 = vpop.f32.mrb[9].mxu1 }
 0x10c   : > { %v2038_v28 = vpop.eup %2037  ;;  %2049 = vpow2.f32 %v1762_v23  ;;  %v1068_v29 = vadd.f32 %v1911_v26, %v1863_v24  ;;  %v1059_v30 = vpop.f32.mrb[9].mxu0 }
 0x10d   : > { %v1864_v31 = vpop.f32.mrb[10].mxu1  ;;  %v2040_v32 = vpop.eup %2039  ;;  %v1390_v33 = vadd.f32 1.0, %v2038_v28  ;;  %2051 = vpow2.f32 %v1760_v25  ;;  %v1060_v34 = vadd.f32 %v1059_v30, %v754_v27 }
 0x10e   : > { %v1912_v35 = vpop.f32.mrb[10].mxu0  ;;  %v757_v36 = vpop.f32.mrb[11].mxu1  ;;  %v1388_v38 = vadd.f32 1.0, %v2040_v32  ;;  %v2368_v39 = vadd.f32 %v2333_v50, %v1068_v29 }
 0x10f   : > { %v2042_v37 = vpop.eup %2041  ;;  %v1071_v40 = vadd.f32 %v1912_v35, %v1864_v31  ;;  %v1062_v41 = vpop.f32.mrb[11].mxu0  ;;  %2053 = vrcp.f32 %v1390_v33  ;;  %v2371_v44 = vadd.f32 %v2333_v50, %v1060_v34 }
 0x110   : > { %v2044_v42 = vpop.eup %2043  ;;  %v1391_v43 = vadd.f32 1.0, %v2042_v37  ;;  %v1063_v45 = vadd.f32 %v1062_v41, %v757_v36  ;;  %2055 = vrcp.f32 %v1388_v38  ;;  %v1765_v47 = vmul.f32 -1.442695, %v2368_v39 }
 0x111   : > { %v1389_v46 = vadd.f32 1.0, %v2044_v42  ;;  %v2375_v48 = vadd.f32 %v2333_v50, %v1071_v40  ;;  %v1763_v49 = vmul.f32 -1.442695, %v2371_v44 }
 0x112   : > { %2057 = vrcp.f32 %v1391_v43  ;;  %v2379_v51 = vadd.f32 %v2333_v50, %v1063_v45  ;;  %v1867_v53 = vpop.f32.mrb[12].mxu1 }
 0x113   : > { %2059 = vrcp.f32 %v1389_v46  ;;  %v1766_v52 = vmul.f32 -1.442695, %v2375_v48  ;;  %v1915_v55 = vpop.f32.mrb[12].mxu0  ;;  %v770_v56 = vpop.f32.mrb[13].mxu1 }
 0x114   : > { %2061 = vpow2.f32 %v1765_v47  ;;  %v1764_v54 = vmul.f32 -1.442695, %v2379_v51  ;;  %v2046_v57 = vpop.eup %2045  ;;  %v1084_v59 = vadd.f32 %v1915_v55, %v1867_v53  ;;  %v1075_v60 = vpop.f32.mrb[13].mxu0 }
 0x115   : > { %2063 = vpow2.f32 %v1763_v49  ;;  %v1868_v62 = vpop.f32.mrb[14].mxu1  ;;  %v2048_v63 = vpop.eup %2047  ;;  %v1394_v1 = vadd.f32 1.0, %v2046_v57  ;;  %v1076_v3 = vadd.f32 %v1075_v60, %v770_v56 }
 0x116   : > { %2065 = vpow2.f32 %v1766_v52  ;;  %v1916_v4 = vpop.f32.mrb[14].mxu0  ;;  %v773_v5 = vpop.f32.mrb[15].mxu1  ;;  %v1392_v7 = vadd.f32 1.0, %v2048_v63  ;;  %v2385_v8 = vadd.f32 %v2333_v50, %v1084_v59 }
 0x117   : > { %v2050_v6 = vpop.eup %2049  ;;  %2067 = vpow2.f32 %v1764_v54  ;;  %v1087_v9 = vadd.f32 %v1916_v4, %v1868_v62  ;;  %v1078_v10 = vpop.f32.mrb[15].mxu0  ;;  %v2388_v13 = vadd.f32 %v2333_v50, %v1076_v3 }
 0x118   : > { %v2052_v11 = vpop.eup %2051  ;;  %2069 = vrcp.f32 %v1394_v1  ;;  %v1395_v12 = vadd.f32 1.0, %v2050_v6  ;;  %v1079_v15 = vadd.f32 %v1078_v10, %v773_v5  ;;  %v1769_v18 = vmul.f32 -1.442695, %v2385_v8 }
 0x119   : > { %2071 = vrcp.f32 %v1392_v7  ;;  %v1393_v16 = vadd.f32 1.0, %v2052_v11  ;;  %v2392_v19 = vadd.f32 %v2333_v50, %v1087_v9  ;;  %v2054_v21 = vpop.eup %2053  ;;  %v1767_v23 = vmul.f32 -1.442695, %v2388_v13 }
 0x11a   : > { %2073 = vrcp.f32 %v1395_v12  ;;  %v2401_v24 = vadd.f32 %v2333_v50, %v1079_v15  ;;  %v2056_v25 = vpop.eup %2055  ;;  %v1486_v26 = vmul.f32 %v2054_v21, %v2336_v58  ;;  %v1871_v28 = vpop.f32.mrb[16].mxu1 }
 0x11b   : > { %2075 = vrcp.f32 %v1393_v16  ;;  %v1770_v27 = vmul.f32 -1.442695, %v2392_v19  ;;  %v1484_v30 = vmul.f32 %v2056_v25, %v2339_v61  ;;  %v1919_v32 = vpop.f32.mrb[16].mxu0  ;;  %v786_v33 = vpop.f32.mrb[17].mxu1 }
 0x11c   : > { %v2058_v29 = vpop.eup %2057  ;;  %2077 = vpow2.f32 %v1769_v18  ;;  %v1768_v31 = vmul.f32 -1.442695, %v2401_v24  ;;  %1518 = vst [vmem:[%s2397_s23 + $0x10] sm:$0xff] %v1486_v26  ;;  %v1100_v58 = vadd.f32 %v1919_v32, %v1871_v28  ;;  %v1091_v36 = vpop.f32.mrb[17].mxu0 }
 0x11d   : > { %v2060_v34 = vpop.eup %2059  ;;  %v1487_v35 = vmul.f32 %v2058_v29, %v2343_v0  ;;  %2079 = vpow2.f32 %v1767_v23  ;;  %v1872_v37 = vpop.f32.mrb[18].mxu1  ;;  %1516 = vst [vmem:[%s2397_s23] sm:$0xff] %v1484_v30  ;;  %v1092_v61 = vadd.f32 %v1091_v36, %v786_v33 }
 0x11e   : > { %v2062_v38 = vpop.eup %2061  ;;  %v1485_v40 = vmul.f32 %v2060_v34, %v2347_v2  ;;  %2081 = vpow2.f32 %v1770_v27  ;;  %v1920_v41 = vpop.f32.mrb[18].mxu0  ;;  %v2413_v46 = vadd.f32 %v2333_v50, %v1100_v58 }
 0x11f   : > { %v789_v42 = vpop.f32.mrb[19].mxu1  ;;  %v2064_v43 = vpop.eup %2063  ;;  %1519 = vst [vmem:[%s2397_s23 + $0x18] sm:$0xff] %v1487_v35  ;;  %v1398_v45 = vadd.f32 1.0, %v2062_v38  ;;  %2083 = vpow2.f32 %v1768_v31  ;;  %v1103_v0 = vadd.f32 %v1920_v41, %v1872_v37  ;;  %v2417_v53 = vadd.f32 %v2333_v50, %v1092_v61 }
 0x120   : > { %v1094_v47 = vpop.f32.mrb[19].mxu0  ;;  %v2066_v49 = vpop.eup %2065  ;;  %1517 = vst [vmem:[%s2397_s23 + $0x8] sm:$0xff] %v1485_v40  ;;  %v1396_v52 = vadd.f32 1.0, %v2064_v43  ;;  %v1773_v56 = vmul.f32 -1.442695, %v2413_v46 }
 0x121   : > { %v1095_v2 = vadd.f32 %v1094_v47, %v789_v42  ;;  %v2068_v54 = vpop.eup %2067  ;;  %2085 = vrcp.f32 %v1398_v45  ;;  %v1399_v55 = vadd.f32 1.0, %v2066_v49  ;;  %v2421_v57 = vadd.f32 %v2333_v50, %v1103_v0 }
 0x122   : > { %v2070_v59 = vpop.eup %2069  ;;  %2087 = vrcp.f32 %v1396_v52  ;;  %v1397_v60 = vadd.f32 1.0, %v2068_v54  ;;  %v1771_v62 = vmul.f32 -1.442695, %v2417_v53  ;;  %v1875_v5 = vpop.f32.mrb[20].mxu1 }
 0x123   : > { %v2425_v63 = vadd.f32 %v2333_v50, %v1095_v2  ;;  %v2072_v1 = vpop.eup %2071  ;;  %v1490_v3 = vmul.f32 %v2070_v59, %v2352_v14  ;;  %2089 = vrcp.f32 %v1399_v55  ;;  %v1774_v4 = vmul.f32 -1.442695, %v2421_v57  ;;  %v1923_v10 = vpop.f32.mrb[20].mxu0 }
 0x124   : > { %v2074_v6 = vpop.eup %2073  ;;  %v1488_v7 = vmul.f32 %v2072_v1, %v2355_v17  ;;  %2091 = vrcp.f32 %v1397_v60  ;;  %v802_v11 = vpop.f32.mrb[21].mxu1  ;;  %v1116_v14 = vadd.f32 %v1923_v10, %v1875_v5 }
 0x125   : > { %v1772_v9 = vmul.f32 -1.442695, %v2425_v63  ;;  %v2076_v12 = vpop.eup %2075  ;;  %1522 = vst [vmem:[%s2397_s23 + $0x30] sm:$0xff] %v1490_v3  ;;  %v1491_v15 = vmul.f32 %v2074_v6, %v2359_v20  ;;  %2093 = vpow2.f32 %v1773_v56  ;;  %v1107_v16 = vpop.f32.mrb[21].mxu0 }
 0x126   : > { %v1876_v18 = vpop.f32.mrb[22].mxu1  ;;  %v2078_v21 = vpop.eup %2077  ;;  %1520 = vst [vmem:[%s2397_s23 + $0x20] sm:$0xff] %v1488_v7  ;;  %v1489_v23 = vmul.f32 %v2076_v12, %v2363_v22  ;;  %2095 = vpow2.f32 %v1771_v62  ;;  %v1108_v17 = vadd.f32 %v1107_v16, %v802_v11  ;;  %v2437_v29 = vadd.f32 %v2333_v50, %v1116_v14 }
 0x127   : > { %v1924_v25 = vpop.f32.mrb[22].mxu0  ;;  %v805_v26 = vpop.f32.mrb[23].mxu1  ;;  %1523 = vst [vmem:[%s2397_s23 + $0x38] sm:$0xff] %v1491_v15  ;;  %v1402_v28 = vadd.f32 1.0, %v2078_v21  ;;  %2097 = vpow2.f32 %v1774_v4 }
 0x128   : > { %v2080_v27 = vpop.eup %2079  ;;  %v1119_v20 = vadd.f32 %v1924_v25, %v1876_v18  ;;  %v1110_v30 = vpop.f32.mrb[23].mxu0  ;;  %1521 = vst [vmem:[%s2397_s23 + $0x28] sm:$0xff] %v1489_v23  ;;  %2099 = vpow2.f32 %v1772_v9  ;;  %v2441_v33 = vadd.f32 %v2333_v50, %v1108_v17  ;;  %v1777_v58 = vmul.f32 -1.442695, %v2437_v29 }
 0x129   : > { %v2082_v31 = vpop.eup %2081  ;;  %v1400_v32 = vadd.f32 1.0, %v2080_v27  ;;  %v1111_v22 = vadd.f32 %v1110_v30, %v805_v26  ;;  %2101 = vrcp.f32 %v1402_v28 }
 0x12a   : > { %v2084_v34 = vpop.eup %2083  ;;  %v1403_v35 = vadd.f32 1.0, %v2082_v31  ;;  %v2445_v36 = vadd.f32 %v2333_v50, %v1119_v20  ;;  %v1775_v38 = vmul.f32 -1.442695, %v2441_v33  ;;  %v1879_v42 = vpop.f32.mrb[24].mxu1 }
 0x12b   : > { %2103 = vrcp.f32 %v1400_v32  ;;  %v1401_v37 = vadd.f32 1.0, %v2084_v34  ;;  %v2449_v40 = vadd.f32 %v2333_v50, %v1111_v22  ;;  %v2086_v61 = vpop.eup %2085  ;;  %v1927_v47 = vpop.f32.mrb[24].mxu0 }
 0x12c   : > { %2105 = vrcp.f32 %v1403_v35  ;;  %v1778_v41 = vmul.f32 -1.442695, %v2445_v36  ;;  %v2088_v43 = vpop.eup %2087  ;;  %v1494_v45 = vmul.f32 %v2086_v61, %v2368_v39  ;;  %v818_v49 = vpop.f32.mrb[25].mxu1  ;;  %v1132_v54 = vadd.f32 %v1927_v47, %v1879_v42 }
 0x12d   : > { %2107 = vrcp.f32 %v1401_v37  ;;  %v1776_v0 = vmul.f32 -1.442695, %v2449_v40  ;;  %v2090_v52 = vpop.eup %2089  ;;  %v1492_v2 = vmul.f32 %v2088_v43, %v2371_v44  ;;  %v1123_v55 = vpop.f32.mrb[25].mxu0 }
 0x12e   : > { %2109 = vpow2.f32 %v1777_v58  ;;  %v1880_v56 = vpop.f32.mrb[26].mxu1  ;;  %v2092_v59 = vpop.eup %2091  ;;  %1526 = vst [vmem:[%s2397_s23 + $0x50] sm:$0xff] %v1494_v45  ;;  %v1495_v60 = vmul.f32 %v2090_v52, %v2375_v48  ;;  %v1124_v39 = vadd.f32 %v1123_v55, %v818_v49  ;;  %v2460_v44 = vadd.f32 %v2333_v50, %v1132_v54 }
 0x12f   : > { %2111 = vpow2.f32 %v1775_v38  ;;  %v1928_v62 = vpop.f32.mrb[26].mxu0  ;;  %v821_v1 = vpop.f32.mrb[27].mxu1  ;;  %1524 = vst [vmem:[%s2397_s23 + $0x40] sm:$0xff] %v1492_v2  ;;  %v1493_v4 = vmul.f32 %v2092_v59, %v2379_v51 }
 0x130   : > { %v2094_v3 = vpop.eup %2093  ;;  %2113 = vpow2.f32 %v1778_v41  ;;  %v1135_v5 = vadd.f32 %v1928_v62, %v1880_v56  ;;  %v1126_v6 = vpop.f32.mrb[27].mxu0  ;;  %1527 = vst [vmem:[%s2397_s23 + $0x58] sm:$0xff] %v1495_v60  ;;  %v2464_v48 = vadd.f32 %v2333_v50, %v1124_v39  ;;  %v1781_v16 = vmul.f32 -1.442695, %v2460_v44 }
 0x131   : > { %v2096_v7 = vpop.eup %2095  ;;  %v1406_v9 = vadd.f32 1.0, %v2094_v3  ;;  %2115 = vpow2.f32 %v1776_v0  ;;  %v1127_v10 = vadd.f32 %v1126_v6, %v821_v1  ;;  %1525 = vst [vmem:[%s2397_s23 + $0x48] sm:$0xff] %v1493_v4 }
 0x132   : > { %v2098_v11 = vpop.eup %2097  ;;  %v1404_v12 = vadd.f32 1.0, %v2096_v7  ;;  %v2468_v15 = vadd.f32 %v2333_v50, %v1135_v5  ;;  %v1779_v17 = vmul.f32 -1.442695, %v2464_v48  ;;  %v1883_v25 = vpop.f32.mrb[28].mxu1 }
 0x133   : > { %v2100_v51 = vpop.eup %2099  ;;  %2117 = vrcp.f32 %v1406_v9  ;;  %v1407_v14 = vadd.f32 1.0, %v2098_v11  ;;  %v2472_v18 = vadd.f32 %v2333_v50, %v1127_v10  ;;  %v1931_v20 = vpop.f32.mrb[28].mxu0 }
 0x134   : > { %v2102_v21 = vpop.eup %2101  ;;  %2119 = vrcp.f32 %v1404_v12  ;;  %v1405_v23 = vadd.f32 1.0, %v2100_v51  ;;  %v1782_v28 = vmul.f32 -1.442695, %v2468_v15  ;;  %v834_v30 = vpop.f32.mrb[29].mxu1  ;;  %v1148_v34 = vadd.f32 %v1931_v20, %v1883_v25 }
 0x135   : > { %v2104_v26 = vpop.eup %2103  ;;  %v1498_v27 = vmul.f32 %v2102_v21, %v2385_v8  ;;  %2121 = vrcp.f32 %v1407_v14  ;;  %v1780_v22 = vmul.f32 -1.442695, %v2472_v18  ;;  %v1139_v35 = vpop.f32.mrb[29].mxu0 }
 0x136   : > { %v2106_v31 = vpop.eup %2105  ;;  %v1496_v32 = vmul.f32 %v2104_v26, %v2388_v13  ;;  %2123 = vrcp.f32 %v1405_v23  ;;  %v1884_v58 = vpop.f32.mrb[30].mxu1  ;;  %v1140_v38 = vadd.f32 %v1139_v35, %v834_v30  ;;  %v2484_v43 = vadd.f32 %v2333_v50, %v1148_v34 }
 0x137   : > { %v2108_v37 = vpop.eup %2107  ;;  %1530 = vst [vmem:[%s2397_s23 + $0x70] sm:$0xff] %v1498_v27  ;;  %v1499_v8 = vmul.f32 %v2106_v31, %v2392_v19  ;;  %2125 = vpow2.f32 %v1781_v16  ;;  %v1932_v61 = vpop.f32.mrb[30].mxu0 }
 0x138   : > { %v837_v41 = vpop.f32.mrb[31].mxu1  ;;  %v2110_v42 = vpop.eup %2109  ;;  %1528 = vst [vmem:[%s2397_s23 + $0x60] sm:$0xff] %v1496_v32  ;;  %v1497_v13 = vmul.f32 %v2108_v37, %v2401_v24  ;;  %2127 = vpow2.f32 %v1779_v17  ;;  %v1151_v45 = vadd.f32 %v1932_v61, %v1884_v58  ;;  %v2488_v19 = vadd.f32 %v2333_v50, %v1140_v38 }
 0x139   : > { %v1142_v0 = vpop.f32.mrb[31].mxu0  ;;  %v2112_v47 = vpop.eup %2111  ;;  %1531 = vst [vmem:[%s2397_s23 + $0x78] sm:$0xff] %v1499_v8  ;;  %v1410_v49 = vadd.f32 1.0, %v2110_v42  ;;  %2129 = vpow2.f32 %v1782_v28  ;;  %v1785_v59 = vmul.f32 -1.442695, %v2484_v43 }
 0x13a   : > { %v1143_v52 = vadd.f32 %v1142_v0, %v837_v41  ;;  %v2114_v2 = vpop.eup %2113  ;;  %1529 = vst [vmem:[%s2397_s23 + $0x68] sm:$0xff] %v1497_v13  ;;  %v1408_v54 = vadd.f32 1.0, %v2112_v47  ;;  %2131 = vpow2.f32 %v1780_v22  ;;  %v2492_v24 = vadd.f32 %v2333_v50, %v1151_v45 }
 0x13b   : > { %v2116_v55 = vpop.eup %2115  ;;  %2133 = vrcp.f32 %v1410_v49  ;;  %v1411_v56 = vadd.f32 1.0, %v2114_v2  ;;  %v1783_v62 = vmul.f32 -1.442695, %v2488_v19 }
 0x13c   : > { %v2496_v60 = vadd.f32 %v2333_v50, %v1143_v52  ;;  %2135 = vrcp.f32 %v1408_v54  ;;  %v1409_v39 = vadd.f32 1.0, %v2116_v55  ;;  %v1786_v3 = vmul.f32 -1.442695, %v2492_v24 }
 0x13d   : > { %v2118_v1 = vpop.eup %2117  ;;  %2137 = vrcp.f32 %v1411_v56 }
 0x13e   : > { %v2120_v4 = vpop.eup %2119  ;;  %v1502_v5 = vmul.f32 %v2118_v1, %v2413_v46  ;;  %2139 = vrcp.f32 %v1409_v39  ;;  %v1784_v6 = vmul.f32 -1.442695, %v2496_v60 }
 0x13f   : > { %v2122_v7 = vpop.eup %2121  ;;  %v1500_v50 = vmul.f32 %v2120_v4, %v2417_v53  ;;  %2141 = vpow2.f32 %v1785_v59 }
 0x140   : > { %v2124_v9 = vpop.eup %2123  ;;  %1534 = vst [vmem:[%s2397_s23 + $0x90] sm:$0xff] %v1502_v5  ;;  %v1503_v10 = vmul.f32 %v2122_v7, %v2421_v57  ;;  %2143 = vpow2.f32 %v1783_v62 }
 0x141   : > { %v2126_v11 = vpop.eup %2125  ;;  %1532 = vst [vmem:[%s2397_s23 + $0x80] sm:$0xff] %v1500_v50  ;;  %v1501_v12 = vmul.f32 %v2124_v9, %v2425_v63  ;;  %2145 = vpow2.f32 %v1786_v3 }
 0x142   : > { %v2128_v51 = vpop.eup %2127  ;;  %1535 = vst [vmem:[%s2397_s23 + $0x98] sm:$0xff] %v1503_v10  ;;  %v1414_v46 = vadd.f32 1.0, %v2126_v11  ;;  %2147 = vpow2.f32 %v1784_v6 }
 0x143   : > { %v2130_v14 = vpop.eup %2129  ;;  %1533 = vst [vmem:[%s2397_s23 + $0x88] sm:$0xff] %v1501_v12  ;;  %v1412_v16 = vadd.f32 1.0, %v2128_v51 }
 0x144   : > { %v2132_v53 = vpop.eup %2131  ;;  %2149 = vrcp.f32 %v1414_v46  ;;  %v1415_v21 = vadd.f32 1.0, %v2130_v14 }
 0x145   : > { %v2134_v23 = vpop.eup %2133  ;;  %2151 = vrcp.f32 %v1412_v16  ;;  %v1413_v57 = vadd.f32 1.0, %v2132_v53 }
 0x146   : > { %v2136_v17 = vpop.eup %2135  ;;  %v1506_v63 = vmul.f32 %v2134_v23, %v2437_v29  ;;  %2153 = vrcp.f32 %v1415_v21 }
 0x147   : > { %v2138_v25 = vpop.eup %2137  ;;  %v1504_v26 = vmul.f32 %v2136_v17, %v2441_v33  ;;  %2155 = vrcp.f32 %v1413_v57 }
 0x148   : > { %v2140_v27 = vpop.eup %2139  ;;  %1538 = vst [vmem:[%s2397_s23 + $0xb0] sm:$0xff] %v1506_v63  ;;  %v1507_v28 = vmul.f32 %v2138_v25, %v2445_v36 }
 0x149   : > { %v2142_v20 = vpop.eup %2141  ;;  %1536 = vst [vmem:[%s2397_s23 + $0xa0] sm:$0xff] %v1504_v26  ;;  %v1505_v30 = vmul.f32 %v2140_v27, %v2449_v40 }
 0x14a   : > { %v2144_v31 = vpop.eup %2143  ;;  %1539 = vst [vmem:[%s2397_s23 + $0xb8] sm:$0xff] %v1507_v28  ;;  %v1418_v32 = vadd.f32 1.0, %v2142_v20 }
 0x14b   : > { %v2146_v22 = vpop.eup %2145  ;;  %1537 = vst [vmem:[%s2397_s23 + $0xa8] sm:$0xff] %v1505_v30  ;;  %v1416_v29 = vadd.f32 1.0, %v2144_v31 }
 0x14c   : > { %v2148_v34 = vpop.eup %2147  ;;  %2157 = vrcp.f32 %v1418_v32  ;;  %v1419_v33 = vadd.f32 1.0, %v2146_v22 }
 0x14d   : > { %2159 = vrcp.f32 %v1416_v29  ;;  %v1417_v35 = vadd.f32 1.0, %v2148_v34 }
 0x14e   : > { %v2150_v36 = vpop.eup %2149  ;;  %2161 = vrcp.f32 %v1419_v33 }
 0x14f   : > { %v2152_v58 = vpop.eup %2151  ;;  %v1510_v40 = vmul.f32 %v2150_v36, %v2460_v44  ;;  %2163 = vrcp.f32 %v1417_v35 }
 0x150   : > { %v2154_v37 = vpop.eup %2153  ;;  %v1508_v8 = vmul.f32 %v2152_v58, %v2464_v48 }
 0x151   : > { %v2156_v38 = vpop.eup %2155  ;;  %1542 = vst [vmem:[%s2397_s23 + $0xd0] sm:$0xff] %v1510_v40  ;;  %v1511_v61 = vmul.f32 %v2154_v37, %v2468_v15 }
 0x152   : > { %1540 = vst [vmem:[%s2397_s23 + $0xc0] sm:$0xff] %v1508_v8  ;;  %v1509_v41 = vmul.f32 %v2156_v38, %v2472_v18 }
 0x153   : > { %1543 = vst [vmem:[%s2397_s23 + $0xd8] sm:$0xff] %v1511_v61 }
 0x154   : > { %1541 = vst [vmem:[%s2397_s23 + $0xc8] sm:$0xff] %v1509_v41 }
 0x156   : > { %v2158_v42 = vpop.eup %2157 }
 0x157   : > { %v2160_v13 = vpop.eup %2159  ;;  %v1514_v44 = vmul.f32 %v2158_v42, %v2484_v43 }
 0x158   : > { %v2162_v45 = vpop.eup %2161  ;;  %v1512_v0 = vmul.f32 %v2160_v13, %v2488_v19 }
 0x159   : > { %v2164_v48 = vpop.eup %2163  ;;  %1546 = vst [vmem:[%s2397_s23 + $0xf0] sm:$0xff] %v1514_v44  ;;  %v1515_v47 = vmul.f32 %v2162_v45, %v2492_v24 }
 0x15a   : > { %1544 = vst [vmem:[%s2397_s23 + $0xe0] sm:$0xff] %v1512_v0  ;;  %v1513_v15 = vmul.f32 %v2164_v48, %v2496_v60 }
 0x15b   : > { %1547 = vst [vmem:[%s2397_s23 + $0xf8] sm:$0xff] %v1515_v47 }
 0x15c   : > { %1545 = vst [vmem:[%s2397_s23 + $0xe8] sm:$0xff] %v1513_v15 }
 0x15d PF: > { %s15_s20 = sadd.s32 1, %s2187_s20   ;;  %s2548_s18 = smov %s2183_s19 }
 0x15e   : > { %p12_p5 = scmp.ge.s32.totalorder %s15_s20, 4   ;;  %s2549_s19 = smov %s2551_s21 }
 0x160   :  { %14 = sbr.rel (!%p12_p5) target bundleno = 2 (0x2), region = 90 }

// kernel: csp_stack_rep_forward.8
= control target key start
LH: loop header
LB: loop body
LE: loop exit
PB: predicated region body
PF: predicated region fallthrough
CT: control target
= control target key end

     0   :  { %s5041_s15 = smov 0   ;;  %s5043_s16 = smov 0   ;;  %s6085_s0 = inlined_call_operand.vmem [shape: bf16[2,18,18,128], index: 0, kind: input, shape index: {}]   ;;  %s6086_s1 = inlined_call_operand.vmem [shape: bf16[9,128,128], index: 1, kind: input, shape index: {}]   ;;  %s6087_s2 = inlined_call_operand.vmem [shape: f32[1,128], index: 2, kind: input, shape index: {}]   ;;  %s6088_s3 = inlined_call_operand.vmem [shape: bf16[2,16,16,128], index: 3, kind: input, shape index: {}]   ;;  %s6089_s4 = inlined_call_operand.vmem [shape: bf16[2,16,16,128], index: 4, kind: output, shape index: {}]  }
   0x1   :  { %s5045_s17 = smov 0  }
   0x2 LB: > { %s26_s18 = sadd.s32 1, %s5010_s16  ;;  %p3464_p0 = scmp.ge.s32.totalorder %s5014_s17, 1  ;;  %s5014_s17 = sphi %s5045_s17, %s14_s17   ;;  %s5010_s16 = sphi %s5043_s16, %s6166_s16   ;;  %s5006_s15 = sphi %s5041_s15, %s6165_s15  }
   0x3   : > { %p28_p1 = scmp.ge.s32.totalorder %s26_s18, 2  ;;  %p208_p2 = scmp.lt.s32.totalorder %s5014_s17, 3 }
   0x5   : > { %s6168_s18 = smov (%p28_p1, %s26_s18), 0  ;;  %p209_p3 = pnand %p3464_p0, %p208_p2 }
   0x7   : > { %212 = sbr.rel (%p209_p3) target bundleno = 554 (0x22a), region = 36 }
   0xe   : > { %v4876_v0 = vld [vmem:[%s6086_s1 + $0x40] sm:$0xff]   ;;  %p252_p4 = scmp.lt.s32.totalorder %s5006_s15, 1  ;;  %v4878_v2 = vld [vmem:[%s6086_s1 + $0x48] sm:$0xff]   ;;  %v4880_v4 = vld [vmem:[%s6086_s1 + $0x50] sm:$0xff]   ;;  %vm469_vm0 = vcmask 1046528   ;;  %vm1033_vm1 = vcmask 1045504  }
   0xf   : > { %v4877_v1 = vld [vmem:[%s6086_s1 + $0x100] sm:$0xff]   ;;  %4147 = vmatprep.subr.bf16.mxu1 %v4876_v0  ;;  %v4879_v3 = vld [vmem:[%s6086_s1 + $0x108] sm:$0xff]   ;;  %v4881_v5 = vld [vmem:[%s6086_s1 + $0x110] sm:$0xff]  }
  0x10   : > { %4339 = vmatprep.subr.bf16.mxu0 %v4877_v1  ;;  %4148 = vmatpush3.bf16.msra.mxu1 %v4876_v0  ;;  %s6170_s15 = smov (!%p252_p4, %s5006_s15), 1  ;;  %v4882_v6 = vld [vmem:[%s6086_s1 + $0x58] sm:$0xff]   ;;  %v4884_v8 = vld [vmem:[%s6086_s1 + $0x60] sm:$0xff]   ;;  %v4886_v10 = vld [vmem:[%s6086_s1 + $0x68] sm:$0xff]  }
  0x11   : > { %4340 = vmatpush3.bf16.msra.mxu0 %v4877_v1  ;;  %4149 = vmatprep.subr.bf16.mxu1 %v4878_v2  ;;  %v4883_v7 = vld [vmem:[%s6086_s1 + $0x118] sm:$0xff]   ;;  %s4851_s9 = smul.u32 216, %s6170_s15  ;;  %v4885_v9 = vld [vmem:[%s6086_s1 + $0x120] sm:$0xff]   ;;  %v4887_v11 = vld [vmem:[%s6086_s1 + $0x128] sm:$0xff]   ;;  %s3723_s7 = sshll.u32 %s6170_s15, 7 }
  0x12   : > { %4341 = vmatprep.subr.bf16.mxu0 %v4879_v3  ;;  %v4888_v28 = vld [vmem:[%s6086_s1 + $0x70] sm:$0xff]   ;;  %v4890_v42 = vld [vmem:[%s6086_s1 + $0x78] sm:$0xff]   ;;  %v4893_v61 = vld [vmem:[%s6086_s1] sm:$0xff]   ;;  %s5990_s10 = scalar_lea.vmem %s6088_s3, %s3723_s7  ;;  %s6008_s19 = scalar_lea.vmem %s6089_s4, %s3723_s7 }
  0x13   : > { %s5095_s20 = scalar_lea.vmem %s6085_s0, %s4851_s9  ;;  %v4889_v29 = vld [vmem:[%s6086_s1 + $0x130] sm:$0xff]   ;;  %v4891_v51 = vld [vmem:[%s6086_s1 + $0x138] sm:$0xff]   ;;  %v4894_v0 = vld [vmem:[%s6086_s1 + $0x140] sm:$0xff]  }
  0x14   : > { %4150 = vmatpush3.bf16.msra.mxu1 %v4878_v2  ;;  %v5104_v12 = vld [vmem:[%s5095_s20] sm:$0xff]   ;;  %v5107_v13 = vld [vmem:[%s5095_s20 + $0x8] sm:$0x1]  ;;  %v5110_v14 = vld [vmem:[%s5095_s20 + $0xc] sm:$0xff]  }
  0x15   : > { %4342 = vmatpush3.bf16.msra.mxu0 %v4879_v3  ;;  %4151 = vmatprep.subr.bf16.mxu1 %v4880_v4  ;;  %v6092_v15 = vunpack.c.l.bf16 %v5104_v12  ;;  %v6091_v16 = vunpack.c.h.bf16 %v5104_v12  ;;  %v6090_v17 = vunpack.c.l.bf16 %v5107_v13  ;;  %v5116_v18 = vld [vmem:[%s5095_s20 + $0x14] sm:$0x1]  ;;  %v338_v19 = vunpack.c.l.bf16 %v5110_v14  ;;  %v5122_v22 = vld [vmem:[%s5095_s20 + $0x18] sm:$0xff]   ;;  %v5125_v23 = vld [vmem:[%s5095_s20 + $0x20] sm:$0x1] }
  0x16   : > { %4343 = vmatprep.subr.bf16.mxu0 %v4881_v5  ;;  %v339_v20 = vunpack.c.h.bf16 %v5110_v14  ;;  %v340_v21 = vunpack.c.l.bf16 %v5116_v18  ;;  %v341_v32 = vunpack.c.l.bf16 %v5122_v22  ;;  %v342_v33 = vunpack.c.h.bf16 %v5122_v22  ;;  %v5151_v37 = vld [vmem:[%s5095_s20 + $0x24] sm:$0xff]   ;;  %v5156_v41 = vld [vmem:[%s5095_s20 + $0x2c] sm:$0x1]  ;;  %v5164_v45 = vld [vmem:[%s5095_s20 + $0x30] sm:$0xff]  }
  0x17   : > { %v470_v24 = vrot.slane %v6092_v15, 1  ;;  %v471_v25 = vrot.slane %v6091_v16, 1  ;;  %v473_v26 = vrot.slane %v6090_v17, 1  ;;  %v475_v27 = vrot.slane %v338_v19, 1  ;;  %v5173_v50 = vld [vmem:[%s5095_s20 + $0x38] sm:$0x1] }
  0x18   : > { %4152 = vmatpush3.bf16.msra.mxu1 %v4880_v4  ;;  %v476_v30 = vrot.slane %v339_v20, 1  ;;  %v478_v31 = vrot.slane %v340_v21, 1  ;;  %v343_v36 = vunpack.c.l.bf16 %v5125_v23  ;;  %v480_v44 = vrot.slane %v341_v32, 1  ;;  %v5186_v57 = vld [vmem:[%s5095_s20 + $0x3c] sm:$0xff]   ;;  %v5192_v60 = vld [vmem:[%s5095_s20 + $0x44] sm:$0x1] }
  0x19   : > { %4344 = vmatpush3.bf16.msra.mxu0 %v4881_v5  ;;  %4153 = vmatprep.subr.bf16.mxu1 %v4882_v6  ;;  %v472_v34 = vsel %vm469_vm0, %v470_v24, %v471_v25  ;;  %v474_v35 = vsel %vm469_vm0, %v471_v25, %v473_v26  ;;  %v481_v46 = vrot.slane %v342_v33, 1  ;;  %v344_v48 = vunpack.c.l.bf16 %v5151_v37  ;;  %v4895_v24 = vld [vmem:[%s6086_s1 + $0x148] sm:$0xff]   ;;  %v5306_v17 = vld [vmem:[%s5095_s20 + $0x74] sm:$0x1] }
  0x1a   : > { %4345 = vmatprep.subr.bf16.mxu0 %v4883_v7  ;;  %v582_v38 = vpack.c.bf16 %v474_v35, %v472_v34  ;;  %v477_v39 = vsel %vm469_vm0, %v475_v27, %v476_v30  ;;  %v479_v40 = vsel %vm469_vm0, %v476_v30, %v478_v31  ;;  %v483_v47 = vrot.slane %v343_v36, 1  ;;  %v4896_v26 = vld [vmem:[%s6086_s1 + $0x8] sm:$0xff]   ;;  %v5236_v30 = vld [vmem:[%s5095_s20 + $0x54] sm:$0xff]   ;;  %v5239_v31 = vld [vmem:[%s5095_s20 + $0x5c] sm:$0x1] }
  0x1b   : > { %v583_v43 = vpack.c.bf16 %v479_v40, %v477_v39  ;;  %v345_v49 = vunpack.c.h.bf16 %v5151_v37  ;;  %v346_v52 = vunpack.c.l.bf16 %v5156_v41  ;;  %v485_v53 = vrot.slane %v344_v48, 1  ;;  %v5406_v41 = vld [vmem:[%s5095_s20 + $0x98] sm:$0x1] }
  0x1c   : > { %4154 = vmatpush3.bf16.msra.mxu1 %v4882_v6  ;;  %4163 = vmatprep.mubr.bf16.mxu1 %v582_v38  ;;  %v347_v55 = vunpack.c.l.bf16 %v5164_v45  ;;  %v348_v56 = vunpack.c.h.bf16 %v5164_v45  ;;  %v349_v59 = vunpack.c.l.bf16 %v5173_v50  ;;  %v482_v62 = vsel %vm469_vm0, %v480_v44, %v481_v46  ;;  %v4897_v44 = vld [vmem:[%s6086_s1 + $0x150] sm:$0xff]  }
  0x1d   : > { %4346 = vmatpush3.bf16.msra.mxu0 %v4883_v7  ;;  %4155 = vmatprep.subr.bf16.mxu1 %v4884_v8  ;;  %v486_v54 = vrot.slane %v345_v49, 1  ;;  %v488_v58 = vrot.slane %v346_v52, 1  ;;  %v484_v63 = vsel %vm469_vm0, %v481_v46, %v483_v47  ;;  %v350_v1 = vunpack.c.l.bf16 %v5186_v57 }
  0x1e   : > { %4347 = vmatprep.subr.bf16.mxu0 %v4885_v9  ;;  %4355 = vmatprep.mubr.bf16.mxu0 %v583_v43  ;;  %v351_v2 = vunpack.c.h.bf16 %v5186_v57  ;;  %v352_v3 = vunpack.c.l.bf16 %v5192_v60  ;;  %v490_v6 = vrot.slane %v347_v55, 1  ;;  %v491_v7 = vrot.slane %v348_v56, 1 }
  0x1f   : > { %v487_v4 = vsel %vm469_vm0, %v485_v53, %v486_v54  ;;  %v489_v5 = vsel %vm469_vm0, %v486_v54, %v488_v58  ;;  %v495_v27 = vrot.slane %v350_v1, 1  ;;  %v6096_v53 = vunpack.c.l.bf16 %v5239_v31 }
  0x20   : > { %4156 = vmatpush3.bf16.msra.mxu1 %v4884_v8  ;;  %v5211_v8 = vpack.c.bf16 %v484_v63, %v482_v62  ;;  %v5224_v25 = vpack.c.bf16 %v489_v5, %v487_v4  ;;  %v492_v39 = vsel %vm469_vm0, %v490_v6, %v491_v7  ;;  %v5269_v63 = vld [vmem:[%s5095_s20 + $0x60] sm:$0xff]   ;;  %v5279_v6 = vld [vmem:[%s5095_s20 + $0x68] sm:$0x1]  ;;  %v1045_v18 = vrot.slane %v342_v33, 2 }
  0x21   : > { %4348 = vmatpush3.bf16.msra.mxu0 %v4885_v9  ;;  %4157 = vmatprep.subr.bf16.mxu1 %v4886_v10  ;;  %v493_v9 = vrot.slane %v349_v59, 1 }
  0x22   : > { %4349 = vmatprep.subr.bf16.mxu0 %v4887_v11 }
  0x23   : > { %v494_v40 = vsel %vm469_vm0, %v491_v7, %v493_v9  ;;  %v508_v9 = vrot.slane %v6096_v53, 1 }
  0x24   : > { %4158 = vmatpush3.bf16.msra.mxu1 %v4886_v10  ;;  %v5216_v10 = vld [vmem:[%s5095_s20 + $0x48] sm:$0xff]   ;;  %v5260_v54 = vpack.c.bf16 %v494_v40, %v492_v39  ;;  %v4900_v39 = vld [vmem:[%s6086_s1 + $0x160] sm:$0xff]   ;;  %v6095_v40 = vunpack.c.l.bf16 %v5279_v6 }
  0x25   : > { %4350 = vmatpush3.bf16.msra.mxu0 %v4887_v11  ;;  %4159 = vmatprep.subr.bf16.mxu1 %v4888_v28  ;;  %v5219_v11 = vld [vmem:[%s5095_s20 + $0x50] sm:$0x1]  ;;  %v6108_v34 = vunpack.c.l.bf16 %v5216_v10  ;;  %v6105_v35 = vunpack.c.h.bf16 %v5216_v10 }
  0x26   : > { %4351 = vmatprep.subr.bf16.mxu0 %v4889_v29  ;;  %v6099_v38 = vunpack.c.l.bf16 %v5219_v11 }
  0x27   : > { %v500_v58 = vrot.slane %v6108_v34, 1 }
  0x28   : > { %4160 = vmatpush3.bf16.msra.mxu1 %v4888_v28  ;;  %v496_v28 = vrot.slane %v351_v2, 1  ;;  %v503_v62 = vrot.slane %v6099_v38, 1  ;;  %v5372_v38 = vld [vmem:[%s5095_s20 + $0x8c] sm:$0x1] }
  0x29   : > { %4352 = vmatpush3.bf16.msra.mxu0 %v4889_v29  ;;  %4161 = vmatprep.subr.bf16.mxu1 %v4890_v42  ;;  %v498_v29 = vrot.slane %v352_v3, 1 }
  0x2a   : > { %4353 = vmatprep.subr.bf16.mxu0 %v4891_v51  ;;  %v497_v46 = vsel %vm469_vm0, %v495_v27, %v496_v28  ;;  %v6093_v27 = vunpack.c.h.bf16 %v5269_v63 }
  0x2b   : > { %v499_v47 = vsel %vm469_vm0, %v496_v28, %v498_v29 }
  0x2c   : > { %4162 = vmatpush3.bf16.msra.mxu1 %v4890_v42  ;;  %v4899_v42 = vld [vmem:[%s6086_s1 + $0x10] sm:$0xff]   ;;  %v5274_v4 = vpack.c.bf16 %v499_v47, %v497_v46  ;;  %v1039_v46 = vrot.slane %v338_v19, 2  ;;  %v511_v15 = vrot.slane %v6093_v27, 1 }
  0x2d   : > { %4354 = vmatpush3.bf16.msra.mxu0 %v4891_v51  ;;  %4195 = vmatprep.subr.bf16.mxu1 %v4893_v61  ;;  %v6097_v51 = vunpack.c.h.bf16 %v5236_v30  ;;  %v5303_v47 = vld [vmem:[%s5095_s20 + $0x6c] sm:$0xff]  }
  0x2e   : > { %4387 = vmatprep.subr.bf16.mxu0 %v4894_v0  ;;  %v6104_v27 = vunpack.c.h.bf16 %v5303_v47 }
  0x2f   : > { %4164 = vmatmul.mubr.bf16.vlgmr.msra.gmra.mrb[0].mxu1 %v583_v43  ;;  %v6098_v43 = vunpack.c.l.bf16 %v5236_v30  ;;  %v506_v7 = vrot.slane %v6097_v51, 1 }
  0x30   : > { %4356 = vmatmul.mubr.bf16.vlgmr.msra.gmra.mrb[0].mxu0 %v5211_v8  ;;  %4196 = vmatpush3.bf16.msra.mxu1 %v4893_v61  ;;  %v501_v61 = vrot.slane %v6105_v35, 1 }
  0x31   : > { %4388 = vmatpush3.bf16.msra.mxu0 %v4894_v0  ;;  %4167 = vmatprep.mubr.bf16.mxu1 %v5211_v8  ;;  %v4898_v0 = vld [vmem:[%s6086_s1 + $0x158] sm:$0xff]   ;;  %v505_v5 = vrot.slane %v6098_v43, 1  ;;  %v5369_v43 = vld [vmem:[%s5095_s20 + $0x84] sm:$0xff]  }
  0x32   : > { %4389 = vmatprep.subr.bf16.mxu0 %v4895_v24  ;;  %4359 = vmatprep.mubr.bf16.mxu0 %v5224_v25  ;;  %v502_v28 = vsel %vm469_vm0, %v500_v58, %v501_v61  ;;  %v504_v29 = vsel %vm469_vm0, %v501_v61, %v503_v62  ;;  %v5309_v58 = vld [vmem:[%s5095_s20 + $0x78] sm:$0xff]   ;;  %v509_v62 = vsel %vm469_vm0, %v506_v7, %v508_v9  ;;  %v6100_v9 = vunpack.c.l.bf16 %v5303_v47 }
  0x33   : > { %4197 = vmatprep.subr.bf16.mxu1 %v4896_v26  ;;  %v507_v61 = vsel %vm469_vm0, %v505_v5, %v506_v7  ;;  %v5315_v16 = vpack.c.bf16 %v504_v29, %v502_v28  ;;  %v513_v5 = vrot.slane %v6095_v40, 1  ;;  %v1040_v7 = vrot.slane %v339_v20, 2  ;;  %v4901_v28 = vld [vmem:[%s6086_s1 + $0x168] sm:$0xff]   ;;  %v5339_v40 = vld [vmem:[%s5095_s20 + $0x80] sm:$0x1] }
  0x34   : > { %4198 = vmatpush3.bf16.msra.mxu1 %v4896_v26  ;;  %v6094_v26 = vunpack.c.l.bf16 %v5269_v63  ;;  %v5334_v29 = vpack.c.bf16 %v509_v62, %v507_v61  ;;  %v6101_v20 = vunpack.c.l.bf16 %v5309_v58  ;;  %v1047_v61 = vrot.slane %v343_v36, 2 }
  0x35   : > { %4390 = vmatpush3.bf16.msra.mxu0 %v4895_v24  ;;  %4199 = vmatprep.subr.bf16.mxu1 %v4899_v42  ;;  %v4902_v24 = vld [vmem:[%s6086_s1 + $0x18] sm:$0xff]   ;;  %v515_v62 = vrot.slane %v6100_v9, 1  ;;  %v6106_v53 = vunpack.c.l.bf16 %v5339_v40  ;;  %v514_v23 = vsel %vm469_vm0, %v511_v15, %v513_v5  ;;  %v516_v36 = vrot.slane %v6104_v27, 1  ;;  %v5399_v27 = vld [vmem:[%s5095_s20 + $0x90] sm:$0xff]  }
  0x36   : > { %4391 = vmatprep.subr.bf16.mxu0 %v4897_v44  ;;  %v510_v19 = vrot.slane %v6094_v26, 1  ;;  %v6102_v26 = vunpack.c.l.bf16 %v5306_v17  ;;  %v520_v51 = vrot.slane %v6101_v20, 1  ;;  %v1050_v5 = vrot.slane %v345_v49, 2 }
  0x37   : > { %4168 = vmatmul.mubr.bf16.gmra.mrb[4].mxu1 %v5224_v25  ;;  %v1052_v49 = vrot.slane %v346_v52, 2  ;;  %v6113_v35 = vunpack.c.h.bf16 %v5369_v43 }
  0x38   : > { %4360 = vmatmul.mubr.bf16.gmra.mrb[4].mxu0 %v5260_v54  ;;  %4171 = vmatprep.mubr.bf16.mxu1 %v5260_v54  ;;  %v512_v33 = vsel %vm469_vm0, %v510_v19, %v511_v15  ;;  %v518_v19 = vrot.slane %v6102_v26, 1  ;;  %v1049_v15 = vrot.slane %v344_v48, 2  ;;  %v4909_v26 = vld [vmem:[%s6086_s1 + $0x30] sm:$0xff]   ;;  %v523_v48 = vrot.slane %v6106_v53, 1 }
  0x39   : > { %4392 = vmatpush3.bf16.msra.mxu0 %v4897_v44  ;;  %4363 = vmatprep.mubr.bf16.mxu0 %v5274_v4  ;;  %v1044_v44 = vrot.slane %v341_v32, 2  ;;  %v1042_v32 = vrot.slane %v340_v21, 2  ;;  %v6103_v21 = vunpack.c.h.bf16 %v5309_v58  ;;  %v6112_v53 = vunpack.c.l.bf16 %v5372_v38 }
  0x3a   : > { %4393 = vmatprep.subr.bf16.mxu0 %v4898_v0  ;;  %4200 = vmatpush3.bf16.msra.mxu1 %v4899_v42  ;;  %v4905_v42 = vld [vmem:[%s6086_s1 + $0x20] sm:$0xff]   ;;  %v519_v52 = vsel %vm469_vm0, %v516_v36, %v518_v19 }
  0x3b   : > { %4201 = vmatprep.subr.bf16.mxu1 %v4902_v24  ;;  %v1043_v9 = vsel %vm1033_vm1, %v1040_v7, %v1042_v32  ;;  %v521_v20 = vrot.slane %v6103_v21, 1  ;;  %v1046_v32 = vsel %vm1033_vm1, %v1044_v44, %v1045_v18  ;;  %v6107_v21 = vunpack.c.l.bf16 %v5369_v43 }
  0x3d   : > { %4394 = vmatpush3.bf16.msra.mxu0 %v4898_v0  ;;  %v4907_v0 = vld [vmem:[%s6086_s1 + $0x28] sm:$0xff]   ;;  %v522_v44 = vsel %vm469_vm0, %v520_v51, %v521_v20  ;;  %v1053_v51 = vsel %vm1033_vm1, %v1050_v5, %v1052_v49  ;;  %v525_v19 = vrot.slane %v6107_v21, 1 }
  0x3e   : > { %4395 = vmatprep.subr.bf16.mxu0 %v4900_v39  ;;  %4202 = vmatpush3.bf16.msra.mxu1 %v4902_v24  ;;  %v4903_v24 = vld [vmem:[%s6086_s1 + $0x170] sm:$0xff]   ;;  %v5443_v49 = vld [vmem:[%s5095_s20 + $0xa8] sm:$0xff]  }
  0x3f   : > { %4172 = vmatmul.mubr.bf16.gmra.mrb[8].mxu1 %v5274_v4  ;;  %4203 = vmatprep.subr.bf16.mxu1 %v4905_v42 }
  0x40   : > { %4364 = vmatmul.mubr.bf16.gmra.mrb[8].mxu0 %v5315_v16  ;;  %4175 = vmatprep.mubr.bf16.mxu1 %v5315_v16 }
  0x41   : > { %4396 = vmatpush3.bf16.msra.mxu0 %v4900_v39  ;;  %4367 = vmatprep.mubr.bf16.mxu0 %v5334_v29  ;;  %v1041_v39 = vsel %vm1033_vm1, %v1039_v46, %v1040_v7  ;;  %v5385_v46 = vpack.c.bf16 %v514_v23, %v512_v33  ;;  %v517_v33 = vsel %vm469_vm0, %v515_v62, %v516_v36  ;;  %v6110_v62 = vunpack.c.h.bf16 %v5399_v27  ;;  %v5425_v36 = vld [vmem:[%s5095_s20 + $0xa4] sm:$0x1] }
  0x42   : > { %4397 = vmatprep.subr.bf16.mxu0 %v4901_v28  ;;  %4204 = vmatpush3.bf16.msra.mxu1 %v4905_v42  ;;  %v4904_v42 = vld [vmem:[%s6086_s1 + $0x178] sm:$0xff]   ;;  %v5394_v7 = vpack.c.bf16 %v1043_v9, %v1041_v39  ;;  %v1048_v23 = vsel %vm1033_vm1, %v1045_v18, %v1047_v61  ;;  %v1051_v9 = vsel %vm1033_vm1, %v1049_v15, %v1050_v5  ;;  %v4906_v18 = vld [vmem:[%s6086_s1 + $0x180] sm:$0xff]   ;;  %v6111_v61 = vunpack.c.l.bf16 %v5399_v27 }
  0x43   : > { %4205 = vmatprep.subr.bf16.mxu1 %v4907_v0  ;;  %6125 = vst [vmem:[#allocation2_spill] sm:$0xff] %v5385_v46  ;;  %v6109_v39 = vunpack.c.l.bf16 %v5406_v41  ;;  %v5432_v15 = vld [vmem:[%s5095_s20 + $0x9c] sm:$0xff]   ;;  %v5436_v5 = vpack.c.bf16 %v1048_v23, %v1046_v32  ;;  %v5447_v34 = vpack.c.bf16 %v1053_v51, %v1051_v9  ;;  %v1055_v32 = vrot.slane %v348_v56, 2 }
  0x44   : > { %v1057_v23 = vrot.slane %v349_v59, 2  ;;  %v6114_v50 = vunpack.c.l.bf16 %v5432_v15  ;;  %v6115_v59 = vunpack.c.h.bf16 %v5432_v15  ;;  %v6116_v9 = vunpack.c.l.bf16 %v5425_v36  ;;  %v5475_v51 = vld [vmem:[%s6086_s1 + $0x80] sm:$0xff]  }
  0x45   : > { %4398 = vmatpush3.bf16.msra.mxu0 %v4901_v28  ;;  %v4911_v28 = vld [vmem:[%s6086_s1 + $0x38] sm:$0xff]   ;;  %v533_v56 = vrot.slane %v6109_v39, 1 }
  0x46   : > { %4399 = vmatprep.subr.bf16.mxu0 %v4903_v24  ;;  %4206 = vmatpush3.bf16.msra.mxu1 %v4907_v0  ;;  %v524_v0 = vsel %vm469_vm0, %v521_v20, %v523_v48  ;;  %v5434_v20 = vpack.c.bf16 %v519_v52, %v517_v33  ;;  %v526_v48 = vrot.slane %v6113_v35, 1  ;;  %v1054_v33 = vrot.slane %v347_v55, 2 }
  0x47   : > { %4176 = vmatmul.mubr.bf16.gmra.mrb[12].mxu1 %v5334_v29  ;;  %4207 = vmatprep.subr.bf16.mxu1 %v4909_v26  ;;  %v5445_v21 = vpack.c.bf16 %v524_v0, %v522_v44  ;;  %v530_v52 = vrot.slane %v6111_v61, 1  ;;  %v531_v44 = vrot.slane %v6110_v62, 1  ;;  %v1059_v55 = vrot.slane %v350_v1, 2  ;;  %v5470_v0 = vld [vmem:[%s5095_s20 + $0xb0] sm:$0x1] }
  0x48   : > { %4368 = vmatmul.mubr.bf16.gmra.mrb[12].mxu0 %v5385_v46  ;;  %4179 = vmatprep.mubr.bf16.mxu1 %v5385_v46  ;;  %6126 = vst [vmem:[#allocation3_spill] sm:$0xff] %v5434_v20  ;;  %v1060_v1 = vrot.slane %v351_v2, 2  ;;  %v527_v39 = vsel %vm469_vm0, %v525_v19, %v526_v48  ;;  %v1056_v61 = vsel %vm1033_vm1, %v1054_v33, %v1055_v32  ;;  %v536_v33 = vrot.slane %v6115_v59, 1 }
  0x49   : > { %4400 = vmatpush3.bf16.msra.mxu0 %v4903_v24  ;;  %4403 = vmatprep.mubr.bf16.mxu0 %v5394_v7  ;;  %v528_v24 = vrot.slane %v6112_v53, 1  ;;  %6127 = vst [vmem:[#allocation4_spill] sm:$0xff] %v5445_v21  ;;  %v377_v53 = vunpack.c.l.bf16 %v5443_v49  ;;  %v1058_v2 = vsel %vm1033_vm1, %v1055_v32, %v1057_v23  ;;  %v532_v60 = vsel %vm469_vm0, %v530_v52, %v531_v44  ;;  %v5504_v23 = vld [vmem:[%s5095_s20 + $0xb4] sm:$0xff]  }
  0x4a   : > { %4401 = vmatprep.subr.bf16.mxu0 %v4904_v42  ;;  %4208 = vmatpush3.bf16.msra.mxu1 %v4909_v26  ;;  %v4908_v26 = vld [vmem:[%s6086_s1 + $0x188] sm:$0xff]   ;;  %v538_v32 = vrot.slane %v6116_v9, 1  ;;  %v1061_v52 = vsel %vm1033_vm1, %v1059_v55, %v1060_v1  ;;  %v6128_v35 = vunpack.c.l.bf16 %v5216_v10  ;;  %v6130_v9 = vunpack.c.l.bf16 %v5219_v11 }
  0x4b   : > { %4209 = vmatprep.subr.bf16.mxu1 %v4911_v28  ;;  %v529_v62 = vsel %vm469_vm0, %v526_v48, %v528_v24  ;;  %v534_v48 = vsel %vm469_vm0, %v531_v44, %v533_v56  ;;  %v535_v24 = vrot.slane %v6114_v50, 1  ;;  %v6129_v44 = vunpack.c.h.bf16 %v5216_v10  ;;  %v5513_v50 = vld [vmem:[%s5095_s20 + $0xbc] sm:$0x1] }
  0x4c   : > { %v1064_v19 = vrot.slane %v6128_v35, 2  ;;  %v5516_v59 = vpack.c.bf16 %v529_v62, %v527_v39  ;;  %v540_v55 = vrot.slane %v377_v53, 1  ;;  %v6131_v35 = vunpack.c.h.bf16 %v5443_v49 }
  0x4d   : > { %4402 = vmatpush3.bf16.msra.mxu0 %v4904_v42  ;;  %v1062_v42 = vrot.slane %v352_v3, 2  ;;  %v4910_v3 = vld [vmem:[%s6086_s1 + $0x190] sm:$0xff]   ;;  %v1065_v56 = vrot.slane %v6129_v44, 2  ;;  %v6132_v44 = vunpack.c.l.bf16 %v5470_v0  ;;  %v537_v62 = vsel %vm469_vm0, %v535_v24, %v536_v33 }
  0x4e   : > { %4435 = vmatprep.subr.bf16.mxu0 %v4906_v18  ;;  %4210 = vmatpush3.bf16.msra.mxu1 %v4911_v28  ;;  %v1067_v28 = vrot.slane %v6130_v9, 2  ;;  %v539_v11 = vsel %vm469_vm0, %v536_v33, %v538_v32  ;;  %v6133_v39 = vunpack.c.l.bf16 %v5236_v30  ;;  %v6134_v9 = vunpack.c.h.bf16 %v5236_v30 }
  0x4f   : > { %4180 = vmatmul.mubr.bf16.gmra.mrb[16].mxu1 %v5434_v20  ;;  %4243 = vmatprep.subr.bf16.mxu1 %v5475_v51  ;;  %v543_v20 = vrot.slane %v6132_v44, 1  ;;  %v1066_v24 = vsel %vm1033_vm1, %v1064_v19, %v1065_v56  ;;  %v6122_v33 = vunpack.c.h.bf16 %v5504_v23  ;;  %v6123_v32 = vunpack.c.l.bf16 %v5513_v50  ;;  %v4915_v19 = vld [vmem:[%s6086_s1 + $0x1a0] sm:$0xff]  }
  0x50   : > { %4404 = vmatmul.mubr.bf16.vlgmr.msra.gmra.mrb[0].mxu0 %v5436_v5  ;;  %4183 = vmatprep.mubr.bf16.mxu1 %v5445_v21  ;;  %v5522_v21 = vpack.c.bf16 %v1058_v2, %v1056_v61  ;;  %v1069_v61 = vrot.slane %v6133_v39, 2  ;;  %v1070_v2 = vrot.slane %v6134_v9, 2  ;;  %v5554_v44 = vpack.c.bf16 %v539_v11, %v537_v62 }
  0x51   : > { %4436 = vmatpush3.bf16.msra.mxu0 %v4906_v18  ;;  %4407 = vmatprep.mubr.bf16.mxu0 %v5447_v34  ;;  %v1063_v18 = vsel %vm1033_vm1, %v1060_v1, %v1062_v42  ;;  %v5524_v1 = vpack.c.bf16 %v534_v48, %v532_v60  ;;  %v541_v42 = vrot.slane %v6131_v35, 1  ;;  %v6135_v60 = vunpack.c.l.bf16 %v5239_v31 }
  0x52   : > { %4437 = vmatprep.subr.bf16.mxu0 %v4908_v26  ;;  %v5530_v46 = vpack.c.bf16 %v1063_v18, %v1061_v52  ;;  %v6124_v35 = vunpack.c.l.bf16 %v5504_v23  ;;  %v1068_v31 = vsel %vm1033_vm1, %v1065_v56, %v1067_v28  ;;  %v1071_v39 = vsel %vm1033_vm1, %v1069_v61, %v1070_v2 }
  0x53   : > { %v1072_v48 = vrot.slane %v6135_v60, 2  ;;  %v542_v52 = vsel %vm469_vm0, %v540_v55, %v541_v42  ;;  %v544_v18 = vsel %vm469_vm0, %v541_v42, %v543_v20  ;;  %v6136_v56 = vunpack.c.l.bf16 %v5269_v63 }
  0x54   : > { %v545_v28 = vrot.slane %v6124_v35, 1  ;;  %v5565_v20 = vpack.c.bf16 %v1068_v31, %v1066_v24  ;;  %v5567_v42 = vpack.c.bf16 %v544_v18, %v542_v52  ;;  %v548_v62 = vrot.slane %v6123_v32, 1 }
  0x55   : > { %4438 = vmatpush3.bf16.msra.mxu0 %v4908_v26  ;;  %v4912_v26 = vld [vmem:[%s6086_s1 + $0x198] sm:$0xff]   ;;  %v1073_v9 = vsel %vm1033_vm1, %v1070_v2, %v1072_v48  ;;  %v1074_v55 = vrot.slane %v6136_v56, 2  ;;  %v6137_v11 = vunpack.c.h.bf16 %v5269_v63  ;;  %v6138_v2 = vunpack.c.l.bf16 %v5279_v6 }
  0x56   : > { %4439 = vmatprep.subr.bf16.mxu0 %v4910_v3  ;;  %v6139_v48 = vunpack.c.l.bf16 %v5303_v47  ;;  %v6140_v24 = vunpack.c.h.bf16 %v5303_v47  ;;  %v5581_v52 = vpack.c.bf16 %v1073_v9, %v1071_v39  ;;  %v6141_v18 = vunpack.c.l.bf16 %v5306_v17 }
  0x57   : > { %4184 = vmatmul.mubr.bf16.gmra.mrb[20].mxu1 %v5516_v59  ;;  %v1075_v61 = vrot.slane %v6137_v11, 2  ;;  %v1077_v60 = vrot.slane %v6138_v2, 2  ;;  %v4919_v11 = vld [vmem:[%s6086_s1 + $0x1a8] sm:$0xff]   ;;  %v6142_v6 = vunpack.c.l.bf16 %v5104_v12  ;;  %v6143_v32 = vunpack.c.h.bf16 %v5104_v12 }
  0x58   : > { %4408 = vmatmul.mubr.bf16.gmra.mrb[4].mxu0 %v5522_v21  ;;  %4187 = vmatprep.mubr.bf16.mxu1 %v5524_v1  ;;  %v1079_v56 = vrot.slane %v6139_v48, 2  ;;  %v1080_v31 = vrot.slane %v6140_v24, 2  ;;  %v6144_v17 = vunpack.c.l.bf16 %v5107_v13  ;;  %v6146_v13 = vunpack.c.h.bf16 %v5309_v58 }
  0x59   : > { %4411 = vmatprep.mubr.bf16.mxu0 %v5530_v46  ;;  %4440 = vmatpush3.bf16.msra.mxu0 %v4910_v3  ;;  %v546_v3 = vrot.slane %v6122_v33, 1  ;;  %v1082_v33 = vrot.slane %v6141_v18, 2  ;;  %v1034_v2 = vrot.slane %v6142_v6, 2  ;;  %v1035_v48 = vrot.slane %v6143_v32, 2 }
  0x5a   : > { %4441 = vmatprep.subr.bf16.mxu0 %v4912_v26  ;;  %v1037_v9 = vrot.slane %v6144_v17, 2  ;;  %v1076_v24 = vsel %vm1033_vm1, %v1074_v55, %v1075_v61  ;;  %v1078_v18 = vsel %vm1033_vm1, %v1075_v61, %v1077_v60  ;;  %v1081_v32 = vsel %vm1033_vm1, %v1079_v56, %v1080_v31  ;;  %v4923_v55 = vld [vmem:[%s6086_s1 + $0x1b0] sm:$0xff]  }
  0x5b   : > { %v547_v39 = vsel %vm469_vm0, %v545_v28, %v546_v3  ;;  %v5602_v6 = vsel %vm1033_vm1, %v1034_v2, %v1035_v48  ;;  %v6145_v28 = vunpack.c.l.bf16 %v5309_v58  ;;  %v1083_v60 = vsel %vm1033_vm1, %v1080_v31, %v1082_v33 }
  0x5c   : > { %v5614_v61 = vsel %vm1033_vm1, %v1035_v48, %v1037_v9  ;;  %v6147_v2 = vunpack.c.l.bf16 %v5339_v40  ;;  %v6148_v56 = vunpack.c.l.bf16 %v5369_v43  ;;  %v4927_v48 = vld [vmem:[%s6086_s1 + $0x1b8] sm:$0xff]   ;;  %v5630_v9 = vpack.c.bf16 %v1083_v60, %v1081_v32 }
  0x5d   : > { %4442 = vmatpush3.bf16.msra.mxu0 %v4912_v26  ;;  %v549_v26 = vsel %vm469_vm0, %v546_v3, %v548_v62  ;;  %v1084_v3 = vrot.slane %v6145_v28, 2  ;;  %v1085_v62 = vrot.slane %v6146_v13, 2  ;;  %v1146_v28 = vpack.c.bf16 %v5614_v61, %v5602_v6  ;;  %v4948_v6 = vld [vmem:[%s6086_s1 + $0xd0] sm:$0xff]   ;;  %v4954_v61 = vld [vmem:[%s6086_s1 + $0xe0] sm:$0xff]  }
  0x5e   : > { %4443 = vmatprep.subr.bf16.mxu0 %v4915_v19  ;;  %v1087_v17 = vrot.slane %v6147_v2, 2  ;;  %v1089_v35 = vrot.slane %v6148_v56, 2  ;;  %v5625_v13 = vpack.c.bf16 %v1078_v18, %v1076_v24  ;;  %v6149_v40 = vunpack.c.h.bf16 %v5369_v43 }
  0x5f   : > { %4188 = vmatmul.mubr.bf16.gmra.mrb[24].mxu1 %v5554_v44  ;;  %v6150_v31 = vunpack.c.l.bf16 %v5372_v38  ;;  %v5647_v38 = vld [vmem:[%s6086_s1 + $0x1c0] sm:$0xff]   ;;  %v6151_v32 = vunpack.c.l.bf16 %v5399_v27  ;;  %v6154_v56 = vunpack.c.l.bf16 %v5432_v15 }
  0x60   : > { %4412 = vmatmul.mubr.bf16.gmra.mrb[8].mxu0 %v5565_v20  ;;  %4191 = vmatprep.mubr.bf16.mxu1 %v5567_v42  ;;  %v1090_v33 = vrot.slane %v6149_v40, 2 }
  0x61   : > { %4415 = vmatprep.mubr.bf16.mxu0 %v5581_v52  ;;  %4444 = vmatpush3.bf16.msra.mxu0 %v4915_v19  ;;  %v5623_v19 = vpack.c.bf16 %v549_v26, %v547_v39  ;;  %v1092_v2 = vrot.slane %v6150_v31, 2  ;;  %v1086_v39 = vsel %vm1033_vm1, %v1084_v3, %v1085_v62  ;;  %v1088_v26 = vsel %vm1033_vm1, %v1085_v62, %v1087_v17  ;;  %v4918_v17 = vld [vmem:[%s6086_s1 + $0x88] sm:$0xff]  }
  0x62   : > { %4445 = vmatprep.subr.bf16.mxu0 %v4919_v11  ;;  %v5649_v18 = vpack.c.bf16 %v1088_v26, %v1086_v39  ;;  %v1094_v3 = vrot.slane %v6151_v32, 2  ;;  %v6152_v62 = vunpack.c.h.bf16 %v5399_v27  ;;  %v1099_v40 = vrot.slane %v6154_v56, 2 }
  0x63   : > { %v1093_v24 = vsel %vm1033_vm1, %v1090_v33, %v1092_v2  ;;  %v6156_v2 = vunpack.c.l.bf16 %v5425_v36  ;;  %v4922_v36 = vld [vmem:[%s6086_s1 + $0x90] sm:$0xff]   ;;  %v6157_v32 = vunpack.c.h.bf16 %v5443_v49  ;;  %v6159_v56 = vunpack.c.l.bf16 %v5504_v23 }
  0x65   : > { %4446 = vmatpush3.bf16.msra.mxu0 %v4919_v11  ;;  %v1091_v11 = vsel %vm1033_vm1, %v1089_v35, %v1090_v33  ;;  %v6153_v35 = vunpack.c.l.bf16 %v5406_v41  ;;  %v6155_v33 = vunpack.c.h.bf16 %v5432_v15  ;;  %v1102_v39 = vrot.slane %v6156_v2, 2  ;;  %v5701_v2 = vld [vmem:[%s5095_s20 + $0xc0] sm:$0xff]  }
  0x66   : > { %4447 = vmatprep.subr.bf16.mxu0 %v4923_v55 }
  0x67   : > { %4192 = vmatmul.mubr.bf16.gmra.mrb[28].mxu1 %v5623_v19  ;;  %v1097_v60 = vrot.slane %v6153_v35, 2  ;;  %v1100_v31 = vrot.slane %v6155_v33, 2 }
  0x68   : > { %4416 = vmatmul.mubr.bf16.gmra.mrb[12].mxu0 %v5625_v13  ;;  %4211 = vmatprep.mubr.bf16.mxu1 %v5104_v12  ;;  %v5651_v12 = vpack.c.bf16 %v1093_v24, %v1091_v11  ;;  %v1104_v24 = vrot.slane %v377_v53, 2  ;;  %v6161_v53 = vunpack.c.l.bf16 %v5513_v50  ;;  %v384_v50 = vunpack.c.h.bf16 %v5701_v2 }
  0x69   : > { %4419 = vmatprep.mubr.bf16.mxu0 %v5630_v9  ;;  %4448 = vmatpush3.bf16.msra.mxu0 %v4923_v55  ;;  %v1095_v55 = vrot.slane %v6152_v62, 2  ;;  %v1101_v26 = vsel %vm1033_vm1, %v1099_v40, %v1100_v31  ;;  %v1103_v11 = vsel %vm1033_vm1, %v1100_v31, %v1102_v39  ;;  %v1109_v40 = vrot.slane %v6159_v56, 2  ;;  %v331_v39 = vld [vmem:[%s5095_s20 + $0xc8] sm:$0x1] }
  0x6a   : > { %4449 = vmatprep.subr.bf16.mxu0 %v4927_v48  ;;  %v5687_v62 = vpack.c.bf16 %v1103_v11, %v1101_v26  ;;  %v1112_v31 = vrot.slane %v6161_v53, 2  ;;  %v385_v26 = vunpack.c.l.bf16 %v331_v39  ;;  %v4938_v39 = vld [vmem:[%s6086_s1 + $0xb0] sm:$0xff]  }
  0x6b   : > { %v1096_v41 = vsel %vm1033_vm1, %v1094_v3, %v1095_v55  ;;  %v1105_v3 = vrot.slane %v6157_v32, 2 }
  0x6c   : > { %v1685_v53 = vrot.slane %v385_v26, 1 }
  0x6d   : > { %4450 = vmatpush3.bf16.msra.mxu0 %v4927_v48  ;;  %v1098_v48 = vsel %vm1033_vm1, %v1095_v55, %v1097_v60  ;;  %v6158_v55 = vunpack.c.l.bf16 %v5470_v0  ;;  %v4926_v60 = vld [vmem:[%s6086_s1 + $0x98] sm:$0xff]   ;;  %v1106_v0 = vsel %vm1033_vm1, %v1104_v24, %v1105_v3 }
  0x6e   : > { %4483 = vmatprep.subr.bf16.mxu0 %v5647_v38 }
  0x6f   : > { %4212 = vmatmul.mubr.bf16.vlgmr.msra.gmra.mrb[0].mxu1 %v5110_v14  ;;  %v1107_v35 = vrot.slane %v6158_v55, 2  ;;  %v4930_v55 = vld [vmem:[%s6086_s1 + $0xa0] sm:$0xff]  }
  0x70   : > { %4420 = vmatmul.mubr.bf16.gmra.mrb[16].mxu0 %v5649_v18  ;;  %4244 = vmatpush3.bf16.msra.mxu1 %v5475_v51  ;;  %v5681_v51 = vpack.c.bf16 %v1098_v48, %v1096_v41  ;;  %v383_v48 = vunpack.c.l.bf16 %v5701_v2 }
  0x71   : > { %4215 = vmatprep.mubr.bf16.mxu1 %v5122_v22  ;;  %4423 = vmatprep.mubr.bf16.mxu0 %v5651_v12  ;;  %v1108_v41 = vsel %vm1033_vm1, %v1105_v3, %v1107_v35  ;;  %v1951_v35 = vrot.slane %v385_v26, 2  ;;  %v4944_v26 = vld [vmem:[%s6086_s1 + $0xc0] sm:$0xff]  }
  0x72   : > { %4245 = vmatprep.subr.bf16.mxu1 %v4918_v17  ;;  %v5717_v24 = vpack.c.bf16 %v1108_v41, %v1106_v0  ;;  %v1948_v3 = vrot.slane %v383_v48, 2 }
  0x74   : > { %4246 = vmatpush3.bf16.msra.mxu1 %v4918_v17  ;;  %v6160_v17 = vunpack.c.h.bf16 %v5504_v23 }
  0x75   : > { %4247 = vmatprep.subr.bf16.mxu1 %v4922_v36 }
  0x76   : > { %v1110_v33 = vrot.slane %v6160_v17, 2  ;;  %v1682_v17 = vrot.slane %v383_v48, 1 }
  0x77   : > { %4216 = vmatmul.mubr.bf16.gmra.mrb[4].mxu1 %v5151_v37 }
  0x78   : > { %4424 = vmatmul.mubr.bf16.gmra.mrb[20].mxu0 %v5681_v51  ;;  %4219 = vmatprep.mubr.bf16.mxu1 %v5164_v45  ;;  %v1111_v11 = vsel %vm1033_vm1, %v1109_v40, %v1110_v33  ;;  %v1113_v32 = vsel %vm1033_vm1, %v1110_v33, %v1112_v31  ;;  %v4934_v40 = vld [vmem:[%s6086_s1 + $0xa8] sm:$0xff]   ;;  %v1683_v33 = vrot.slane %v384_v50, 1 }
  0x79   : > { %4427 = vmatprep.mubr.bf16.mxu0 %v5687_v62  ;;  %4248 = vmatpush3.bf16.msra.mxu1 %v4922_v36  ;;  %v5719_v56 = vpack.c.bf16 %v1113_v32, %v1111_v11  ;;  %v1949_v36 = vrot.slane %v384_v50, 2  ;;  %v4942_v50 = vld [vmem:[%s6086_s1 + $0xb8] sm:$0xff]   ;;  %v4935_v32 = vld [vmem:[%s6086_s1 + $0x1c8] sm:$0xff]  }
  0x7a   : > { %4249 = vmatprep.subr.bf16.mxu1 %v4926_v60  ;;  %v1684_v0 = vsel %vm469_vm0, %v1682_v17, %v1683_v33  ;;  %v1686_v41 = vsel %vm469_vm0, %v1683_v33, %v1685_v53  ;;  %v4955_v17 = vld [vmem:[%s6086_s1 + $0x200] sm:$0xff]   ;;  %v4946_v33 = vld [vmem:[%s6086_s1 + $0xc8] sm:$0xff]  }
  0x7b   : > { %v1950_v31 = vsel %vm1033_vm1, %v1948_v3, %v1949_v36  ;;  %v5735_v11 = vpack.c.bf16 %v1686_v41, %v1684_v0  ;;  %v4943_v3 = vld [vmem:[%s6086_s1 + $0x1d8] sm:$0xff]   ;;  %v4956_v53 = vld [vmem:[%s6086_s1 + $0xe8] sm:$0xff]  }
  0x7d   : > { %4250 = vmatpush3.bf16.msra.mxu1 %v4926_v60  ;;  %v1952_v60 = vsel %vm1033_vm1, %v1949_v36, %v1951_v35  ;;  %v4947_v36 = vld [vmem:[%s6086_s1 + $0x1e8] sm:$0xff]   ;;  %v4949_v35 = vld [vmem:[%s6086_s1 + $0x1f0] sm:$0xff]  }
  0x7e   : > { %4251 = vmatprep.subr.bf16.mxu1 %v4930_v55  ;;  %v5737_v48 = vpack.c.bf16 %v1952_v60, %v1950_v31  ;;  %v5819_v31 = vld [vmem:[%s5095_s20 + $0xd4] sm:$0x1] }
  0x7f   : > { %4220 = vmatmul.mubr.bf16.gmra.mrb[8].mxu1 %v5186_v57 }
  0x80   : > { %4428 = vmatmul.mubr.bf16.gmra.mrb[24].mxu0 %v5717_v24  ;;  %4223 = vmatprep.mubr.bf16.mxu1 %v5216_v10 }
  0x81   : > { %4431 = vmatprep.mubr.bf16.mxu0 %v5719_v56  ;;  %4252 = vmatpush3.bf16.msra.mxu1 %v4930_v55  ;;  %v4939_v55 = vld [vmem:[%s6086_s1 + $0x1d0] sm:$0xff]  }
  0x82   : > { %4253 = vmatprep.subr.bf16.mxu1 %v4934_v40 }
  0x85   : > { %4254 = vmatpush3.bf16.msra.mxu1 %v4934_v40  ;;  %v4953_v40 = vld [vmem:[%s6086_s1 + $0x1f8] sm:$0xff]  }
  0x86   : > { %4255 = vmatprep.subr.bf16.mxu1 %v4938_v39 }
  0x87   : > { %4224 = vmatmul.mubr.bf16.gmra.mrb[12].mxu1 %v5236_v30 }
  0x88   : > { %4432 = vmatmul.mubr.bf16.gmra.mrb[28].mxu0 %v5737_v48  ;;  %4227 = vmatprep.mubr.bf16.mxu1 %v5269_v63 }
  0x89   : > { %4451 = vmatprep.mubr.bf16.mxu0 %v5122_v22  ;;  %4256 = vmatpush3.bf16.msra.mxu1 %v4938_v39 }
  0x8a   : > { %4257 = vmatprep.subr.bf16.mxu1 %v4942_v50 }
  0x8d   : > { %4258 = vmatpush3.bf16.msra.mxu1 %v4942_v50  ;;  %v388_v50 = vunpack.c.l.bf16 %v5819_v31  ;;  %v4989_v31 = vld [vmem:[%s6086_s1 + $0x128] sm:$0xff]  }
  0x8e   : > { %4291 = vmatprep.subr.bf16.mxu1 %v4944_v26 }
  0x8f   : > { %4228 = vmatmul.mubr.bf16.gmra.mrb[16].mxu1 %v5303_v47 }
  0x90   : > { %4452 = vmatmul.mubr.bf16.vlgmr.msra.gmra.mrb[0].mxu0 %v5151_v37  ;;  %4231 = vmatprep.mubr.bf16.mxu1 %v5309_v58 }
  0x91   : > { %4484 = vmatpush3.bf16.msra.mxu0 %v5647_v38  ;;  %4455 = vmatprep.mubr.bf16.mxu0 %v5164_v45  ;;  %v4945_v38 = vld [vmem:[%s6086_s1 + $0x1e0] sm:$0xff]  }
  0x92   : > { %4485 = vmatprep.subr.bf16.mxu0 %v4935_v32 }
  0x95   : > { %4486 = vmatpush3.bf16.msra.mxu0 %v4935_v32  ;;  %v2745_v32 = vrot.slane %v388_v50, 2 }
  0x96   : > { %4487 = vmatprep.subr.bf16.mxu0 %v4939_v55 }
  0x97   : > { %4232 = vmatmul.mubr.bf16.gmra.mrb[20].mxu1 %v5369_v43 }
  0x98   : > { %4456 = vmatmul.mubr.bf16.gmra.mrb[4].mxu0 %v5186_v57  ;;  %4235 = vmatprep.mubr.bf16.mxu1 %v5399_v27 }
  0x99   : > { %4459 = vmatprep.mubr.bf16.mxu0 %v5216_v10  ;;  %4488 = vmatpush3.bf16.msra.mxu0 %v4939_v55 }
  0x9a   : > { %4489 = vmatprep.subr.bf16.mxu0 %v4943_v3 }
  0x9d   : > { %4490 = vmatpush3.bf16.msra.mxu0 %v4943_v3 }
  0x9e   : > { %4491 = vmatprep.subr.bf16.mxu0 %v4945_v38 }
  0x9f   : > { %4236 = vmatmul.mubr.bf16.gmra.mrb[24].mxu1 %v5432_v15 }
  0xa0   : > { %4460 = vmatmul.mubr.bf16.gmra.mrb[8].mxu0 %v5236_v30  ;;  %4239 = vmatprep.mubr.bf16.mxu1 %v5443_v49 }
  0xa1   : > { %4463 = vmatprep.mubr.bf16.mxu0 %v5269_v63  ;;  %4492 = vmatpush3.bf16.msra.mxu0 %v4945_v38  ;;  %v4960_v38 = vld [vmem:[%s6086_s1 + $0xf8] sm:$0xff]  }
  0xa2   : > { %4493 = vmatprep.subr.bf16.mxu0 %v4947_v36 }
  0xa5   : > { %4494 = vmatpush3.bf16.msra.mxu0 %v4947_v36 }
  0xa6   : > { %4495 = vmatprep.subr.bf16.mxu0 %v4949_v35 }
  0xa7   : > { %4240 = vmatmul.mubr.bf16.gmra.mrb[28].mxu1 %v5504_v23 }
  0xa8   : > { %4464 = vmatmul.mubr.bf16.gmra.mrb[12].mxu0 %v5303_v47  ;;  %4259 = vmatprep.mubr.bf16.mxu1 %v1146_v28  ;;  %v5813_v28 = vld [vmem:[%s5095_s20 + $0xcc] sm:$0xff]  }
  0xa9   : > { %4467 = vmatprep.mubr.bf16.mxu0 %v5309_v58  ;;  %4496 = vmatpush3.bf16.msra.mxu0 %v4949_v35  ;;  %v386_v60 = vunpack.c.l.bf16 %v5813_v28  ;;  %v387_v39 = vunpack.c.h.bf16 %v5813_v28  ;;  %v4957_v35 = vld [vmem:[%s6086_s1 + $0x208] sm:$0xff]  }
  0xaa   : > { %4497 = vmatprep.subr.bf16.mxu0 %v4953_v40 }
  0xab   : > { %v2742_v0 = vrot.slane %v386_v60, 2  ;;  %v2743_v41 = vrot.slane %v387_v39, 2 }
  0xad   : > { %4498 = vmatpush3.bf16.msra.mxu0 %v4953_v40  ;;  %v5838_v55 = vsel %vm1033_vm1, %v2742_v0, %v2743_v41  ;;  %v5841_v3 = vsel %vm1033_vm1, %v2743_v41, %v2745_v32  ;;  %v4984_v40 = vld [vmem:[%s6086_s1 + $0x100] sm:$0xff]  }
  0xae   : > { %4531 = vmatprep.subr.bf16.mxu0 %v4955_v17  ;;  %v2749_v36 = vpack.c.bf16 %v5841_v3, %v5838_v55 }
  0xaf   : > { %4260 = vmatmul.mubr.bf16.vlgmr.msra.gmra.mrb[0].mxu1 %v5394_v7  ;;  %v4951_v7 = vld [vmem:[%s6086_s1 + $0xd8] sm:$0xff]  }
  0xb0   : > { %4468 = vmatmul.mubr.bf16.gmra.mrb[16].mxu0 %v5369_v43  ;;  %4292 = vmatpush3.bf16.msra.mxu1 %v4944_v26  ;;  %v4958_v26 = vld [vmem:[%s6086_s1 + $0xf0] sm:$0xff]  }
  0xb1   : > { %4263 = vmatprep.mubr.bf16.mxu1 %v5436_v5  ;;  %4471 = vmatprep.mubr.bf16.mxu0 %v5399_v27 }
  0xb2   : > { %4293 = vmatprep.subr.bf16.mxu1 %v4946_v33 }
  0xb4   : > { %4294 = vmatpush3.bf16.msra.mxu1 %v4946_v33  ;;  %v4961_v33 = vld [vmem:[%s6086_s1 + $0x218] sm:$0xff]  }
  0xb5   : > { %4295 = vmatprep.subr.bf16.mxu1 %v4948_v6 }
  0xb7   : > { %4264 = vmatmul.mubr.bf16.gmra.mrb[4].mxu1 %v5447_v34 }
  0xb8   : > { %4472 = vmatmul.mubr.bf16.gmra.mrb[20].mxu0 %v5432_v15  ;;  %4267 = vmatprep.mubr.bf16.mxu1 %v5522_v21 }
  0xb9   : > { %4475 = vmatprep.mubr.bf16.mxu0 %v5443_v49  ;;  %4296 = vmatpush3.bf16.msra.mxu1 %v4948_v6  ;;  %v6163_v6 = vld [vmem:[#allocation3_spill] sm:$0xff] }
  0xba   : > { %4297 = vmatprep.subr.bf16.mxu1 %v4951_v7 }
  0xbd   : > { %4298 = vmatpush3.bf16.msra.mxu1 %v4951_v7  ;;  %v4985_v7 = vld [vmem:[%s6086_s1 + $0x108] sm:$0xff]  }
  0xbe   : > { %4299 = vmatprep.subr.bf16.mxu1 %v4954_v61 }
  0xbf   : > { %4268 = vmatmul.mubr.bf16.gmra.mrb[8].mxu1 %v5530_v46 }
  0xc0   : > { %4476 = vmatmul.mubr.bf16.gmra.mrb[24].mxu0 %v5504_v23  ;;  %4271 = vmatprep.mubr.bf16.mxu1 %v5565_v20 }
  0xc1   : > { %4479 = vmatprep.mubr.bf16.mxu0 %v5701_v2  ;;  %4300 = vmatpush3.bf16.msra.mxu1 %v4954_v61  ;;  %v2477_v61 = vrot.slane %v387_v39, 1 }
  0xc2   : > { %4301 = vmatprep.subr.bf16.mxu1 %v4956_v53 }
  0xc5   : > { %4302 = vmatpush3.bf16.msra.mxu1 %v4956_v53 }
  0xc6   : > { %4303 = vmatprep.subr.bf16.mxu1 %v4958_v26 }
  0xc7   : > { %4272 = vmatmul.mubr.bf16.gmra.mrb[12].mxu1 %v5581_v52 }
  0xc8   : > { %4480 = vmatmul.mubr.bf16.gmra.mrb[28].mxu0 %v5813_v28  ;;  %4275 = vmatprep.mubr.bf16.mxu1 %v5625_v13 }
  0xc9   : > { %4499 = vmatprep.mubr.bf16.mxu0 %v5211_v8  ;;  %4304 = vmatpush3.bf16.msra.mxu1 %v4958_v26  ;;  %v4959_v8 = vld [vmem:[%s6086_s1 + $0x210] sm:$0xff]  }
  0xca   : > { %4305 = vmatprep.subr.bf16.mxu1 %v4960_v38 }
  0xcd   : > { %4306 = vmatpush3.bf16.msra.mxu1 %v4960_v38 }
  0xce   : > { %4579 = vmatprep.subr.bf16.mxu1 %v4984_v40 }
  0xcf   : > { %4276 = vmatmul.mubr.bf16.gmra.mrb[16].mxu1 %v5630_v9 }
  0xd0   : > { %4500 = vmatmul.mubr.bf16.vlgmr.msra.gmra.mrb[0].mxu0 %v5224_v25  ;;  %4279 = vmatprep.mubr.bf16.mxu1 %v5649_v18  ;;  %v4962_v25 = vld [vmem:[%s6086_s1 + $0x220] sm:$0xff]  }
  0xd1   : > { %4532 = vmatpush3.bf16.msra.mxu0 %v4955_v17  ;;  %4503 = vmatprep.mubr.bf16.mxu0 %v5260_v54  ;;  %v4963_v54 = vld [vmem:[%s6086_s1 + $0x228] sm:$0xff]   ;;  %v4965_v17 = vld [vmem:[%s6086_s1 + $0x238] sm:$0xff]  }
  0xd2   : > { %4533 = vmatprep.subr.bf16.mxu0 %v4957_v35 }
  0xd5   : > { %4534 = vmatpush3.bf16.msra.mxu0 %v4957_v35 }
  0xd6   : > { %4535 = vmatprep.subr.bf16.mxu0 %v4959_v8 }
  0xd7   : > { %4280 = vmatmul.mubr.bf16.gmra.mrb[20].mxu1 %v5651_v12 }
  0xd8   : > { %4504 = vmatmul.mubr.bf16.gmra.mrb[4].mxu0 %v5274_v4  ;;  %4283 = vmatprep.mubr.bf16.mxu1 %v5681_v51  ;;  %v6162_v4 = vld [vmem:[#allocation2_spill] sm:$0xff] }
  0xd9   : > { %4507 = vmatprep.mubr.bf16.mxu0 %v5315_v16  ;;  %4536 = vmatpush3.bf16.msra.mxu0 %v4959_v8  ;;  %v4964_v16 = vld [vmem:[%s6086_s1 + $0x230] sm:$0xff]  }
  0xda   : > { %4537 = vmatprep.subr.bf16.mxu0 %v4961_v33 }
  0xdd   : > { %4538 = vmatpush3.bf16.msra.mxu0 %v4961_v33 }
  0xde   : > { %4539 = vmatprep.subr.bf16.mxu0 %v4962_v25 }
  0xdf   : > { %4284 = vmatmul.mubr.bf16.gmra.mrb[24].mxu1 %v5687_v62 }
  0xe0   : > { %4508 = vmatmul.mubr.bf16.gmra.mrb[8].mxu0 %v5334_v29  ;;  %4287 = vmatprep.mubr.bf16.mxu1 %v5717_v24  ;;  %v6164_v29 = vld [vmem:[#allocation4_spill] sm:$0xff] }
  0xe1   : > { %4511 = vmatprep.mubr.bf16.mxu0 %v6162_v4  ;;  %4540 = vmatpush3.bf16.msra.mxu0 %v4962_v25  ;;  %v3903_v4 = vld [vmem:[%s5990_s10 + $0x18] sm:$0xff]  }
  0xe2   : > { %4541 = vmatprep.subr.bf16.mxu0 %v4963_v54 }
  0xe5   : > { %4542 = vmatpush3.bf16.msra.mxu0 %v4963_v54 }
  0xe6   : > { %4543 = vmatprep.subr.bf16.mxu0 %v4964_v16 }
  0xe7   : > { %4288 = vmatmul.mubr.bf16.gmra.mrb[28].mxu1 %v5719_v56 }
  0xe8   : > { %4512 = vmatmul.mubr.bf16.gmra.mrb[12].mxu0 %v6163_v6  ;;  %4307 = vmatprep.mubr.bf16.mxu1 %v5110_v14  ;;  %v4986_v14 = vld [vmem:[%s6086_s1 + $0x110] sm:$0xff]  }
  0xe9   : > { %4515 = vmatprep.mubr.bf16.mxu0 %v6164_v29  ;;  %4544 = vmatpush3.bf16.msra.mxu0 %v4964_v16 }
  0xea   : > { %4545 = vmatprep.subr.bf16.mxu0 %v4965_v17 }
  0xed   : > { %4546 = vmatpush3.bf16.msra.mxu0 %v4965_v17 }
  0xef   : > { %4308 = vmatmul.mubr.bf16.vlgmr.msra.gmra.mrb[0].mxu1 %v5122_v22  ;;  %v4987_v22 = vld [vmem:[%s6086_s1 + $0x118] sm:$0xff]  }
  0xf0   : > { %4516 = vmatmul.mubr.bf16.gmra.mrb[16].mxu0 %v5516_v59  ;;  %4587 = vmatpush3.bf16.msra.mxu1 %v4984_v40 }
  0xf1   : > { %4311 = vmatprep.mubr.bf16.mxu1 %v5151_v37  ;;  %4519 = vmatprep.mubr.bf16.mxu0 %v5524_v1  ;;  %v2476_v37 = vrot.slane %v386_v60, 1 }
  0xf2   : > { %4580 = vmatprep.subr.bf16.mxu1 %v4985_v7 }
  0xf3   : > { %v2478_v28 = vsel %vm469_vm0, %v2476_v37, %v2477_v61 }
  0xf4   : > { %4588 = vmatpush3.bf16.msra.mxu1 %v4985_v7  ;;  %v3902_v7 = vld [vmem:[%s5990_s10 + $0x10] sm:$0xff]  }
  0xf5   : > { %4581 = vmatprep.subr.bf16.mxu1 %v4986_v14 }
  0xf7   : > { %4312 = vmatmul.mubr.bf16.gmra.mrb[4].mxu1 %v5164_v45  ;;  %v2479_v45 = vrot.slane %v388_v50, 1 }
  0xf8   : > { %4520 = vmatmul.mubr.bf16.gmra.mrb[20].mxu0 %v5554_v44  ;;  %4315 = vmatprep.mubr.bf16.mxu1 %v5186_v57  ;;  %v4988_v57 = vld [vmem:[%s6086_s1 + $0x120] sm:$0xff]  }
  0xf9   : > { %4523 = vmatprep.mubr.bf16.mxu0 %v5567_v42  ;;  %4589 = vmatpush3.bf16.msra.mxu1 %v4986_v14  ;;  %v2480_v53 = vsel %vm469_vm0, %v2477_v61, %v2479_v45 }
  0xfa   : > { %4582 = vmatprep.subr.bf16.mxu1 %v4987_v22  ;;  %v2483_v60 = vpack.c.bf16 %v2480_v53, %v2478_v28  ;;  %v3771_v28 = vunpack.c.l.bf16 %v3903_v4 }
  0xfd   : > { %4590 = vmatpush3.bf16.msra.mxu1 %v4987_v22 }
  0xfe   : > { %4583 = vmatprep.subr.bf16.mxu1 %v4988_v57 }
  0xff   : > { %4316 = vmatmul.mubr.bf16.gmra.mrb[8].mxu1 %v5216_v10  ;;  %v4990_v10 = vld [vmem:[%s6086_s1 + $0x130] sm:$0xff]  }
 0x100   : > { %4524 = vmatmul.mubr.bf16.gmra.mrb[24].mxu0 %v5623_v19  ;;  %4319 = vmatprep.mubr.bf16.mxu1 %v5236_v30  ;;  %v4991_v30 = vld [vmem:[%s6086_s1 + $0x138] sm:$0xff]  }
 0x101   : > { %4527 = vmatprep.mubr.bf16.mxu0 %v5735_v11  ;;  %4591 = vmatpush3.bf16.msra.mxu1 %v4988_v57 }
 0x102   : > { %4584 = vmatprep.subr.bf16.mxu1 %v4989_v31 }
 0x105   : > { %4592 = vmatpush3.bf16.msra.mxu1 %v4989_v31  ;;  %v3772_v31 = vunpack.c.h.bf16 %v3903_v4 }
 0x106   : > { %4585 = vmatprep.subr.bf16.mxu1 %v4990_v10 }
 0x107   : > { %4320 = vmatmul.mubr.bf16.gmra.mrb[12].mxu1 %v5269_v63 }
 0x108   : > { %4528 = vmatmul.mubr.bf16.gmra.mrb[28].mxu0 %v2483_v60  ;;  %4323 = vmatprep.mubr.bf16.mxu1 %v5303_v47 }
 0x109   : > { %4547 = vmatprep.mubr.bf16.mxu0 %v5436_v5  ;;  %4593 = vmatpush3.bf16.msra.mxu1 %v4990_v10  ;;  %v3767_v10 = vunpack.c.l.bf16 %v3902_v7 }
 0x10a   : > { %4586 = vmatprep.subr.bf16.mxu1 %v4991_v30 }
 0x10d   : > { %4594 = vmatpush3.bf16.msra.mxu1 %v4991_v30 }
 0x10f   : > { %4324 = vmatmul.mubr.bf16.gmra.mrb[16].mxu1 %v5309_v58 }
 0x110   : > { %4548 = vmatmul.mubr.bf16.vlgmr.msra.gmra.mrb[0].mxu0 %v5447_v34  ;;  %4327 = vmatprep.mubr.bf16.mxu1 %v5369_v43 }
 0x111   : > { %4551 = vmatprep.mubr.bf16.mxu0 %v5522_v21 }
 0x117   : > { %4328 = vmatmul.mubr.bf16.gmra.mrb[20].mxu1 %v5399_v27 }
 0x118   : > { %4552 = vmatmul.mubr.bf16.gmra.mrb[4].mxu0 %v5530_v46  ;;  %4331 = vmatprep.mubr.bf16.mxu1 %v5432_v15 }
 0x119   : > { %4555 = vmatprep.mubr.bf16.mxu0 %v5565_v20 }
 0x11f   : > { %4332 = vmatmul.mubr.bf16.gmra.mrb[24].mxu1 %v5443_v49 }
 0x120   : > { %4556 = vmatmul.mubr.bf16.gmra.mrb[8].mxu0 %v5581_v52  ;;  %4335 = vmatprep.mubr.bf16.mxu1 %v5504_v23  ;;  %v5995_v52 = vld [vmem:[%s6087_s2] ss:$0 sm:$0xff] }
 0x121   : > { %4559 = vmatprep.mubr.bf16.mxu0 %v5625_v13 }
 0x127   : > { %4336 = vmatmul.mubr.bf16.gmra.mrb[28].mxu1 %v5701_v2 }
 0x128   : > { %4560 = vmatmul.mubr.bf16.gmra.mrb[12].mxu0 %v5630_v9  ;;  %4371 = vmatprep.mubr.bf16.mxu1 %v6163_v6  ;;  %v3901_v9 = vld [vmem:[%s5990_s10 + $0x8] sm:$0xff]  }
 0x129   : > { %4563 = vmatprep.mubr.bf16.mxu0 %v5649_v18  ;;  %v3763_v39 = vunpack.c.l.bf16 %v3901_v9  ;;  %v3764_v41 = vunpack.c.h.bf16 %v3901_v9 }
 0x12f   : > { %4372 = vmatmul.mubr.bf16.vlgmr.msra.gmra.mrb[16].mxu1 %v6164_v29 }
 0x130   : > { %4564 = vmatmul.mubr.bf16.gmra.mrb[16].mxu0 %v5651_v12  ;;  %4375 = vmatprep.mubr.bf16.mxu1 %v5516_v59 }
 0x131   : > { %4567 = vmatprep.mubr.bf16.mxu0 %v5681_v51 }
 0x137   : > { %4376 = vmatmul.mubr.bf16.gmra.mrb[20].mxu1 %v5524_v1 }
 0x138   : > { %4568 = vmatmul.mubr.bf16.gmra.mrb[20].mxu0 %v5687_v62  ;;  %4379 = vmatprep.mubr.bf16.mxu1 %v5554_v44  ;;  %v3758_v62 = vld [vmem:[%s5990_s10] sm:$0xff]  }
 0x139   : > { %4571 = vmatprep.mubr.bf16.mxu0 %v5717_v24  ;;  %v3759_v26 = vunpack.c.l.bf16 %v3758_v62  ;;  %v3760_v55 = vunpack.c.h.bf16 %v3758_v62  ;;  %v3904_v62 = vld [vmem:[%s5990_s10 + $0x20] sm:$0xff]  }
 0x13f   : > { %4380 = vmatmul.mubr.bf16.gmra.mrb[24].mxu1 %v5567_v42 }
 0x140   : > { %4572 = vmatmul.mubr.bf16.gmra.mrb[24].mxu0 %v5719_v56  ;;  %4383 = vmatprep.mubr.bf16.mxu1 %v5623_v19 }
 0x141   : > { %4575 = vmatprep.mubr.bf16.mxu0 %v5737_v48 }
 0x147   : > { %4384 = vmatmul.mubr.bf16.gmra.mrb[28].mxu1 %v5735_v11 }
 0x148   : > { %4576 = vmatmul.mubr.bf16.gmra.mrb[28].mxu0 %v2749_v36 }
 0x1c2   : > { %v4309_v34 = vpop.f32.mrb[0].mxu1 }
 0x1c3   : > { %v1520_v43 = vpop.f32.mrb[1].mxu1 }
 0x1c4   : > { %v4310_v63 = vpop.f32.mrb[2].mxu1 }
 0x1c5   : > { %v1523_v27 = vpop.f32.mrb[3].mxu1 }
 0x1ca   : > { %v4313_v47 = vpop.f32.mrb[4].mxu1 }
 0x1cb   : > { %v1536_v58 = vpop.f32.mrb[5].mxu1 }
 0x1cc   : > { %v4314_v21 = vpop.f32.mrb[6].mxu1 }
 0x1cd   : > { %v1539_v46 = vpop.f32.mrb[7].mxu1 }
 0x1d2   : > { %v5968_v15 = vpop.f32.mrb[8].mxu1 }
 0x1d3   : > { %v5970_v5 = vpop.f32.mrb[9].mxu1 }
 0x1d4   : > { %v5972_v49 = vpop.f32.mrb[10].mxu1 }
 0x1d5   : > { %v5974_v59 = vpop.f32.mrb[11].mxu1 }
 0x1da   : > { %v5976_v23 = vpop.f32.mrb[12].mxu1 }
 0x1db   : > { %v5978_v1 = vpop.f32.mrb[13].mxu1 }
 0x1dc   : > { %v5980_v44 = vpop.f32.mrb[14].mxu1 }
 0x1dd   : > { %v5982_v20 = vpop.f32.mrb[15].mxu1 }
 0x1e3   : > { %v4549_v42 = vpop.f32.mrb[0].mxu0 }
 0x1e4   : > { %v4595_v19 = vadd.f32 %v4549_v42, %v4309_v34  ;;  %v2849_v13 = vpop.f32.mrb[1].mxu0  ;;  %v3768_v34 = vunpack.c.h.bf16 %v3902_v7 }
 0x1e5   : > { %v4596_v18 = vadd.f32 %v2849_v13, %v1520_v43  ;;  %v4550_v12 = vpop.f32.mrb[2].mxu0  ;;  %v3905_v13 = vld [vmem:[%s5990_s10 + $0x28] sm:$0xff]  }
 0x1e6   : > { %v3017_v51 = vadd.f32 %v4595_v19, %v5995_v52  ;;  %v4597_v2 = vadd.f32 %v4550_v12, %v4310_v63  ;;  %v2852_v24 = vpop.f32.mrb[3].mxu0 }
 0x1e7   : > { %v3015_v56 = vadd.f32 %v4596_v18, %v5995_v52  ;;  %v4598_v11 = vadd.f32 %v2852_v24, %v1523_v27 }
 0x1e8   : > { %v3049_v48 = vmax.f32 %v3017_v51, 0.0  ;;  %v3018_v0 = vadd.f32 %v4597_v2, %v5995_v52 }
 0x1e9   : > { %v3047_v50 = vmax.f32 %v3015_v56, 0.0  ;;  %v3016_v32 = vadd.f32 %v4598_v11, %v5995_v52 }
 0x1ea   : > { %v3050_v3 = vmax.f32 %v3018_v0, 0.0  ;;  %v3145_v35 = vadd.f32 %v3763_v39, %v3049_v48  ;;  %v3779_v39 = vunpack.c.l.bf16 %v3905_v13 }
 0x1eb   : > { %v3048_v38 = vmax.f32 %v3016_v32, 0.0  ;;  %v4553_v36 = vpop.f32.mrb[4].mxu0  ;;  %v3143_v25 = vadd.f32 %v3759_v26, %v3047_v50  ;;  %v3775_v50 = vunpack.c.l.bf16 %v3904_v62 }
 0x1ec   : > { %v3146_v40 = vadd.f32 %v3764_v41, %v3050_v3  ;;  %v4599_v8 = vadd.f32 %v4553_v36, %v4313_v47  ;;  %v2865_v33 = vpop.f32.mrb[5].mxu0 }
 0x1ed   : > { %v3144_v54 = vadd.f32 %v3760_v55, %v3048_v38  ;;  %v4600_v16 = vadd.f32 %v2865_v33, %v1536_v58  ;;  %v4554_v17 = vpop.f32.mrb[6].mxu0  ;;  %v3907_v33 = vld [vmem:[%s5990_s10 + $0x38] sm:$0xff]  }
 0x1ee   : > { %v3829_v6 = vpack.c.bf16 %v3146_v40, %v3145_v35  ;;  %v3021_v29 = vadd.f32 %v4599_v8, %v5995_v52  ;;  %v4601_v14 = vadd.f32 %v4554_v17, %v4314_v21  ;;  %v2868_v22 = vpop.f32.mrb[7].mxu0  ;;  %v3906_v17 = vld [vmem:[%s5990_s10 + $0x30] sm:$0xff]  }
 0x1ef   : > { %v3824_v37 = vpack.c.bf16 %v3144_v54, %v3143_v25  ;;  %v3019_v61 = vadd.f32 %v4600_v16, %v5995_v52  ;;  %v4602_v45 = vadd.f32 %v2868_v22, %v1539_v46 }
 0x1f0   : > { %3916 = vst [vmem:[%s6008_s19 + $0x8] sm:$0xff] %v3829_v6   ;;  %v3053_v57 = vmax.f32 %v3021_v29, 0.0  ;;  %v3022_v53 = vadd.f32 %v4601_v14, %v5995_v52 }
 0x1f1   : > { %3825 = vst [vmem:[%s6008_s19] sm:$0xff] %v3824_v37   ;;  %v3051_v60 = vmax.f32 %v3019_v61, 0.0  ;;  %v3020_v30 = vadd.f32 %v4602_v45, %v5995_v52  ;;  %v3787_v37 = vunpack.c.l.bf16 %v3907_v33  ;;  %v3788_v45 = vunpack.c.h.bf16 %v3907_v33  ;;  %v3911_v33 = vld [vmem:[%s5990_s10 + $0x58] sm:$0xff]  }
 0x1f2   : > { %v3054_v43 = vmax.f32 %v3022_v53, 0.0  ;;  %v3149_v47 = vadd.f32 %v3771_v28, %v3053_v57  ;;  %v3783_v57 = vunpack.c.l.bf16 %v3906_v17  ;;  %v3784_v53 = vunpack.c.h.bf16 %v3906_v17 }
 0x1f3   : > { %v3052_v63 = vmax.f32 %v3020_v30, 0.0  ;;  %v4557_v27 = vpop.f32.mrb[8].mxu0  ;;  %v3147_v42 = vadd.f32 %v3767_v10, %v3051_v60 }
 0x1f4   : > { %v3150_v58 = vadd.f32 %v3772_v31, %v3054_v43  ;;  %v4603_v21 = vadd.f32 %v4557_v27, %v5968_v15  ;;  %v2881_v46 = vpop.f32.mrb[9].mxu0 }
 0x1f5   : > { %v3148_v19 = vadd.f32 %v3768_v34, %v3052_v63  ;;  %v4604_v9 = vadd.f32 %v2881_v46, %v5970_v5  ;;  %v4558_v18 = vpop.f32.mrb[10].mxu0  ;;  %v3780_v5 = vunpack.c.h.bf16 %v3905_v13 }
 0x1f6   : > { %v3839_v12 = vpack.c.bf16 %v3150_v58, %v3149_v47  ;;  %v3025_v51 = vadd.f32 %v4603_v21, %v5995_v52  ;;  %v4605_v2 = vadd.f32 %v4558_v18, %v5972_v49  ;;  %v2884_v24 = vpop.f32.mrb[11].mxu0  ;;  %v3776_v49 = vunpack.c.h.bf16 %v3904_v62  ;;  %v3909_v21 = vld [vmem:[%s5990_s10 + $0x48] sm:$0xff]   ;;  %v3908_v18 = vld [vmem:[%s5990_s10 + $0x40] sm:$0xff]  }
 0x1f7   : > { %v3834_v56 = vpack.c.bf16 %v3148_v19, %v3147_v42  ;;  %v3023_v11 = vadd.f32 %v4604_v9, %v5995_v52  ;;  %v4606_v15 = vadd.f32 %v2884_v24, %v5974_v59 }
 0x1f8   : > { %3918 = vst [vmem:[%s6008_s19 + $0x18] sm:$0xff] %v3839_v12   ;;  %v3057_v48 = vmax.f32 %v3025_v51, 0.0  ;;  %v3026_v0 = vadd.f32 %v4605_v2, %v5995_v52 }
 0x1f9   : > { %3917 = vst [vmem:[%s6008_s19 + $0x10] sm:$0xff] %v3834_v56   ;;  %v3055_v41 = vmax.f32 %v3023_v11, 0.0  ;;  %v3024_v26 = vadd.f32 %v4606_v15, %v5995_v52  ;;  %v3795_v11 = vunpack.c.l.bf16 %v3909_v21 }
 0x1fa   : > { %v3058_v32 = vmax.f32 %v3026_v0, 0.0  ;;  %v3153_v38 = vadd.f32 %v3779_v39, %v3057_v48  ;;  %v3796_v48 = vunpack.c.h.bf16 %v3909_v21  ;;  %v3791_v0 = vunpack.c.l.bf16 %v3908_v18 }
 0x1fb   : > { %v3056_v55 = vmax.f32 %v3024_v26, 0.0  ;;  %v4561_v3 = vpop.f32.mrb[12].mxu0  ;;  %v3151_v40 = vadd.f32 %v3775_v50, %v3055_v41  ;;  %v3792_v41 = vunpack.c.h.bf16 %v3908_v18 }
 0x1fc   : > { %v3154_v36 = vadd.f32 %v3780_v5, %v3058_v32  ;;  %v4607_v59 = vadd.f32 %v4561_v3, %v5976_v23  ;;  %v2897_v35 = vpop.f32.mrb[13].mxu0 }
 0x1fd   : > { %v3152_v8 = vadd.f32 %v3776_v49, %v3056_v55  ;;  %v4608_v25 = vadd.f32 %v2897_v35, %v5978_v1  ;;  %v4562_v54 = vpop.f32.mrb[14].mxu0 }
 0x1fe   : > { %v3849_v4 = vpack.c.bf16 %v3154_v36, %v3153_v38  ;;  %v3029_v16 = vadd.f32 %v4607_v59, %v5995_v52  ;;  %v4609_v6 = vadd.f32 %v4562_v54, %v5980_v44  ;;  %v2900_v29 = vpop.f32.mrb[15].mxu0 }
 0x1ff   : > { %v3844_v7 = vpack.c.bf16 %v3152_v8, %v3151_v40  ;;  %v3027_v14 = vadd.f32 %v4608_v25, %v5995_v52  ;;  %v4610_v23 = vadd.f32 %v2900_v29, %v5982_v20 }
 0x200   : > { %3920 = vst [vmem:[%s6008_s19 + $0x28] sm:$0xff] %v3849_v4   ;;  %v3061_v22 = vmax.f32 %v3029_v16, 0.0  ;;  %v3030_v61 = vadd.f32 %v4609_v6, %v5995_v52  ;;  %v3910_v6 = vld [vmem:[%s5990_s10 + $0x50] sm:$0xff]  }
 0x201   : > { %3919 = vst [vmem:[%s6008_s19 + $0x20] sm:$0xff] %v3844_v7   ;;  %v3059_v1 = vmax.f32 %v3027_v14, 0.0  ;;  %v3028_v28 = vadd.f32 %v4610_v23, %v5995_v52 }
 0x202   : > { %v3062_v44 = vmax.f32 %v3030_v61, 0.0  ;;  %v4373_v31 = vpop.f32.mrb[16].mxu1  ;;  %v3157_v20 = vadd.f32 %v3787_v37, %v3061_v22  ;;  %v3803_v61 = vunpack.c.l.bf16 %v3911_v33 }
 0x203   : > { %v3060_v60 = vmax.f32 %v3028_v28, 0.0  ;;  %v4565_v10 = vpop.f32.mrb[16].mxu0  ;;  %v1853_v30 = vpop.f32.mrb[17].mxu1  ;;  %v3155_v47 = vadd.f32 %v3783_v57, %v3059_v1  ;;  %v3804_v1 = vunpack.c.h.bf16 %v3911_v33  ;;  %v3799_v28 = vunpack.c.l.bf16 %v3910_v6 }
 0x204   : > { %v3158_v34 = vadd.f32 %v3788_v45, %v3062_v44  ;;  %v4611_v43 = vadd.f32 %v4565_v10, %v4373_v31  ;;  %v2913_v63 = vpop.f32.mrb[17].mxu0  ;;  %v4374_v27 = vpop.f32.mrb[18].mxu1  ;;  %v3800_v44 = vunpack.c.h.bf16 %v3910_v6 }
 0x205   : > { %v3156_v58 = vadd.f32 %v3784_v53, %v3060_v60  ;;  %v4612_v46 = vadd.f32 %v2913_v63, %v1853_v30  ;;  %v4566_v42 = vpop.f32.mrb[18].mxu0  ;;  %v1856_v19 = vpop.f32.mrb[19].mxu1 }
 0x206   : > { %v3859_v13 = vpack.c.bf16 %v3158_v34, %v3157_v20  ;;  %v3033_v9 = vadd.f32 %v4611_v43, %v5995_v52  ;;  %v4613_v12 = vadd.f32 %v4566_v42, %v4374_v27  ;;  %v2916_v51 = vpop.f32.mrb[19].mxu0 }
 0x207   : > { %v3854_v62 = vpack.c.bf16 %v3156_v58, %v3155_v47  ;;  %v3031_v2 = vadd.f32 %v4612_v46, %v5995_v52  ;;  %v4614_v24 = vadd.f32 %v2916_v51, %v1856_v19  ;;  %v3913_v46 = vld [vmem:[%s5990_s10 + $0x68] sm:$0xff]  }
 0x208   : > { %3922 = vst [vmem:[%s6008_s19 + $0x38] sm:$0xff] %v3859_v13   ;;  %v3065_v56 = vmax.f32 %v3033_v9, 0.0  ;;  %v3034_v15 = vadd.f32 %v4613_v12, %v5995_v52  ;;  %v3912_v12 = vld [vmem:[%s5990_s10 + $0x60] sm:$0xff]  }
 0x209   : > { %3921 = vst [vmem:[%s6008_s19 + $0x30] sm:$0xff] %v3854_v62   ;;  %v3063_v39 = vmax.f32 %v3031_v2, 0.0  ;;  %v3032_v5 = vadd.f32 %v4614_v24, %v5995_v52 }
 0x20a   : > { %v3066_v50 = vmax.f32 %v3034_v15, 0.0  ;;  %v4377_v26 = vpop.f32.mrb[20].mxu1  ;;  %v3161_v3 = vadd.f32 %v3795_v11, %v3065_v56  ;;  %v3811_v15 = vunpack.c.l.bf16 %v3913_v46 }
 0x20b   : > { %v3064_v49 = vmax.f32 %v3032_v5, 0.0  ;;  %v4569_v32 = vpop.f32.mrb[20].mxu0  ;;  %v1869_v55 = vpop.f32.mrb[21].mxu1  ;;  %v3159_v40 = vadd.f32 %v3791_v0, %v3063_v39  ;;  %v3812_v39 = vunpack.c.h.bf16 %v3913_v46  ;;  %v3807_v5 = vunpack.c.l.bf16 %v3912_v12 }
 0x20c   : > { %v3162_v38 = vadd.f32 %v3796_v48, %v3066_v50  ;;  %v4615_v36 = vadd.f32 %v4569_v32, %v4377_v26  ;;  %v2929_v59 = vpop.f32.mrb[21].mxu0  ;;  %v4378_v35 = vpop.f32.mrb[22].mxu1  ;;  %v3808_v50 = vunpack.c.h.bf16 %v3912_v12 }
 0x20d   : > { %v3160_v8 = vadd.f32 %v3792_v41, %v3064_v49  ;;  %v4616_v25 = vadd.f32 %v2929_v59, %v1869_v55  ;;  %v4570_v54 = vpop.f32.mrb[22].mxu0  ;;  %v1872_v4 = vpop.f32.mrb[23].mxu1 }
 0x20e   : > { %v3869_v16 = vpack.c.bf16 %v3162_v38, %v3161_v3  ;;  %v3037_v17 = vadd.f32 %v4615_v36, %v5995_v52  ;;  %v4617_v29 = vadd.f32 %v4570_v54, %v4378_v35  ;;  %v2932_v7 = vpop.f32.mrb[23].mxu0 }
 0x20f   : > { %v3864_v14 = vpack.c.bf16 %v3160_v8, %v3159_v40  ;;  %v3035_v23 = vadd.f32 %v4616_v25, %v5995_v52  ;;  %v4618_v22 = vadd.f32 %v2932_v7, %v1872_v4  ;;  %v3915_v25 = vld [vmem:[%s5990_s10 + $0x78] sm:$0xff]  }
 0x210   : > { %3924 = vst [vmem:[%s6008_s19 + $0x48] sm:$0xff] %v3869_v16   ;;  %v3069_v37 = vmax.f32 %v3037_v17, 0.0  ;;  %v3038_v45 = vadd.f32 %v4617_v29, %v5995_v52  ;;  %v3914_v29 = vld [vmem:[%s5990_s10 + $0x70] sm:$0xff]  }
 0x211   : > { %3923 = vst [vmem:[%s6008_s19 + $0x40] sm:$0xff] %v3864_v14   ;;  %v3067_v57 = vmax.f32 %v3035_v23, 0.0  ;;  %v3036_v53 = vadd.f32 %v4618_v22, %v5995_v52 }
 0x212   : > { %v3070_v31 = vmax.f32 %v3038_v45, 0.0  ;;  %v4381_v60 = vpop.f32.mrb[24].mxu1  ;;  %v3165_v34 = vadd.f32 %v3803_v61, %v3069_v37  ;;  %v3819_v45 = vunpack.c.l.bf16 %v3915_v25 }
 0x213   : > { %v3068_v10 = vmax.f32 %v3036_v53, 0.0  ;;  %v4573_v30 = vpop.f32.mrb[24].mxu0  ;;  %v1885_v20 = vpop.f32.mrb[25].mxu1  ;;  %v3163_v58 = vadd.f32 %v3799_v28, %v3067_v57  ;;  %v3820_v57 = vunpack.c.h.bf16 %v3915_v25  ;;  %v3815_v53 = vunpack.c.l.bf16 %v3914_v29 }
 0x214   : > { %v3166_v43 = vadd.f32 %v3804_v1, %v3070_v31  ;;  %v4619_v63 = vadd.f32 %v4573_v30, %v4381_v60  ;;  %v2945_v27 = vpop.f32.mrb[25].mxu0  ;;  %v4382_v47 = vpop.f32.mrb[26].mxu1  ;;  %v3816_v31 = vunpack.c.h.bf16 %v3914_v29 }
 0x215   : > { %v3164_v21 = vadd.f32 %v3800_v44, %v3068_v10  ;;  %v4620_v42 = vadd.f32 %v2945_v27, %v1885_v20  ;;  %v4574_v19 = vpop.f32.mrb[26].mxu0  ;;  %v1888_v13 = vpop.f32.mrb[27].mxu1 }
 0x216   : > { %v3879_v9 = vpack.c.bf16 %v3166_v43, %v3165_v34  ;;  %v3041_v18 = vadd.f32 %v4619_v63, %v5995_v52  ;;  %v4621_v51 = vadd.f32 %v4574_v19, %v4382_v47  ;;  %v2948_v62 = vpop.f32.mrb[27].mxu0 }
 0x217   : > { %v3874_v2 = vpack.c.bf16 %v3164_v21, %v3163_v58  ;;  %v3039_v24 = vadd.f32 %v4620_v42, %v5995_v52  ;;  %v4622_v56 = vadd.f32 %v2948_v62, %v1888_v13 }
 0x218   : > { %3926 = vst [vmem:[%s6008_s19 + $0x58] sm:$0xff] %v3879_v9   ;;  %v3073_v11 = vmax.f32 %v3041_v18, 0.0  ;;  %v3042_v48 = vadd.f32 %v4621_v51, %v5995_v52 }
 0x219   : > { %3925 = vst [vmem:[%s6008_s19 + $0x50] sm:$0xff] %v3874_v2   ;;  %v3071_v0 = vmax.f32 %v3039_v24, 0.0  ;;  %v3040_v41 = vadd.f32 %v4622_v56, %v5995_v52 }
 0x21a   : > { %v3074_v26 = vmax.f32 %v3042_v48, 0.0  ;;  %v4385_v49 = vpop.f32.mrb[28].mxu1  ;;  %v3169_v38 = vadd.f32 %v3811_v15, %v3073_v11 }
 0x21b   : > { %v3072_v32 = vmax.f32 %v3040_v41, 0.0  ;;  %v4577_v55 = vpop.f32.mrb[28].mxu0  ;;  %v1901_v3 = vpop.f32.mrb[29].mxu1  ;;  %v3167_v8 = vadd.f32 %v3807_v5, %v3071_v0 }
 0x21c   : > { %v3170_v36 = vadd.f32 %v3812_v39, %v3074_v26  ;;  %v4623_v59 = vadd.f32 %v4577_v55, %v4385_v49  ;;  %v2961_v35 = vpop.f32.mrb[29].mxu0  ;;  %v4386_v40 = vpop.f32.mrb[30].mxu1 }
 0x21d   : > { %v3168_v33 = vadd.f32 %v3808_v50, %v3072_v32  ;;  %v4624_v54 = vadd.f32 %v2961_v35, %v1901_v3  ;;  %v4578_v4 = vpop.f32.mrb[30].mxu0  ;;  %v1904_v16 = vpop.f32.mrb[31].mxu1 }
 0x21e   : > { %v3889_v17 = vpack.c.bf16 %v3170_v36, %v3169_v38  ;;  %v3045_v6 = vadd.f32 %v4623_v59, %v5995_v52  ;;  %v4625_v7 = vadd.f32 %v4578_v4, %v4386_v40  ;;  %v2964_v14 = vpop.f32.mrb[31].mxu0 }
 0x21f   : > { %v3884_v23 = vpack.c.bf16 %v3168_v33, %v3167_v8  ;;  %v3043_v22 = vadd.f32 %v4624_v54, %v5995_v52  ;;  %v4626_v37 = vadd.f32 %v2964_v14, %v1904_v16 }
 0x220   : > { %3928 = vst [vmem:[%s6008_s19 + $0x68] sm:$0xff] %v3889_v17   ;;  %v3077_v61 = vmax.f32 %v3045_v6, 0.0  ;;  %v3046_v1 = vadd.f32 %v4625_v7, %v5995_v52 }
 0x221   : > { %3927 = vst [vmem:[%s6008_s19 + $0x60] sm:$0xff] %v3884_v23   ;;  %v3075_v28 = vmax.f32 %v3043_v22, 0.0  ;;  %v3044_v44 = vadd.f32 %v4626_v37, %v5995_v52 }
 0x222   : > { %v3078_v60 = vmax.f32 %v3046_v1, 0.0  ;;  %v3173_v30 = vadd.f32 %v3819_v45, %v3077_v61 }
 0x223   : > { %v3076_v10 = vmax.f32 %v3044_v44, 0.0  ;;  %v3171_v34 = vadd.f32 %v3815_v53, %v3075_v28 }
 0x224   : > { %v3174_v20 = vadd.f32 %v3820_v57, %v3078_v60 }
 0x225   : > { %v3172_v43 = vadd.f32 %v3816_v31, %v3076_v10 }
 0x226   : > { %v3899_v63 = vpack.c.bf16 %v3174_v20, %v3173_v30 }
 0x227   : > { %v3894_v27 = vpack.c.bf16 %v3172_v43, %v3171_v34 }
 0x228   : > { %3930 = vst [vmem:[%s6008_s19 + $0x78] sm:$0xff] %v3899_v63  }
 0x229   : > { %3929 = vst [vmem:[%s6008_s19 + $0x70] sm:$0xff] %v3894_v27  }
 0x22a PF: > { %s14_s17 = sadd.s32 1, %s5014_s17   ;;  %s6165_s15 = smov %s5010_s16 }
 0x22b   : > { %p11_p5 = scmp.ge.s32.totalorder %s14_s17, 4   ;;  %s6166_s16 = smov %s6168_s18 }
 0x22d   :  { %13 = sbr.rel (!%p11_p5) target bundleno = 2 (0x2), region = 83 }

// kernel: csp_stack_rep_forward.7
= control target key start
LH: loop header
LB: loop body
LE: loop exit
PB: predicated region body
PF: predicated region fallthrough
CT: control target
= control target key end

     0   :  { %s4782_s12 = smov 0   ;;  %s4784_s13 = smov 0   ;;  %s5789_s0 = inlined_call_operand.vmem [shape: bf16[2,18,18,128], index: 0, kind: input, shape index: {}]   ;;  %s5790_s1 = inlined_call_operand.vmem [shape: bf16[9,128,128], index: 1, kind: input, shape index: {}]   ;;  %s5791_s2 = inlined_call_operand.vmem [shape: f32[1,128], index: 2, kind: input, shape index: {}]   ;;  %s5792_s3 = inlined_call_operand.vmem [shape: bf16[2,16,16,128], index: 3, kind: output, shape index: {}]  }
   0x1   :  { %s4786_s14 = smov 0  }
   0x2 LB: > { %s25_s15 = sadd.s32 1, %s4756_s13  ;;  %p3292_p0 = scmp.ge.s32.totalorder %s4760_s14, 1  ;;  %s4760_s14 = sphi %s4786_s14, %s13_s14   ;;  %s4756_s13 = sphi %s4784_s13, %s5869_s13   ;;  %s4752_s12 = sphi %s4782_s12, %s5868_s12  }
   0x3   : > { %p27_p1 = scmp.ge.s32.totalorder %s25_s15, 2  ;;  %p168_p2 = scmp.lt.s32.totalorder %s4760_s14, 3 }
   0x5   : > { %s5871_s15 = smov (%p27_p1, %s25_s15), 0  ;;  %p169_p3 = pnand %p3292_p0, %p168_p2 }
   0x7   : > { %172 = sbr.rel (%p169_p3) target bundleno = 552 (0x228), region = 32 }
   0xe   : > { %v4622_v0 = vld [vmem:[%s5790_s1 + $0x40] sm:$0xff]   ;;  %p202_p4 = scmp.lt.s32.totalorder %s4752_s12, 1  ;;  %v4624_v2 = vld [vmem:[%s5790_s1 + $0x48] sm:$0xff]   ;;  %v4626_v4 = vld [vmem:[%s5790_s1 + $0x50] sm:$0xff]   ;;  %vm411_vm0 = vcmask 1046528   ;;  %vm975_vm1 = vcmask 1045504  }
   0xf   : > { %v4623_v1 = vld [vmem:[%s5790_s1 + $0x100] sm:$0xff]   ;;  %3893 = vmatprep.subr.bf16.mxu1 %v4622_v0  ;;  %v4625_v3 = vld [vmem:[%s5790_s1 + $0x108] sm:$0xff]   ;;  %v4627_v5 = vld [vmem:[%s5790_s1 + $0x110] sm:$0xff]  }
  0x10   : > { %4085 = vmatprep.subr.bf16.mxu0 %v4623_v1  ;;  %3894 = vmatpush3.bf16.msra.mxu1 %v4622_v0  ;;  %s5873_s12 = smov (!%p202_p4, %s4752_s12), 1  ;;  %v4628_v6 = vld [vmem:[%s5790_s1 + $0x58] sm:$0xff]   ;;  %v4630_v8 = vld [vmem:[%s5790_s1 + $0x60] sm:$0xff]   ;;  %v4632_v10 = vld [vmem:[%s5790_s1 + $0x68] sm:$0xff]  }
  0x11   : > { %4086 = vmatpush3.bf16.msra.mxu0 %v4623_v1  ;;  %3895 = vmatprep.subr.bf16.mxu1 %v4624_v2  ;;  %v4629_v7 = vld [vmem:[%s5790_s1 + $0x118] sm:$0xff]   ;;  %s4597_s5 = smul.u32 216, %s5873_s12  ;;  %v4631_v9 = vld [vmem:[%s5790_s1 + $0x120] sm:$0xff]   ;;  %v4633_v11 = vld [vmem:[%s5790_s1 + $0x128] sm:$0xff]   ;;  %s3549_s25 = sshll.u32 %s5873_s12, 7 }
  0x12   : > { %4087 = vmatprep.subr.bf16.mxu0 %v4625_v3  ;;  %v4634_v28 = vld [vmem:[%s5790_s1 + $0x70] sm:$0xff]   ;;  %v4636_v42 = vld [vmem:[%s5790_s1 + $0x78] sm:$0xff]   ;;  %v4639_v61 = vld [vmem:[%s5790_s1] sm:$0xff]   ;;  %s5730_s28 = scalar_lea.vmem %s5792_s3, %s3549_s25 }
  0x13   : > { %s4836_s16 = scalar_lea.vmem %s5789_s0, %s4597_s5  ;;  %v4635_v29 = vld [vmem:[%s5790_s1 + $0x130] sm:$0xff]   ;;  %v4637_v51 = vld [vmem:[%s5790_s1 + $0x138] sm:$0xff]   ;;  %v4640_v0 = vld [vmem:[%s5790_s1 + $0x140] sm:$0xff]  }
  0x14   : > { %3896 = vmatpush3.bf16.msra.mxu1 %v4624_v2  ;;  %v4845_v12 = vld [vmem:[%s4836_s16] sm:$0xff]   ;;  %v4848_v13 = vld [vmem:[%s4836_s16 + $0x8] sm:$0x1]  ;;  %v4851_v14 = vld [vmem:[%s4836_s16 + $0xc] sm:$0xff]  }
  0x15   : > { %4088 = vmatpush3.bf16.msra.mxu0 %v4625_v3  ;;  %3897 = vmatprep.subr.bf16.mxu1 %v4626_v4  ;;  %v5795_v15 = vunpack.c.l.bf16 %v4845_v12  ;;  %v5794_v16 = vunpack.c.h.bf16 %v4845_v12  ;;  %v5793_v17 = vunpack.c.l.bf16 %v4848_v13  ;;  %v4857_v18 = vld [vmem:[%s4836_s16 + $0x14] sm:$0x1]  ;;  %v280_v19 = vunpack.c.l.bf16 %v4851_v14  ;;  %v4863_v22 = vld [vmem:[%s4836_s16 + $0x18] sm:$0xff]   ;;  %v4866_v23 = vld [vmem:[%s4836_s16 + $0x20] sm:$0x1] }
  0x16   : > { %4089 = vmatprep.subr.bf16.mxu0 %v4627_v5  ;;  %v281_v20 = vunpack.c.h.bf16 %v4851_v14  ;;  %v282_v21 = vunpack.c.l.bf16 %v4857_v18  ;;  %v283_v32 = vunpack.c.l.bf16 %v4863_v22  ;;  %v284_v33 = vunpack.c.h.bf16 %v4863_v22  ;;  %v4892_v37 = vld [vmem:[%s4836_s16 + $0x24] sm:$0xff]   ;;  %v4897_v41 = vld [vmem:[%s4836_s16 + $0x2c] sm:$0x1]  ;;  %v4905_v45 = vld [vmem:[%s4836_s16 + $0x30] sm:$0xff]  }
  0x17   : > { %v412_v24 = vrot.slane %v5795_v15, 1  ;;  %v413_v25 = vrot.slane %v5794_v16, 1  ;;  %v415_v26 = vrot.slane %v5793_v17, 1  ;;  %v417_v27 = vrot.slane %v280_v19, 1  ;;  %v4914_v50 = vld [vmem:[%s4836_s16 + $0x38] sm:$0x1] }
  0x18   : > { %3898 = vmatpush3.bf16.msra.mxu1 %v4626_v4  ;;  %v418_v30 = vrot.slane %v281_v20, 1  ;;  %v420_v31 = vrot.slane %v282_v21, 1  ;;  %v285_v36 = vunpack.c.l.bf16 %v4866_v23  ;;  %v422_v44 = vrot.slane %v283_v32, 1  ;;  %v4927_v57 = vld [vmem:[%s4836_s16 + $0x3c] sm:$0xff]   ;;  %v4933_v60 = vld [vmem:[%s4836_s16 + $0x44] sm:$0x1] }
  0x19   : > { %4090 = vmatpush3.bf16.msra.mxu0 %v4627_v5  ;;  %3899 = vmatprep.subr.bf16.mxu1 %v4628_v6  ;;  %v414_v34 = vsel %vm411_vm0, %v412_v24, %v413_v25  ;;  %v416_v35 = vsel %vm411_vm0, %v413_v25, %v415_v26  ;;  %v423_v46 = vrot.slane %v284_v33, 1  ;;  %v286_v48 = vunpack.c.l.bf16 %v4892_v37  ;;  %v4641_v24 = vld [vmem:[%s5790_s1 + $0x148] sm:$0xff]   ;;  %v5047_v17 = vld [vmem:[%s4836_s16 + $0x74] sm:$0x1] }
  0x1a   : > { %4091 = vmatprep.subr.bf16.mxu0 %v4629_v7  ;;  %v524_v38 = vpack.c.bf16 %v416_v35, %v414_v34  ;;  %v419_v39 = vsel %vm411_vm0, %v417_v27, %v418_v30  ;;  %v421_v40 = vsel %vm411_vm0, %v418_v30, %v420_v31  ;;  %v425_v47 = vrot.slane %v285_v36, 1  ;;  %v4642_v26 = vld [vmem:[%s5790_s1 + $0x8] sm:$0xff]   ;;  %v4977_v30 = vld [vmem:[%s4836_s16 + $0x54] sm:$0xff]   ;;  %v4980_v31 = vld [vmem:[%s4836_s16 + $0x5c] sm:$0x1] }
  0x1b   : > { %v525_v43 = vpack.c.bf16 %v421_v40, %v419_v39  ;;  %v287_v49 = vunpack.c.h.bf16 %v4892_v37  ;;  %v288_v52 = vunpack.c.l.bf16 %v4897_v41  ;;  %v427_v53 = vrot.slane %v286_v48, 1  ;;  %v5147_v41 = vld [vmem:[%s4836_s16 + $0x98] sm:$0x1] }
  0x1c   : > { %3900 = vmatpush3.bf16.msra.mxu1 %v4628_v6  ;;  %3909 = vmatprep.mubr.bf16.mxu1 %v524_v38  ;;  %v289_v55 = vunpack.c.l.bf16 %v4905_v45  ;;  %v290_v56 = vunpack.c.h.bf16 %v4905_v45  ;;  %v291_v59 = vunpack.c.l.bf16 %v4914_v50  ;;  %v424_v62 = vsel %vm411_vm0, %v422_v44, %v423_v46  ;;  %v4643_v44 = vld [vmem:[%s5790_s1 + $0x150] sm:$0xff]  }
  0x1d   : > { %4092 = vmatpush3.bf16.msra.mxu0 %v4629_v7  ;;  %3901 = vmatprep.subr.bf16.mxu1 %v4630_v8  ;;  %v428_v54 = vrot.slane %v287_v49, 1  ;;  %v430_v58 = vrot.slane %v288_v52, 1  ;;  %v426_v63 = vsel %vm411_vm0, %v423_v46, %v425_v47  ;;  %v292_v1 = vunpack.c.l.bf16 %v4927_v57 }
  0x1e   : > { %4093 = vmatprep.subr.bf16.mxu0 %v4631_v9  ;;  %4101 = vmatprep.mubr.bf16.mxu0 %v525_v43  ;;  %v293_v2 = vunpack.c.h.bf16 %v4927_v57  ;;  %v294_v3 = vunpack.c.l.bf16 %v4933_v60  ;;  %v432_v6 = vrot.slane %v289_v55, 1  ;;  %v433_v7 = vrot.slane %v290_v56, 1 }
  0x1f   : > { %v429_v4 = vsel %vm411_vm0, %v427_v53, %v428_v54  ;;  %v431_v5 = vsel %vm411_vm0, %v428_v54, %v430_v58  ;;  %v437_v27 = vrot.slane %v292_v1, 1  ;;  %v5799_v53 = vunpack.c.l.bf16 %v4980_v31 }
  0x20   : > { %3902 = vmatpush3.bf16.msra.mxu1 %v4630_v8  ;;  %v4952_v8 = vpack.c.bf16 %v426_v63, %v424_v62  ;;  %v4965_v25 = vpack.c.bf16 %v431_v5, %v429_v4  ;;  %v434_v39 = vsel %vm411_vm0, %v432_v6, %v433_v7  ;;  %v5010_v63 = vld [vmem:[%s4836_s16 + $0x60] sm:$0xff]   ;;  %v5020_v6 = vld [vmem:[%s4836_s16 + $0x68] sm:$0x1]  ;;  %v987_v18 = vrot.slane %v284_v33, 2 }
  0x21   : > { %4094 = vmatpush3.bf16.msra.mxu0 %v4631_v9  ;;  %3903 = vmatprep.subr.bf16.mxu1 %v4632_v10  ;;  %v435_v9 = vrot.slane %v291_v59, 1 }
  0x22   : > { %4095 = vmatprep.subr.bf16.mxu0 %v4633_v11 }
  0x23   : > { %v436_v40 = vsel %vm411_vm0, %v433_v7, %v435_v9  ;;  %v450_v9 = vrot.slane %v5799_v53, 1 }
  0x24   : > { %3904 = vmatpush3.bf16.msra.mxu1 %v4632_v10  ;;  %v4957_v10 = vld [vmem:[%s4836_s16 + $0x48] sm:$0xff]   ;;  %v5001_v54 = vpack.c.bf16 %v436_v40, %v434_v39  ;;  %v4646_v39 = vld [vmem:[%s5790_s1 + $0x160] sm:$0xff]   ;;  %v5798_v40 = vunpack.c.l.bf16 %v5020_v6 }
  0x25   : > { %4096 = vmatpush3.bf16.msra.mxu0 %v4633_v11  ;;  %3905 = vmatprep.subr.bf16.mxu1 %v4634_v28  ;;  %v4960_v11 = vld [vmem:[%s4836_s16 + $0x50] sm:$0x1]  ;;  %v5811_v34 = vunpack.c.l.bf16 %v4957_v10  ;;  %v5808_v35 = vunpack.c.h.bf16 %v4957_v10 }
  0x26   : > { %4097 = vmatprep.subr.bf16.mxu0 %v4635_v29  ;;  %v5802_v38 = vunpack.c.l.bf16 %v4960_v11 }
  0x27   : > { %v442_v58 = vrot.slane %v5811_v34, 1 }
  0x28   : > { %3906 = vmatpush3.bf16.msra.mxu1 %v4634_v28  ;;  %v438_v28 = vrot.slane %v293_v2, 1  ;;  %v445_v62 = vrot.slane %v5802_v38, 1  ;;  %v5113_v38 = vld [vmem:[%s4836_s16 + $0x8c] sm:$0x1] }
  0x29   : > { %4098 = vmatpush3.bf16.msra.mxu0 %v4635_v29  ;;  %3907 = vmatprep.subr.bf16.mxu1 %v4636_v42  ;;  %v440_v29 = vrot.slane %v294_v3, 1 }
  0x2a   : > { %4099 = vmatprep.subr.bf16.mxu0 %v4637_v51  ;;  %v439_v46 = vsel %vm411_vm0, %v437_v27, %v438_v28  ;;  %v5796_v27 = vunpack.c.h.bf16 %v5010_v63 }
  0x2b   : > { %v441_v47 = vsel %vm411_vm0, %v438_v28, %v440_v29 }
  0x2c   : > { %3908 = vmatpush3.bf16.msra.mxu1 %v4636_v42  ;;  %v4645_v42 = vld [vmem:[%s5790_s1 + $0x10] sm:$0xff]   ;;  %v5015_v4 = vpack.c.bf16 %v441_v47, %v439_v46  ;;  %v981_v46 = vrot.slane %v280_v19, 2  ;;  %v453_v15 = vrot.slane %v5796_v27, 1 }
  0x2d   : > { %4100 = vmatpush3.bf16.msra.mxu0 %v4637_v51  ;;  %3941 = vmatprep.subr.bf16.mxu1 %v4639_v61  ;;  %v5800_v51 = vunpack.c.h.bf16 %v4977_v30  ;;  %v5044_v47 = vld [vmem:[%s4836_s16 + $0x6c] sm:$0xff]  }
  0x2e   : > { %4133 = vmatprep.subr.bf16.mxu0 %v4640_v0  ;;  %v5807_v27 = vunpack.c.h.bf16 %v5044_v47 }
  0x2f   : > { %3910 = vmatmul.mubr.bf16.vlgmr.msra.gmra.mrb[0].mxu1 %v525_v43  ;;  %v5801_v43 = vunpack.c.l.bf16 %v4977_v30  ;;  %v448_v7 = vrot.slane %v5800_v51, 1 }
  0x30   : > { %4102 = vmatmul.mubr.bf16.vlgmr.msra.gmra.mrb[0].mxu0 %v4952_v8  ;;  %3942 = vmatpush3.bf16.msra.mxu1 %v4639_v61  ;;  %v443_v61 = vrot.slane %v5808_v35, 1 }
  0x31   : > { %4134 = vmatpush3.bf16.msra.mxu0 %v4640_v0  ;;  %3913 = vmatprep.mubr.bf16.mxu1 %v4952_v8  ;;  %v4644_v0 = vld [vmem:[%s5790_s1 + $0x158] sm:$0xff]   ;;  %v447_v5 = vrot.slane %v5801_v43, 1  ;;  %v5110_v43 = vld [vmem:[%s4836_s16 + $0x84] sm:$0xff]  }
  0x32   : > { %4135 = vmatprep.subr.bf16.mxu0 %v4641_v24  ;;  %4105 = vmatprep.mubr.bf16.mxu0 %v4965_v25  ;;  %v444_v28 = vsel %vm411_vm0, %v442_v58, %v443_v61  ;;  %v446_v29 = vsel %vm411_vm0, %v443_v61, %v445_v62  ;;  %v5050_v58 = vld [vmem:[%s4836_s16 + $0x78] sm:$0xff]   ;;  %v451_v62 = vsel %vm411_vm0, %v448_v7, %v450_v9  ;;  %v5803_v9 = vunpack.c.l.bf16 %v5044_v47 }
  0x33   : > { %3943 = vmatprep.subr.bf16.mxu1 %v4642_v26  ;;  %v449_v61 = vsel %vm411_vm0, %v447_v5, %v448_v7  ;;  %v5056_v16 = vpack.c.bf16 %v446_v29, %v444_v28  ;;  %v455_v5 = vrot.slane %v5798_v40, 1  ;;  %v982_v7 = vrot.slane %v281_v20, 2  ;;  %v4647_v28 = vld [vmem:[%s5790_s1 + $0x168] sm:$0xff]   ;;  %v5080_v40 = vld [vmem:[%s4836_s16 + $0x80] sm:$0x1] }
  0x34   : > { %3944 = vmatpush3.bf16.msra.mxu1 %v4642_v26  ;;  %v5797_v26 = vunpack.c.l.bf16 %v5010_v63  ;;  %v5075_v29 = vpack.c.bf16 %v451_v62, %v449_v61  ;;  %v5804_v20 = vunpack.c.l.bf16 %v5050_v58  ;;  %v989_v61 = vrot.slane %v285_v36, 2 }
  0x35   : > { %4136 = vmatpush3.bf16.msra.mxu0 %v4641_v24  ;;  %3945 = vmatprep.subr.bf16.mxu1 %v4645_v42  ;;  %v4648_v24 = vld [vmem:[%s5790_s1 + $0x18] sm:$0xff]   ;;  %v457_v62 = vrot.slane %v5803_v9, 1  ;;  %v5809_v53 = vunpack.c.l.bf16 %v5080_v40  ;;  %v456_v23 = vsel %vm411_vm0, %v453_v15, %v455_v5  ;;  %v458_v36 = vrot.slane %v5807_v27, 1  ;;  %v5140_v27 = vld [vmem:[%s4836_s16 + $0x90] sm:$0xff]  }
  0x36   : > { %4137 = vmatprep.subr.bf16.mxu0 %v4643_v44  ;;  %v452_v19 = vrot.slane %v5797_v26, 1  ;;  %v5805_v26 = vunpack.c.l.bf16 %v5047_v17  ;;  %v462_v51 = vrot.slane %v5804_v20, 1  ;;  %v992_v5 = vrot.slane %v287_v49, 2 }
  0x37   : > { %3914 = vmatmul.mubr.bf16.gmra.mrb[4].mxu1 %v4965_v25  ;;  %v994_v49 = vrot.slane %v288_v52, 2  ;;  %v5816_v35 = vunpack.c.h.bf16 %v5110_v43 }
  0x38   : > { %4106 = vmatmul.mubr.bf16.gmra.mrb[4].mxu0 %v5001_v54  ;;  %3917 = vmatprep.mubr.bf16.mxu1 %v5001_v54  ;;  %v454_v33 = vsel %vm411_vm0, %v452_v19, %v453_v15  ;;  %v460_v19 = vrot.slane %v5805_v26, 1  ;;  %v991_v15 = vrot.slane %v286_v48, 2  ;;  %v4655_v26 = vld [vmem:[%s5790_s1 + $0x30] sm:$0xff]   ;;  %v465_v48 = vrot.slane %v5809_v53, 1 }
  0x39   : > { %4138 = vmatpush3.bf16.msra.mxu0 %v4643_v44  ;;  %4109 = vmatprep.mubr.bf16.mxu0 %v5015_v4  ;;  %v986_v44 = vrot.slane %v283_v32, 2  ;;  %v984_v32 = vrot.slane %v282_v21, 2  ;;  %v5806_v21 = vunpack.c.h.bf16 %v5050_v58  ;;  %v5815_v53 = vunpack.c.l.bf16 %v5113_v38 }
  0x3a   : > { %4139 = vmatprep.subr.bf16.mxu0 %v4644_v0  ;;  %3946 = vmatpush3.bf16.msra.mxu1 %v4645_v42  ;;  %v4651_v42 = vld [vmem:[%s5790_s1 + $0x20] sm:$0xff]   ;;  %v461_v52 = vsel %vm411_vm0, %v458_v36, %v460_v19 }
  0x3b   : > { %3947 = vmatprep.subr.bf16.mxu1 %v4648_v24  ;;  %v985_v9 = vsel %vm975_vm1, %v982_v7, %v984_v32  ;;  %v463_v20 = vrot.slane %v5806_v21, 1  ;;  %v988_v32 = vsel %vm975_vm1, %v986_v44, %v987_v18  ;;  %v5810_v21 = vunpack.c.l.bf16 %v5110_v43 }
  0x3d   : > { %4140 = vmatpush3.bf16.msra.mxu0 %v4644_v0  ;;  %v4653_v0 = vld [vmem:[%s5790_s1 + $0x28] sm:$0xff]   ;;  %v464_v44 = vsel %vm411_vm0, %v462_v51, %v463_v20  ;;  %v995_v51 = vsel %vm975_vm1, %v992_v5, %v994_v49  ;;  %v467_v19 = vrot.slane %v5810_v21, 1 }
  0x3e   : > { %4141 = vmatprep.subr.bf16.mxu0 %v4646_v39  ;;  %3948 = vmatpush3.bf16.msra.mxu1 %v4648_v24  ;;  %v4649_v24 = vld [vmem:[%s5790_s1 + $0x170] sm:$0xff]   ;;  %v5184_v49 = vld [vmem:[%s4836_s16 + $0xa8] sm:$0xff]  }
  0x3f   : > { %3918 = vmatmul.mubr.bf16.gmra.mrb[8].mxu1 %v5015_v4  ;;  %3949 = vmatprep.subr.bf16.mxu1 %v4651_v42 }
  0x40   : > { %4110 = vmatmul.mubr.bf16.gmra.mrb[8].mxu0 %v5056_v16  ;;  %3921 = vmatprep.mubr.bf16.mxu1 %v5056_v16 }
  0x41   : > { %4142 = vmatpush3.bf16.msra.mxu0 %v4646_v39  ;;  %4113 = vmatprep.mubr.bf16.mxu0 %v5075_v29  ;;  %v983_v39 = vsel %vm975_vm1, %v981_v46, %v982_v7  ;;  %v5126_v46 = vpack.c.bf16 %v456_v23, %v454_v33  ;;  %v459_v33 = vsel %vm411_vm0, %v457_v62, %v458_v36  ;;  %v5813_v62 = vunpack.c.h.bf16 %v5140_v27  ;;  %v5166_v36 = vld [vmem:[%s4836_s16 + $0xa4] sm:$0x1] }
  0x42   : > { %4143 = vmatprep.subr.bf16.mxu0 %v4647_v28  ;;  %3950 = vmatpush3.bf16.msra.mxu1 %v4651_v42  ;;  %v4650_v42 = vld [vmem:[%s5790_s1 + $0x178] sm:$0xff]   ;;  %v5135_v7 = vpack.c.bf16 %v985_v9, %v983_v39  ;;  %v990_v23 = vsel %vm975_vm1, %v987_v18, %v989_v61  ;;  %v993_v9 = vsel %vm975_vm1, %v991_v15, %v992_v5  ;;  %v4652_v18 = vld [vmem:[%s5790_s1 + $0x180] sm:$0xff]   ;;  %v5814_v61 = vunpack.c.l.bf16 %v5140_v27 }
  0x43   : > { %3951 = vmatprep.subr.bf16.mxu1 %v4653_v0  ;;  %5828 = vst [vmem:[#allocation2_spill] sm:$0xff] %v5126_v46  ;;  %v5812_v39 = vunpack.c.l.bf16 %v5147_v41  ;;  %v5173_v15 = vld [vmem:[%s4836_s16 + $0x9c] sm:$0xff]   ;;  %v5177_v5 = vpack.c.bf16 %v990_v23, %v988_v32  ;;  %v5188_v34 = vpack.c.bf16 %v995_v51, %v993_v9  ;;  %v997_v32 = vrot.slane %v290_v56, 2 }
  0x44   : > { %v999_v23 = vrot.slane %v291_v59, 2  ;;  %v5817_v50 = vunpack.c.l.bf16 %v5173_v15  ;;  %v5818_v59 = vunpack.c.h.bf16 %v5173_v15  ;;  %v5819_v9 = vunpack.c.l.bf16 %v5166_v36  ;;  %v5216_v51 = vld [vmem:[%s5790_s1 + $0x80] sm:$0xff]  }
  0x45   : > { %4144 = vmatpush3.bf16.msra.mxu0 %v4647_v28  ;;  %v4657_v28 = vld [vmem:[%s5790_s1 + $0x38] sm:$0xff]   ;;  %v475_v56 = vrot.slane %v5812_v39, 1 }
  0x46   : > { %4145 = vmatprep.subr.bf16.mxu0 %v4649_v24  ;;  %3952 = vmatpush3.bf16.msra.mxu1 %v4653_v0  ;;  %v466_v0 = vsel %vm411_vm0, %v463_v20, %v465_v48  ;;  %v5175_v20 = vpack.c.bf16 %v461_v52, %v459_v33  ;;  %v468_v48 = vrot.slane %v5816_v35, 1  ;;  %v996_v33 = vrot.slane %v289_v55, 2 }
  0x47   : > { %3922 = vmatmul.mubr.bf16.gmra.mrb[12].mxu1 %v5075_v29  ;;  %3953 = vmatprep.subr.bf16.mxu1 %v4655_v26  ;;  %v5186_v21 = vpack.c.bf16 %v466_v0, %v464_v44  ;;  %v472_v52 = vrot.slane %v5814_v61, 1  ;;  %v473_v44 = vrot.slane %v5813_v62, 1  ;;  %v1001_v55 = vrot.slane %v292_v1, 2  ;;  %v5211_v0 = vld [vmem:[%s4836_s16 + $0xb0] sm:$0x1] }
  0x48   : > { %4114 = vmatmul.mubr.bf16.gmra.mrb[12].mxu0 %v5126_v46  ;;  %3925 = vmatprep.mubr.bf16.mxu1 %v5126_v46  ;;  %5829 = vst [vmem:[#allocation3_spill] sm:$0xff] %v5175_v20  ;;  %v1002_v1 = vrot.slane %v293_v2, 2  ;;  %v469_v39 = vsel %vm411_vm0, %v467_v19, %v468_v48  ;;  %v998_v61 = vsel %vm975_vm1, %v996_v33, %v997_v32  ;;  %v478_v33 = vrot.slane %v5818_v59, 1 }
  0x49   : > { %4146 = vmatpush3.bf16.msra.mxu0 %v4649_v24  ;;  %4149 = vmatprep.mubr.bf16.mxu0 %v5135_v7  ;;  %v470_v24 = vrot.slane %v5815_v53, 1  ;;  %5830 = vst [vmem:[#allocation4_spill] sm:$0xff] %v5186_v21  ;;  %v319_v53 = vunpack.c.l.bf16 %v5184_v49  ;;  %v1000_v2 = vsel %vm975_vm1, %v997_v32, %v999_v23  ;;  %v474_v60 = vsel %vm411_vm0, %v472_v52, %v473_v44  ;;  %v5245_v23 = vld [vmem:[%s4836_s16 + $0xb4] sm:$0xff]  }
  0x4a   : > { %4147 = vmatprep.subr.bf16.mxu0 %v4650_v42  ;;  %3954 = vmatpush3.bf16.msra.mxu1 %v4655_v26  ;;  %v4654_v26 = vld [vmem:[%s5790_s1 + $0x188] sm:$0xff]   ;;  %v480_v32 = vrot.slane %v5819_v9, 1  ;;  %v1003_v52 = vsel %vm975_vm1, %v1001_v55, %v1002_v1  ;;  %v5831_v35 = vunpack.c.l.bf16 %v4957_v10  ;;  %v5833_v9 = vunpack.c.l.bf16 %v4960_v11 }
  0x4b   : > { %3955 = vmatprep.subr.bf16.mxu1 %v4657_v28  ;;  %v471_v62 = vsel %vm411_vm0, %v468_v48, %v470_v24  ;;  %v476_v48 = vsel %vm411_vm0, %v473_v44, %v475_v56  ;;  %v477_v24 = vrot.slane %v5817_v50, 1  ;;  %v5832_v44 = vunpack.c.h.bf16 %v4957_v10  ;;  %v5254_v50 = vld [vmem:[%s4836_s16 + $0xbc] sm:$0x1] }
  0x4c   : > { %v1006_v19 = vrot.slane %v5831_v35, 2  ;;  %v5257_v59 = vpack.c.bf16 %v471_v62, %v469_v39  ;;  %v482_v55 = vrot.slane %v319_v53, 1  ;;  %v5834_v35 = vunpack.c.h.bf16 %v5184_v49 }
  0x4d   : > { %4148 = vmatpush3.bf16.msra.mxu0 %v4650_v42  ;;  %v1004_v42 = vrot.slane %v294_v3, 2  ;;  %v4656_v3 = vld [vmem:[%s5790_s1 + $0x190] sm:$0xff]   ;;  %v1007_v56 = vrot.slane %v5832_v44, 2  ;;  %v5835_v44 = vunpack.c.l.bf16 %v5211_v0  ;;  %v479_v62 = vsel %vm411_vm0, %v477_v24, %v478_v33 }
  0x4e   : > { %4181 = vmatprep.subr.bf16.mxu0 %v4652_v18  ;;  %3956 = vmatpush3.bf16.msra.mxu1 %v4657_v28  ;;  %v1009_v28 = vrot.slane %v5833_v9, 2  ;;  %v481_v11 = vsel %vm411_vm0, %v478_v33, %v480_v32  ;;  %v5836_v39 = vunpack.c.l.bf16 %v4977_v30  ;;  %v5837_v9 = vunpack.c.h.bf16 %v4977_v30 }
  0x4f   : > { %3926 = vmatmul.mubr.bf16.gmra.mrb[16].mxu1 %v5175_v20  ;;  %3989 = vmatprep.subr.bf16.mxu1 %v5216_v51  ;;  %v485_v20 = vrot.slane %v5835_v44, 1  ;;  %v1008_v24 = vsel %vm975_vm1, %v1006_v19, %v1007_v56  ;;  %v5825_v33 = vunpack.c.h.bf16 %v5245_v23  ;;  %v5826_v32 = vunpack.c.l.bf16 %v5254_v50  ;;  %v4661_v19 = vld [vmem:[%s5790_s1 + $0x1a0] sm:$0xff]  }
  0x50   : > { %4150 = vmatmul.mubr.bf16.vlgmr.msra.gmra.mrb[0].mxu0 %v5177_v5  ;;  %3929 = vmatprep.mubr.bf16.mxu1 %v5186_v21  ;;  %v5263_v21 = vpack.c.bf16 %v1000_v2, %v998_v61  ;;  %v1011_v61 = vrot.slane %v5836_v39, 2  ;;  %v1012_v2 = vrot.slane %v5837_v9, 2  ;;  %v5295_v44 = vpack.c.bf16 %v481_v11, %v479_v62 }
  0x51   : > { %4182 = vmatpush3.bf16.msra.mxu0 %v4652_v18  ;;  %4153 = vmatprep.mubr.bf16.mxu0 %v5188_v34  ;;  %v1005_v18 = vsel %vm975_vm1, %v1002_v1, %v1004_v42  ;;  %v5265_v1 = vpack.c.bf16 %v476_v48, %v474_v60  ;;  %v483_v42 = vrot.slane %v5834_v35, 1  ;;  %v5838_v60 = vunpack.c.l.bf16 %v4980_v31 }
  0x52   : > { %4183 = vmatprep.subr.bf16.mxu0 %v4654_v26  ;;  %v5271_v46 = vpack.c.bf16 %v1005_v18, %v1003_v52  ;;  %v5827_v35 = vunpack.c.l.bf16 %v5245_v23  ;;  %v1010_v31 = vsel %vm975_vm1, %v1007_v56, %v1009_v28  ;;  %v1013_v39 = vsel %vm975_vm1, %v1011_v61, %v1012_v2 }
  0x53   : > { %v1014_v48 = vrot.slane %v5838_v60, 2  ;;  %v484_v52 = vsel %vm411_vm0, %v482_v55, %v483_v42  ;;  %v486_v18 = vsel %vm411_vm0, %v483_v42, %v485_v20  ;;  %v5839_v56 = vunpack.c.l.bf16 %v5010_v63 }
  0x54   : > { %v487_v28 = vrot.slane %v5827_v35, 1  ;;  %v5306_v20 = vpack.c.bf16 %v1010_v31, %v1008_v24  ;;  %v5308_v42 = vpack.c.bf16 %v486_v18, %v484_v52  ;;  %v490_v62 = vrot.slane %v5826_v32, 1 }
  0x55   : > { %4184 = vmatpush3.bf16.msra.mxu0 %v4654_v26  ;;  %v4658_v26 = vld [vmem:[%s5790_s1 + $0x198] sm:$0xff]   ;;  %v1015_v9 = vsel %vm975_vm1, %v1012_v2, %v1014_v48  ;;  %v1016_v55 = vrot.slane %v5839_v56, 2  ;;  %v5840_v11 = vunpack.c.h.bf16 %v5010_v63  ;;  %v5841_v2 = vunpack.c.l.bf16 %v5020_v6 }
  0x56   : > { %4185 = vmatprep.subr.bf16.mxu0 %v4656_v3  ;;  %v5842_v48 = vunpack.c.l.bf16 %v5044_v47  ;;  %v5843_v24 = vunpack.c.h.bf16 %v5044_v47  ;;  %v5322_v52 = vpack.c.bf16 %v1015_v9, %v1013_v39  ;;  %v5844_v18 = vunpack.c.l.bf16 %v5047_v17 }
  0x57   : > { %3930 = vmatmul.mubr.bf16.gmra.mrb[20].mxu1 %v5257_v59  ;;  %v1017_v61 = vrot.slane %v5840_v11, 2  ;;  %v1019_v60 = vrot.slane %v5841_v2, 2  ;;  %v4665_v11 = vld [vmem:[%s5790_s1 + $0x1a8] sm:$0xff]   ;;  %v5845_v6 = vunpack.c.l.bf16 %v4845_v12  ;;  %v5846_v32 = vunpack.c.h.bf16 %v4845_v12 }
  0x58   : > { %4154 = vmatmul.mubr.bf16.gmra.mrb[4].mxu0 %v5263_v21  ;;  %3933 = vmatprep.mubr.bf16.mxu1 %v5265_v1  ;;  %v1021_v56 = vrot.slane %v5842_v48, 2  ;;  %v1022_v31 = vrot.slane %v5843_v24, 2  ;;  %v5847_v17 = vunpack.c.l.bf16 %v4848_v13  ;;  %v5849_v13 = vunpack.c.h.bf16 %v5050_v58 }
  0x59   : > { %4157 = vmatprep.mubr.bf16.mxu0 %v5271_v46  ;;  %4186 = vmatpush3.bf16.msra.mxu0 %v4656_v3  ;;  %v488_v3 = vrot.slane %v5825_v33, 1  ;;  %v1024_v33 = vrot.slane %v5844_v18, 2  ;;  %v976_v2 = vrot.slane %v5845_v6, 2  ;;  %v977_v48 = vrot.slane %v5846_v32, 2 }
  0x5a   : > { %4187 = vmatprep.subr.bf16.mxu0 %v4658_v26  ;;  %v979_v9 = vrot.slane %v5847_v17, 2  ;;  %v1018_v24 = vsel %vm975_vm1, %v1016_v55, %v1017_v61  ;;  %v1020_v18 = vsel %vm975_vm1, %v1017_v61, %v1019_v60  ;;  %v1023_v32 = vsel %vm975_vm1, %v1021_v56, %v1022_v31  ;;  %v4669_v55 = vld [vmem:[%s5790_s1 + $0x1b0] sm:$0xff]  }
  0x5b   : > { %v489_v39 = vsel %vm411_vm0, %v487_v28, %v488_v3  ;;  %v5343_v6 = vsel %vm975_vm1, %v976_v2, %v977_v48  ;;  %v5848_v28 = vunpack.c.l.bf16 %v5050_v58  ;;  %v1025_v60 = vsel %vm975_vm1, %v1022_v31, %v1024_v33 }
  0x5c   : > { %v5355_v61 = vsel %vm975_vm1, %v977_v48, %v979_v9  ;;  %v5850_v2 = vunpack.c.l.bf16 %v5080_v40  ;;  %v5851_v56 = vunpack.c.l.bf16 %v5110_v43  ;;  %v4673_v48 = vld [vmem:[%s5790_s1 + $0x1b8] sm:$0xff]   ;;  %v5371_v9 = vpack.c.bf16 %v1025_v60, %v1023_v32 }
  0x5d   : > { %4188 = vmatpush3.bf16.msra.mxu0 %v4658_v26  ;;  %v491_v26 = vsel %vm411_vm0, %v488_v3, %v490_v62  ;;  %v1026_v3 = vrot.slane %v5848_v28, 2  ;;  %v1027_v62 = vrot.slane %v5849_v13, 2  ;;  %v1088_v28 = vpack.c.bf16 %v5355_v61, %v5343_v6  ;;  %v4694_v6 = vld [vmem:[%s5790_s1 + $0xd0] sm:$0xff]   ;;  %v4700_v61 = vld [vmem:[%s5790_s1 + $0xe0] sm:$0xff]  }
  0x5e   : > { %4189 = vmatprep.subr.bf16.mxu0 %v4661_v19  ;;  %v1029_v17 = vrot.slane %v5850_v2, 2  ;;  %v1031_v35 = vrot.slane %v5851_v56, 2  ;;  %v5366_v13 = vpack.c.bf16 %v1020_v18, %v1018_v24  ;;  %v5852_v40 = vunpack.c.h.bf16 %v5110_v43 }
  0x5f   : > { %3934 = vmatmul.mubr.bf16.gmra.mrb[24].mxu1 %v5295_v44  ;;  %v5853_v31 = vunpack.c.l.bf16 %v5113_v38  ;;  %v5388_v38 = vld [vmem:[%s5790_s1 + $0x1c0] sm:$0xff]   ;;  %v5854_v32 = vunpack.c.l.bf16 %v5140_v27  ;;  %v5857_v56 = vunpack.c.l.bf16 %v5173_v15 }
  0x60   : > { %4158 = vmatmul.mubr.bf16.gmra.mrb[8].mxu0 %v5306_v20  ;;  %3937 = vmatprep.mubr.bf16.mxu1 %v5308_v42  ;;  %v1032_v33 = vrot.slane %v5852_v40, 2 }
  0x61   : > { %4161 = vmatprep.mubr.bf16.mxu0 %v5322_v52  ;;  %4190 = vmatpush3.bf16.msra.mxu0 %v4661_v19  ;;  %v5364_v19 = vpack.c.bf16 %v491_v26, %v489_v39  ;;  %v1034_v2 = vrot.slane %v5853_v31, 2  ;;  %v1028_v39 = vsel %vm975_vm1, %v1026_v3, %v1027_v62  ;;  %v1030_v26 = vsel %vm975_vm1, %v1027_v62, %v1029_v17  ;;  %v4664_v17 = vld [vmem:[%s5790_s1 + $0x88] sm:$0xff]  }
  0x62   : > { %4191 = vmatprep.subr.bf16.mxu0 %v4665_v11  ;;  %v5390_v18 = vpack.c.bf16 %v1030_v26, %v1028_v39  ;;  %v1036_v3 = vrot.slane %v5854_v32, 2  ;;  %v5855_v62 = vunpack.c.h.bf16 %v5140_v27  ;;  %v1041_v40 = vrot.slane %v5857_v56, 2 }
  0x63   : > { %v1035_v24 = vsel %vm975_vm1, %v1032_v33, %v1034_v2  ;;  %v5859_v2 = vunpack.c.l.bf16 %v5166_v36  ;;  %v4668_v36 = vld [vmem:[%s5790_s1 + $0x90] sm:$0xff]   ;;  %v5860_v32 = vunpack.c.h.bf16 %v5184_v49  ;;  %v5862_v56 = vunpack.c.l.bf16 %v5245_v23 }
  0x65   : > { %4192 = vmatpush3.bf16.msra.mxu0 %v4665_v11  ;;  %v1033_v11 = vsel %vm975_vm1, %v1031_v35, %v1032_v33  ;;  %v5856_v35 = vunpack.c.l.bf16 %v5147_v41  ;;  %v5858_v33 = vunpack.c.h.bf16 %v5173_v15  ;;  %v1044_v39 = vrot.slane %v5859_v2, 2  ;;  %v5442_v2 = vld [vmem:[%s4836_s16 + $0xc0] sm:$0xff]  }
  0x66   : > { %4193 = vmatprep.subr.bf16.mxu0 %v4669_v55 }
  0x67   : > { %3938 = vmatmul.mubr.bf16.gmra.mrb[28].mxu1 %v5364_v19  ;;  %v1039_v60 = vrot.slane %v5856_v35, 2  ;;  %v1042_v31 = vrot.slane %v5858_v33, 2 }
  0x68   : > { %4162 = vmatmul.mubr.bf16.gmra.mrb[12].mxu0 %v5366_v13  ;;  %3957 = vmatprep.mubr.bf16.mxu1 %v4845_v12  ;;  %v5392_v12 = vpack.c.bf16 %v1035_v24, %v1033_v11  ;;  %v1046_v24 = vrot.slane %v319_v53, 2  ;;  %v5864_v53 = vunpack.c.l.bf16 %v5254_v50  ;;  %v326_v50 = vunpack.c.h.bf16 %v5442_v2 }
  0x69   : > { %4165 = vmatprep.mubr.bf16.mxu0 %v5371_v9  ;;  %4194 = vmatpush3.bf16.msra.mxu0 %v4669_v55  ;;  %v1037_v55 = vrot.slane %v5855_v62, 2  ;;  %v1043_v26 = vsel %vm975_vm1, %v1041_v40, %v1042_v31  ;;  %v1045_v11 = vsel %vm975_vm1, %v1042_v31, %v1044_v39  ;;  %v1051_v40 = vrot.slane %v5862_v56, 2  ;;  %v273_v39 = vld [vmem:[%s4836_s16 + $0xc8] sm:$0x1] }
  0x6a   : > { %4195 = vmatprep.subr.bf16.mxu0 %v4673_v48  ;;  %v5428_v62 = vpack.c.bf16 %v1045_v11, %v1043_v26  ;;  %v1054_v31 = vrot.slane %v5864_v53, 2  ;;  %v327_v26 = vunpack.c.l.bf16 %v273_v39  ;;  %v4684_v39 = vld [vmem:[%s5790_s1 + $0xb0] sm:$0xff]  }
  0x6b   : > { %v1038_v41 = vsel %vm975_vm1, %v1036_v3, %v1037_v55  ;;  %v1047_v3 = vrot.slane %v5860_v32, 2 }
  0x6c   : > { %v1627_v53 = vrot.slane %v327_v26, 1 }
  0x6d   : > { %4196 = vmatpush3.bf16.msra.mxu0 %v4673_v48  ;;  %v1040_v48 = vsel %vm975_vm1, %v1037_v55, %v1039_v60  ;;  %v5861_v55 = vunpack.c.l.bf16 %v5211_v0  ;;  %v4672_v60 = vld [vmem:[%s5790_s1 + $0x98] sm:$0xff]   ;;  %v1048_v0 = vsel %vm975_vm1, %v1046_v24, %v1047_v3 }
  0x6e   : > { %4229 = vmatprep.subr.bf16.mxu0 %v5388_v38 }
  0x6f   : > { %3958 = vmatmul.mubr.bf16.vlgmr.msra.gmra.mrb[0].mxu1 %v4851_v14  ;;  %v1049_v35 = vrot.slane %v5861_v55, 2  ;;  %v4676_v55 = vld [vmem:[%s5790_s1 + $0xa0] sm:$0xff]  }
  0x70   : > { %4166 = vmatmul.mubr.bf16.gmra.mrb[16].mxu0 %v5390_v18  ;;  %3990 = vmatpush3.bf16.msra.mxu1 %v5216_v51  ;;  %v5422_v51 = vpack.c.bf16 %v1040_v48, %v1038_v41  ;;  %v325_v48 = vunpack.c.l.bf16 %v5442_v2 }
  0x71   : > { %3961 = vmatprep.mubr.bf16.mxu1 %v4863_v22  ;;  %4169 = vmatprep.mubr.bf16.mxu0 %v5392_v12  ;;  %v1050_v41 = vsel %vm975_vm1, %v1047_v3, %v1049_v35  ;;  %v1893_v35 = vrot.slane %v327_v26, 2  ;;  %v4690_v26 = vld [vmem:[%s5790_s1 + $0xc0] sm:$0xff]  }
  0x72   : > { %3991 = vmatprep.subr.bf16.mxu1 %v4664_v17  ;;  %v5458_v24 = vpack.c.bf16 %v1050_v41, %v1048_v0  ;;  %v1890_v3 = vrot.slane %v325_v48, 2 }
  0x74   : > { %3992 = vmatpush3.bf16.msra.mxu1 %v4664_v17  ;;  %v5863_v17 = vunpack.c.h.bf16 %v5245_v23 }
  0x75   : > { %3993 = vmatprep.subr.bf16.mxu1 %v4668_v36 }
  0x76   : > { %v1052_v33 = vrot.slane %v5863_v17, 2  ;;  %v1624_v17 = vrot.slane %v325_v48, 1 }
  0x77   : > { %3962 = vmatmul.mubr.bf16.gmra.mrb[4].mxu1 %v4892_v37 }
  0x78   : > { %4170 = vmatmul.mubr.bf16.gmra.mrb[20].mxu0 %v5422_v51  ;;  %3965 = vmatprep.mubr.bf16.mxu1 %v4905_v45  ;;  %v1053_v11 = vsel %vm975_vm1, %v1051_v40, %v1052_v33  ;;  %v1055_v32 = vsel %vm975_vm1, %v1052_v33, %v1054_v31  ;;  %v4680_v40 = vld [vmem:[%s5790_s1 + $0xa8] sm:$0xff]   ;;  %v1625_v33 = vrot.slane %v326_v50, 1 }
  0x79   : > { %4173 = vmatprep.mubr.bf16.mxu0 %v5428_v62  ;;  %3994 = vmatpush3.bf16.msra.mxu1 %v4668_v36  ;;  %v5460_v56 = vpack.c.bf16 %v1055_v32, %v1053_v11  ;;  %v1891_v36 = vrot.slane %v326_v50, 2  ;;  %v4688_v50 = vld [vmem:[%s5790_s1 + $0xb8] sm:$0xff]   ;;  %v4681_v32 = vld [vmem:[%s5790_s1 + $0x1c8] sm:$0xff]  }
  0x7a   : > { %3995 = vmatprep.subr.bf16.mxu1 %v4672_v60  ;;  %v1626_v0 = vsel %vm411_vm0, %v1624_v17, %v1625_v33  ;;  %v1628_v41 = vsel %vm411_vm0, %v1625_v33, %v1627_v53  ;;  %v4701_v17 = vld [vmem:[%s5790_s1 + $0x200] sm:$0xff]   ;;  %v4692_v33 = vld [vmem:[%s5790_s1 + $0xc8] sm:$0xff]  }
  0x7b   : > { %v1892_v31 = vsel %vm975_vm1, %v1890_v3, %v1891_v36  ;;  %v5476_v11 = vpack.c.bf16 %v1628_v41, %v1626_v0  ;;  %v4689_v3 = vld [vmem:[%s5790_s1 + $0x1d8] sm:$0xff]   ;;  %v4702_v53 = vld [vmem:[%s5790_s1 + $0xe8] sm:$0xff]  }
  0x7d   : > { %3996 = vmatpush3.bf16.msra.mxu1 %v4672_v60  ;;  %v1894_v60 = vsel %vm975_vm1, %v1891_v36, %v1893_v35  ;;  %v4693_v36 = vld [vmem:[%s5790_s1 + $0x1e8] sm:$0xff]   ;;  %v4695_v35 = vld [vmem:[%s5790_s1 + $0x1f0] sm:$0xff]  }
  0x7e   : > { %3997 = vmatprep.subr.bf16.mxu1 %v4676_v55  ;;  %v5478_v48 = vpack.c.bf16 %v1894_v60, %v1892_v31  ;;  %v5560_v31 = vld [vmem:[%s4836_s16 + $0xd4] sm:$0x1] }
  0x7f   : > { %3966 = vmatmul.mubr.bf16.gmra.mrb[8].mxu1 %v4927_v57 }
  0x80   : > { %4174 = vmatmul.mubr.bf16.gmra.mrb[24].mxu0 %v5458_v24  ;;  %3969 = vmatprep.mubr.bf16.mxu1 %v4957_v10 }
  0x81   : > { %4177 = vmatprep.mubr.bf16.mxu0 %v5460_v56  ;;  %3998 = vmatpush3.bf16.msra.mxu1 %v4676_v55  ;;  %v4685_v55 = vld [vmem:[%s5790_s1 + $0x1d0] sm:$0xff]  }
  0x82   : > { %3999 = vmatprep.subr.bf16.mxu1 %v4680_v40 }
  0x85   : > { %4000 = vmatpush3.bf16.msra.mxu1 %v4680_v40  ;;  %v4699_v40 = vld [vmem:[%s5790_s1 + $0x1f8] sm:$0xff]  }
  0x86   : > { %4001 = vmatprep.subr.bf16.mxu1 %v4684_v39 }
  0x87   : > { %3970 = vmatmul.mubr.bf16.gmra.mrb[12].mxu1 %v4977_v30 }
  0x88   : > { %4178 = vmatmul.mubr.bf16.gmra.mrb[28].mxu0 %v5478_v48  ;;  %3973 = vmatprep.mubr.bf16.mxu1 %v5010_v63 }
  0x89   : > { %4197 = vmatprep.mubr.bf16.mxu0 %v4863_v22  ;;  %4002 = vmatpush3.bf16.msra.mxu1 %v4684_v39 }
  0x8a   : > { %4003 = vmatprep.subr.bf16.mxu1 %v4688_v50 }
  0x8d   : > { %4004 = vmatpush3.bf16.msra.mxu1 %v4688_v50  ;;  %v330_v50 = vunpack.c.l.bf16 %v5560_v31  ;;  %v4735_v31 = vld [vmem:[%s5790_s1 + $0x128] sm:$0xff]  }
  0x8e   : > { %4037 = vmatprep.subr.bf16.mxu1 %v4690_v26 }
  0x8f   : > { %3974 = vmatmul.mubr.bf16.gmra.mrb[16].mxu1 %v5044_v47 }
  0x90   : > { %4198 = vmatmul.mubr.bf16.vlgmr.msra.gmra.mrb[0].mxu0 %v4892_v37  ;;  %3977 = vmatprep.mubr.bf16.mxu1 %v5050_v58 }
  0x91   : > { %4230 = vmatpush3.bf16.msra.mxu0 %v5388_v38  ;;  %4201 = vmatprep.mubr.bf16.mxu0 %v4905_v45  ;;  %v4691_v38 = vld [vmem:[%s5790_s1 + $0x1e0] sm:$0xff]  }
  0x92   : > { %4231 = vmatprep.subr.bf16.mxu0 %v4681_v32 }
  0x95   : > { %4232 = vmatpush3.bf16.msra.mxu0 %v4681_v32  ;;  %v2687_v32 = vrot.slane %v330_v50, 2 }
  0x96   : > { %4233 = vmatprep.subr.bf16.mxu0 %v4685_v55 }
  0x97   : > { %3978 = vmatmul.mubr.bf16.gmra.mrb[20].mxu1 %v5110_v43 }
  0x98   : > { %4202 = vmatmul.mubr.bf16.gmra.mrb[4].mxu0 %v4927_v57  ;;  %3981 = vmatprep.mubr.bf16.mxu1 %v5140_v27 }
  0x99   : > { %4205 = vmatprep.mubr.bf16.mxu0 %v4957_v10  ;;  %4234 = vmatpush3.bf16.msra.mxu0 %v4685_v55 }
  0x9a   : > { %4235 = vmatprep.subr.bf16.mxu0 %v4689_v3 }
  0x9d   : > { %4236 = vmatpush3.bf16.msra.mxu0 %v4689_v3 }
  0x9e   : > { %4237 = vmatprep.subr.bf16.mxu0 %v4691_v38 }
  0x9f   : > { %3982 = vmatmul.mubr.bf16.gmra.mrb[24].mxu1 %v5173_v15 }
  0xa0   : > { %4206 = vmatmul.mubr.bf16.gmra.mrb[8].mxu0 %v4977_v30  ;;  %3985 = vmatprep.mubr.bf16.mxu1 %v5184_v49 }
  0xa1   : > { %4209 = vmatprep.mubr.bf16.mxu0 %v5010_v63  ;;  %4238 = vmatpush3.bf16.msra.mxu0 %v4691_v38  ;;  %v4706_v38 = vld [vmem:[%s5790_s1 + $0xf8] sm:$0xff]  }
  0xa2   : > { %4239 = vmatprep.subr.bf16.mxu0 %v4693_v36 }
  0xa5   : > { %4240 = vmatpush3.bf16.msra.mxu0 %v4693_v36 }
  0xa6   : > { %4241 = vmatprep.subr.bf16.mxu0 %v4695_v35 }
  0xa7   : > { %3986 = vmatmul.mubr.bf16.gmra.mrb[28].mxu1 %v5245_v23 }
  0xa8   : > { %4210 = vmatmul.mubr.bf16.gmra.mrb[12].mxu0 %v5044_v47  ;;  %4005 = vmatprep.mubr.bf16.mxu1 %v1088_v28  ;;  %v5554_v28 = vld [vmem:[%s4836_s16 + $0xcc] sm:$0xff]  }
  0xa9   : > { %4213 = vmatprep.mubr.bf16.mxu0 %v5050_v58  ;;  %4242 = vmatpush3.bf16.msra.mxu0 %v4695_v35  ;;  %v328_v60 = vunpack.c.l.bf16 %v5554_v28  ;;  %v329_v39 = vunpack.c.h.bf16 %v5554_v28  ;;  %v4703_v35 = vld [vmem:[%s5790_s1 + $0x208] sm:$0xff]  }
  0xaa   : > { %4243 = vmatprep.subr.bf16.mxu0 %v4699_v40 }
  0xab   : > { %v2684_v0 = vrot.slane %v328_v60, 2  ;;  %v2685_v41 = vrot.slane %v329_v39, 2 }
  0xad   : > { %4244 = vmatpush3.bf16.msra.mxu0 %v4699_v40  ;;  %v5579_v55 = vsel %vm975_vm1, %v2684_v0, %v2685_v41  ;;  %v5582_v3 = vsel %vm975_vm1, %v2685_v41, %v2687_v32  ;;  %v4730_v40 = vld [vmem:[%s5790_s1 + $0x100] sm:$0xff]  }
  0xae   : > { %4277 = vmatprep.subr.bf16.mxu0 %v4701_v17  ;;  %v2691_v36 = vpack.c.bf16 %v5582_v3, %v5579_v55 }
  0xaf   : > { %4006 = vmatmul.mubr.bf16.vlgmr.msra.gmra.mrb[0].mxu1 %v5135_v7  ;;  %v4697_v7 = vld [vmem:[%s5790_s1 + $0xd8] sm:$0xff]  }
  0xb0   : > { %4214 = vmatmul.mubr.bf16.gmra.mrb[16].mxu0 %v5110_v43  ;;  %4038 = vmatpush3.bf16.msra.mxu1 %v4690_v26  ;;  %v4704_v26 = vld [vmem:[%s5790_s1 + $0xf0] sm:$0xff]  }
  0xb1   : > { %4009 = vmatprep.mubr.bf16.mxu1 %v5177_v5  ;;  %4217 = vmatprep.mubr.bf16.mxu0 %v5140_v27 }
  0xb2   : > { %4039 = vmatprep.subr.bf16.mxu1 %v4692_v33 }
  0xb4   : > { %4040 = vmatpush3.bf16.msra.mxu1 %v4692_v33  ;;  %v4707_v33 = vld [vmem:[%s5790_s1 + $0x218] sm:$0xff]  }
  0xb5   : > { %4041 = vmatprep.subr.bf16.mxu1 %v4694_v6 }
  0xb7   : > { %4010 = vmatmul.mubr.bf16.gmra.mrb[4].mxu1 %v5188_v34 }
  0xb8   : > { %4218 = vmatmul.mubr.bf16.gmra.mrb[20].mxu0 %v5173_v15  ;;  %4013 = vmatprep.mubr.bf16.mxu1 %v5263_v21 }
  0xb9   : > { %4221 = vmatprep.mubr.bf16.mxu0 %v5184_v49  ;;  %4042 = vmatpush3.bf16.msra.mxu1 %v4694_v6  ;;  %v5866_v6 = vld [vmem:[#allocation3_spill] sm:$0xff] }
  0xba   : > { %4043 = vmatprep.subr.bf16.mxu1 %v4697_v7 }
  0xbd   : > { %4044 = vmatpush3.bf16.msra.mxu1 %v4697_v7  ;;  %v4731_v7 = vld [vmem:[%s5790_s1 + $0x108] sm:$0xff]  }
  0xbe   : > { %4045 = vmatprep.subr.bf16.mxu1 %v4700_v61 }
  0xbf   : > { %4014 = vmatmul.mubr.bf16.gmra.mrb[8].mxu1 %v5271_v46 }
  0xc0   : > { %4222 = vmatmul.mubr.bf16.gmra.mrb[24].mxu0 %v5245_v23  ;;  %4017 = vmatprep.mubr.bf16.mxu1 %v5306_v20 }
  0xc1   : > { %4225 = vmatprep.mubr.bf16.mxu0 %v5442_v2  ;;  %4046 = vmatpush3.bf16.msra.mxu1 %v4700_v61  ;;  %v2419_v61 = vrot.slane %v329_v39, 1 }
  0xc2   : > { %4047 = vmatprep.subr.bf16.mxu1 %v4702_v53 }
  0xc5   : > { %4048 = vmatpush3.bf16.msra.mxu1 %v4702_v53 }
  0xc6   : > { %4049 = vmatprep.subr.bf16.mxu1 %v4704_v26 }
  0xc7   : > { %4018 = vmatmul.mubr.bf16.gmra.mrb[12].mxu1 %v5322_v52 }
  0xc8   : > { %4226 = vmatmul.mubr.bf16.gmra.mrb[28].mxu0 %v5554_v28  ;;  %4021 = vmatprep.mubr.bf16.mxu1 %v5366_v13 }
  0xc9   : > { %4245 = vmatprep.mubr.bf16.mxu0 %v4952_v8  ;;  %4050 = vmatpush3.bf16.msra.mxu1 %v4704_v26  ;;  %v4705_v8 = vld [vmem:[%s5790_s1 + $0x210] sm:$0xff]  }
  0xca   : > { %4051 = vmatprep.subr.bf16.mxu1 %v4706_v38 }
  0xcd   : > { %4052 = vmatpush3.bf16.msra.mxu1 %v4706_v38 }
  0xce   : > { %4325 = vmatprep.subr.bf16.mxu1 %v4730_v40 }
  0xcf   : > { %4022 = vmatmul.mubr.bf16.gmra.mrb[16].mxu1 %v5371_v9 }
  0xd0   : > { %4246 = vmatmul.mubr.bf16.vlgmr.msra.gmra.mrb[0].mxu0 %v4965_v25  ;;  %4025 = vmatprep.mubr.bf16.mxu1 %v5390_v18  ;;  %v4708_v25 = vld [vmem:[%s5790_s1 + $0x220] sm:$0xff]  }
  0xd1   : > { %4278 = vmatpush3.bf16.msra.mxu0 %v4701_v17  ;;  %4249 = vmatprep.mubr.bf16.mxu0 %v5001_v54  ;;  %v4709_v54 = vld [vmem:[%s5790_s1 + $0x228] sm:$0xff]   ;;  %v4711_v17 = vld [vmem:[%s5790_s1 + $0x238] sm:$0xff]  }
  0xd2   : > { %4279 = vmatprep.subr.bf16.mxu0 %v4703_v35 }
  0xd5   : > { %4280 = vmatpush3.bf16.msra.mxu0 %v4703_v35 }
  0xd6   : > { %4281 = vmatprep.subr.bf16.mxu0 %v4705_v8 }
  0xd7   : > { %4026 = vmatmul.mubr.bf16.gmra.mrb[20].mxu1 %v5392_v12 }
  0xd8   : > { %4250 = vmatmul.mubr.bf16.gmra.mrb[4].mxu0 %v5015_v4  ;;  %4029 = vmatprep.mubr.bf16.mxu1 %v5422_v51  ;;  %v5865_v4 = vld [vmem:[#allocation2_spill] sm:$0xff] }
  0xd9   : > { %4253 = vmatprep.mubr.bf16.mxu0 %v5056_v16  ;;  %4282 = vmatpush3.bf16.msra.mxu0 %v4705_v8  ;;  %v4710_v16 = vld [vmem:[%s5790_s1 + $0x230] sm:$0xff]  }
  0xda   : > { %4283 = vmatprep.subr.bf16.mxu0 %v4707_v33 }
  0xdd   : > { %4284 = vmatpush3.bf16.msra.mxu0 %v4707_v33 }
  0xde   : > { %4285 = vmatprep.subr.bf16.mxu0 %v4708_v25 }
  0xdf   : > { %4030 = vmatmul.mubr.bf16.gmra.mrb[24].mxu1 %v5428_v62 }
  0xe0   : > { %4254 = vmatmul.mubr.bf16.gmra.mrb[8].mxu0 %v5075_v29  ;;  %4033 = vmatprep.mubr.bf16.mxu1 %v5458_v24  ;;  %v5867_v29 = vld [vmem:[#allocation4_spill] sm:$0xff] }
  0xe1   : > { %4257 = vmatprep.mubr.bf16.mxu0 %v5865_v4  ;;  %4286 = vmatpush3.bf16.msra.mxu0 %v4708_v25 }
  0xe2   : > { %4287 = vmatprep.subr.bf16.mxu0 %v4709_v54 }
  0xe5   : > { %4288 = vmatpush3.bf16.msra.mxu0 %v4709_v54 }
  0xe6   : > { %4289 = vmatprep.subr.bf16.mxu0 %v4710_v16 }
  0xe7   : > { %4034 = vmatmul.mubr.bf16.gmra.mrb[28].mxu1 %v5460_v56 }
  0xe8   : > { %4258 = vmatmul.mubr.bf16.gmra.mrb[12].mxu0 %v5866_v6  ;;  %4053 = vmatprep.mubr.bf16.mxu1 %v4851_v14  ;;  %v4732_v14 = vld [vmem:[%s5790_s1 + $0x110] sm:$0xff]  }
  0xe9   : > { %4261 = vmatprep.mubr.bf16.mxu0 %v5867_v29  ;;  %4290 = vmatpush3.bf16.msra.mxu0 %v4710_v16 }
  0xea   : > { %4291 = vmatprep.subr.bf16.mxu0 %v4711_v17 }
  0xed   : > { %4292 = vmatpush3.bf16.msra.mxu0 %v4711_v17 }
  0xef   : > { %4054 = vmatmul.mubr.bf16.vlgmr.msra.gmra.mrb[0].mxu1 %v4863_v22  ;;  %v4733_v22 = vld [vmem:[%s5790_s1 + $0x118] sm:$0xff]  }
  0xf0   : > { %4262 = vmatmul.mubr.bf16.gmra.mrb[16].mxu0 %v5257_v59  ;;  %4333 = vmatpush3.bf16.msra.mxu1 %v4730_v40 }
  0xf1   : > { %4057 = vmatprep.mubr.bf16.mxu1 %v4892_v37  ;;  %4265 = vmatprep.mubr.bf16.mxu0 %v5265_v1  ;;  %v2418_v37 = vrot.slane %v328_v60, 1 }
  0xf2   : > { %4326 = vmatprep.subr.bf16.mxu1 %v4731_v7 }
  0xf3   : > { %v2420_v28 = vsel %vm411_vm0, %v2418_v37, %v2419_v61 }
  0xf4   : > { %4334 = vmatpush3.bf16.msra.mxu1 %v4731_v7 }
  0xf5   : > { %4327 = vmatprep.subr.bf16.mxu1 %v4732_v14 }
  0xf7   : > { %4058 = vmatmul.mubr.bf16.gmra.mrb[4].mxu1 %v4905_v45  ;;  %v2421_v45 = vrot.slane %v330_v50, 1 }
  0xf8   : > { %4266 = vmatmul.mubr.bf16.gmra.mrb[20].mxu0 %v5295_v44  ;;  %4061 = vmatprep.mubr.bf16.mxu1 %v4927_v57  ;;  %v4734_v57 = vld [vmem:[%s5790_s1 + $0x120] sm:$0xff]  }
  0xf9   : > { %4269 = vmatprep.mubr.bf16.mxu0 %v5308_v42  ;;  %4335 = vmatpush3.bf16.msra.mxu1 %v4732_v14  ;;  %v2422_v53 = vsel %vm411_vm0, %v2419_v61, %v2421_v45 }
  0xfa   : > { %4328 = vmatprep.subr.bf16.mxu1 %v4733_v22  ;;  %v2425_v60 = vpack.c.bf16 %v2422_v53, %v2420_v28 }
  0xfd   : > { %4336 = vmatpush3.bf16.msra.mxu1 %v4733_v22 }
  0xfe   : > { %4329 = vmatprep.subr.bf16.mxu1 %v4734_v57 }
  0xff   : > { %4062 = vmatmul.mubr.bf16.gmra.mrb[8].mxu1 %v4957_v10  ;;  %v4736_v10 = vld [vmem:[%s5790_s1 + $0x130] sm:$0xff]  }
 0x100   : > { %4270 = vmatmul.mubr.bf16.gmra.mrb[24].mxu0 %v5364_v19  ;;  %4065 = vmatprep.mubr.bf16.mxu1 %v4977_v30  ;;  %v4737_v30 = vld [vmem:[%s5790_s1 + $0x138] sm:$0xff]  }
 0x101   : > { %4273 = vmatprep.mubr.bf16.mxu0 %v5476_v11  ;;  %4337 = vmatpush3.bf16.msra.mxu1 %v4734_v57 }
 0x102   : > { %4330 = vmatprep.subr.bf16.mxu1 %v4735_v31 }
 0x105   : > { %4338 = vmatpush3.bf16.msra.mxu1 %v4735_v31 }
 0x106   : > { %4331 = vmatprep.subr.bf16.mxu1 %v4736_v10 }
 0x107   : > { %4066 = vmatmul.mubr.bf16.gmra.mrb[12].mxu1 %v5010_v63 }
 0x108   : > { %4274 = vmatmul.mubr.bf16.gmra.mrb[28].mxu0 %v2425_v60  ;;  %4069 = vmatprep.mubr.bf16.mxu1 %v5044_v47 }
 0x109   : > { %4293 = vmatprep.mubr.bf16.mxu0 %v5177_v5  ;;  %4339 = vmatpush3.bf16.msra.mxu1 %v4736_v10 }
 0x10a   : > { %4332 = vmatprep.subr.bf16.mxu1 %v4737_v30 }
 0x10d   : > { %4340 = vmatpush3.bf16.msra.mxu1 %v4737_v30 }
 0x10f   : > { %4070 = vmatmul.mubr.bf16.gmra.mrb[16].mxu1 %v5050_v58 }
 0x110   : > { %4294 = vmatmul.mubr.bf16.vlgmr.msra.gmra.mrb[0].mxu0 %v5188_v34  ;;  %4073 = vmatprep.mubr.bf16.mxu1 %v5110_v43 }
 0x111   : > { %4297 = vmatprep.mubr.bf16.mxu0 %v5263_v21 }
 0x117   : > { %4074 = vmatmul.mubr.bf16.gmra.mrb[20].mxu1 %v5140_v27 }
 0x118   : > { %4298 = vmatmul.mubr.bf16.gmra.mrb[4].mxu0 %v5271_v46  ;;  %4077 = vmatprep.mubr.bf16.mxu1 %v5173_v15 }
 0x119   : > { %4301 = vmatprep.mubr.bf16.mxu0 %v5306_v20 }
 0x11f   : > { %4078 = vmatmul.mubr.bf16.gmra.mrb[24].mxu1 %v5184_v49 }
 0x120   : > { %4302 = vmatmul.mubr.bf16.gmra.mrb[8].mxu0 %v5322_v52  ;;  %4081 = vmatprep.mubr.bf16.mxu1 %v5245_v23  ;;  %v5720_v52 = vld [vmem:[%s5791_s2] ss:$0 sm:$0xff] }
 0x121   : > { %4305 = vmatprep.mubr.bf16.mxu0 %v5366_v13 }
 0x127   : > { %4082 = vmatmul.mubr.bf16.gmra.mrb[28].mxu1 %v5442_v2 }
 0x128   : > { %4306 = vmatmul.mubr.bf16.gmra.mrb[12].mxu0 %v5371_v9  ;;  %4117 = vmatprep.mubr.bf16.mxu1 %v5866_v6 }
 0x129   : > { %4309 = vmatprep.mubr.bf16.mxu0 %v5390_v18 }
 0x12f   : > { %4118 = vmatmul.mubr.bf16.vlgmr.msra.gmra.mrb[16].mxu1 %v5867_v29 }
 0x130   : > { %4310 = vmatmul.mubr.bf16.gmra.mrb[16].mxu0 %v5392_v12  ;;  %4121 = vmatprep.mubr.bf16.mxu1 %v5257_v59 }
 0x131   : > { %4313 = vmatprep.mubr.bf16.mxu0 %v5422_v51 }
 0x137   : > { %4122 = vmatmul.mubr.bf16.gmra.mrb[20].mxu1 %v5265_v1 }
 0x138   : > { %4314 = vmatmul.mubr.bf16.gmra.mrb[20].mxu0 %v5428_v62  ;;  %4125 = vmatprep.mubr.bf16.mxu1 %v5295_v44 }
 0x139   : > { %4317 = vmatprep.mubr.bf16.mxu0 %v5458_v24 }
 0x13f   : > { %4126 = vmatmul.mubr.bf16.gmra.mrb[24].mxu1 %v5308_v42 }
 0x140   : > { %4318 = vmatmul.mubr.bf16.gmra.mrb[24].mxu0 %v5460_v56  ;;  %4129 = vmatprep.mubr.bf16.mxu1 %v5364_v19 }
 0x141   : > { %4321 = vmatprep.mubr.bf16.mxu0 %v5478_v48 }
 0x147   : > { %4130 = vmatmul.mubr.bf16.gmra.mrb[28].mxu1 %v5476_v11 }
 0x148   : > { %4322 = vmatmul.mubr.bf16.gmra.mrb[28].mxu0 %v2691_v36 }
 0x1c2   : > { %v4055_v34 = vpop.f32.mrb[0].mxu1 }
 0x1c3   : > { %v1462_v43 = vpop.f32.mrb[1].mxu1 }
 0x1c4   : > { %v4056_v63 = vpop.f32.mrb[2].mxu1 }
 0x1c5   : > { %v1465_v27 = vpop.f32.mrb[3].mxu1 }
 0x1ca   : > { %v4059_v47 = vpop.f32.mrb[4].mxu1 }
 0x1cb   : > { %v1478_v58 = vpop.f32.mrb[5].mxu1 }
 0x1cc   : > { %v4060_v21 = vpop.f32.mrb[6].mxu1 }
 0x1cd   : > { %v1481_v46 = vpop.f32.mrb[7].mxu1 }
 0x1d2   : > { %v4063_v15 = vpop.f32.mrb[8].mxu1 }
 0x1d3   : > { %v1494_v5 = vpop.f32.mrb[9].mxu1 }
 0x1d4   : > { %v4064_v49 = vpop.f32.mrb[10].mxu1 }
 0x1d5   : > { %v1497_v59 = vpop.f32.mrb[11].mxu1 }
 0x1da   : > { %v5709_v23 = vpop.f32.mrb[12].mxu1 }
 0x1db   : > { %v5711_v1 = vpop.f32.mrb[13].mxu1 }
 0x1dc   : > { %v5713_v44 = vpop.f32.mrb[14].mxu1 }
 0x1dd   : > { %v5715_v20 = vpop.f32.mrb[15].mxu1 }
 0x1e3   : > { %v4295_v42 = vpop.f32.mrb[0].mxu0 }
 0x1e4   : > { %v4341_v19 = vadd.f32 %v4295_v42, %v4055_v34  ;;  %v2791_v13 = vpop.f32.mrb[1].mxu0 }
 0x1e5   : > { %v4342_v9 = vadd.f32 %v2791_v13, %v1462_v43  ;;  %v4296_v18 = vpop.f32.mrb[2].mxu0 }
 0x1e6   : > { %v2959_v12 = vadd.f32 %v4341_v19, %v5720_v52  ;;  %v4343_v51 = vadd.f32 %v4296_v18, %v4056_v63  ;;  %v2794_v62 = vpop.f32.mrb[3].mxu0 }
 0x1e7   : > { %v2957_v2 = vadd.f32 %v4342_v9, %v5720_v52  ;;  %v4344_v24 = vadd.f32 %v2794_v62, %v1465_v27 }
 0x1e8   : > { %v2960_v56 = vadd.f32 %v4343_v51, %v5720_v52  ;;  %v2991_v48 = vmax.f32 %v2959_v12, 0.0 }
 0x1e9   : > { %v2958_v11 = vadd.f32 %v4344_v24, %v5720_v52  ;;  %v2989_v0 = vmax.f32 %v2957_v2, 0.0 }
 0x1ea   : > { %v2992_v39 = vmax.f32 %v2960_v56, 0.0 }
 0x1eb   : > { %v2990_v41 = vmax.f32 %v2958_v11, 0.0  ;;  %v4299_v50 = vpop.f32.mrb[4].mxu0 }
 0x1ec   : > { %v3590_v26 = vpack.c.bf16 %v2992_v39, %v2991_v48  ;;  %v4345_v32 = vadd.f32 %v4299_v50, %v4059_v47  ;;  %v2807_v55 = vpop.f32.mrb[5].mxu0 }
 0x1ed   : > { %v3585_v3 = vpack.c.bf16 %v2990_v41, %v2989_v0  ;;  %v4346_v38 = vadd.f32 %v2807_v55, %v1478_v58  ;;  %v4300_v36 = vpop.f32.mrb[6].mxu0 }
 0x1ee   : > { %3662 = vst [vmem:[%s5730_s28 + $0x8] sm:$0xff] %v3590_v26   ;;  %v2963_v35 = vadd.f32 %v4345_v32, %v5720_v52  ;;  %v4347_v40 = vadd.f32 %v4300_v36, %v4060_v21  ;;  %v2810_v8 = vpop.f32.mrb[7].mxu0 }
 0x1ef   : > { %3586 = vst [vmem:[%s5730_s28] sm:$0xff] %v3585_v3   ;;  %v2961_v33 = vadd.f32 %v4346_v38, %v5720_v52  ;;  %v4348_v25 = vadd.f32 %v2810_v8, %v1481_v46 }
 0x1f0   : > { %v2964_v54 = vadd.f32 %v4347_v40, %v5720_v52  ;;  %v2995_v16 = vmax.f32 %v2963_v35, 0.0 }
 0x1f1   : > { %v2962_v4 = vadd.f32 %v4348_v25, %v5720_v52  ;;  %v2993_v6 = vmax.f32 %v2961_v33, 0.0 }
 0x1f2   : > { %v2996_v17 = vmax.f32 %v2964_v54, 0.0 }
 0x1f3   : > { %v2994_v29 = vmax.f32 %v2962_v4, 0.0  ;;  %v4303_v7 = vpop.f32.mrb[8].mxu0 }
 0x1f4   : > { %v3600_v14 = vpack.c.bf16 %v2996_v17, %v2995_v16  ;;  %v4349_v22 = vadd.f32 %v4303_v7, %v4063_v15  ;;  %v2823_v37 = vpop.f32.mrb[9].mxu0 }
 0x1f5   : > { %v3595_v61 = vpack.c.bf16 %v2994_v29, %v2993_v6  ;;  %v4350_v45 = vadd.f32 %v2823_v37, %v1494_v5  ;;  %v4304_v57 = vpop.f32.mrb[10].mxu0 }
 0x1f6   : > { %3664 = vst [vmem:[%s5730_s28 + $0x18] sm:$0xff] %v3600_v14   ;;  %v2967_v28 = vadd.f32 %v4349_v22, %v5720_v52  ;;  %v4351_v53 = vadd.f32 %v4304_v57, %v4064_v49  ;;  %v2826_v31 = vpop.f32.mrb[11].mxu0 }
 0x1f7   : > { %3663 = vst [vmem:[%s5730_s28 + $0x10] sm:$0xff] %v3595_v61   ;;  %v2965_v60 = vadd.f32 %v4350_v45, %v5720_v52  ;;  %v4352_v10 = vadd.f32 %v2826_v31, %v1497_v59 }
 0x1f8   : > { %v2968_v30 = vadd.f32 %v4351_v53, %v5720_v52  ;;  %v2999_v43 = vmax.f32 %v2967_v28, 0.0 }
 0x1f9   : > { %v2966_v34 = vadd.f32 %v4352_v10, %v5720_v52  ;;  %v2997_v27 = vmax.f32 %v2965_v60, 0.0 }
 0x1fa   : > { %v3000_v63 = vmax.f32 %v2968_v30, 0.0 }
 0x1fb   : > { %v2998_v47 = vmax.f32 %v2966_v34, 0.0  ;;  %v4307_v58 = vpop.f32.mrb[12].mxu0 }
 0x1fc   : > { %v3610_v21 = vpack.c.bf16 %v3000_v63, %v2999_v43  ;;  %v4353_v46 = vadd.f32 %v4307_v58, %v5709_v23  ;;  %v2839_v15 = vpop.f32.mrb[13].mxu0 }
 0x1fd   : > { %v3605_v5 = vpack.c.bf16 %v2998_v47, %v2997_v27  ;;  %v4354_v49 = vadd.f32 %v2839_v15, %v5711_v1  ;;  %v4308_v42 = vpop.f32.mrb[14].mxu0 }
 0x1fe   : > { %3666 = vst [vmem:[%s5730_s28 + $0x28] sm:$0xff] %v3610_v21   ;;  %v2971_v59 = vadd.f32 %v4353_v46, %v5720_v52  ;;  %v4355_v19 = vadd.f32 %v4308_v42, %v5713_v44  ;;  %v2842_v13 = vpop.f32.mrb[15].mxu0 }
 0x1ff   : > { %3665 = vst [vmem:[%s5730_s28 + $0x20] sm:$0xff] %v3605_v5   ;;  %v2969_v9 = vadd.f32 %v4354_v49, %v5720_v52  ;;  %v4356_v18 = vadd.f32 %v2842_v13, %v5715_v20 }
 0x200   : > { %v2972_v12 = vadd.f32 %v4355_v19, %v5720_v52  ;;  %v3003_v51 = vmax.f32 %v2971_v59, 0.0 }
 0x201   : > { %v2970_v23 = vadd.f32 %v4356_v18, %v5720_v52  ;;  %v3001_v2 = vmax.f32 %v2969_v9, 0.0 }
 0x202   : > { %v3004_v62 = vmax.f32 %v2972_v12, 0.0  ;;  %v4119_v1 = vpop.f32.mrb[16].mxu1 }
 0x203   : > { %v3002_v24 = vmax.f32 %v2970_v23, 0.0  ;;  %v4311_v56 = vpop.f32.mrb[16].mxu0  ;;  %v1795_v11 = vpop.f32.mrb[17].mxu1 }
 0x204   : > { %v3620_v44 = vpack.c.bf16 %v3004_v62, %v3003_v51  ;;  %v4357_v48 = vadd.f32 %v4311_v56, %v4119_v1  ;;  %v2855_v39 = vpop.f32.mrb[17].mxu0  ;;  %v4120_v0 = vpop.f32.mrb[18].mxu1 }
 0x205   : > { %v3615_v41 = vpack.c.bf16 %v3002_v24, %v3001_v2  ;;  %v4358_v50 = vadd.f32 %v2855_v39, %v1795_v11  ;;  %v4312_v20 = vpop.f32.mrb[18].mxu0  ;;  %v1798_v26 = vpop.f32.mrb[19].mxu1 }
 0x206   : > { %3668 = vst [vmem:[%s5730_s28 + $0x38] sm:$0xff] %v3620_v44   ;;  %v2975_v32 = vadd.f32 %v4357_v48, %v5720_v52  ;;  %v4359_v55 = vadd.f32 %v4312_v20, %v4120_v0  ;;  %v2858_v3 = vpop.f32.mrb[19].mxu0 }
 0x207   : > { %3667 = vst [vmem:[%s5730_s28 + $0x30] sm:$0xff] %v3615_v41   ;;  %v2973_v38 = vadd.f32 %v4358_v50, %v5720_v52  ;;  %v4360_v36 = vadd.f32 %v2858_v3, %v1798_v26 }
 0x208   : > { %v2976_v35 = vadd.f32 %v4359_v55, %v5720_v52  ;;  %v3007_v8 = vmax.f32 %v2975_v32, 0.0 }
 0x209   : > { %v2974_v40 = vadd.f32 %v4360_v36, %v5720_v52  ;;  %v3005_v54 = vmax.f32 %v2973_v38, 0.0 }
 0x20a   : > { %v3008_v33 = vmax.f32 %v2976_v35, 0.0  ;;  %v4123_v25 = vpop.f32.mrb[20].mxu1 }
 0x20b   : > { %v3006_v4 = vmax.f32 %v2974_v40, 0.0  ;;  %v4315_v16 = vpop.f32.mrb[20].mxu0  ;;  %v1811_v17 = vpop.f32.mrb[21].mxu1 }
 0x20c   : > { %v3630_v6 = vpack.c.bf16 %v3008_v33, %v3007_v8  ;;  %v4361_v29 = vadd.f32 %v4315_v16, %v4123_v25  ;;  %v2871_v7 = vpop.f32.mrb[21].mxu0  ;;  %v4124_v14 = vpop.f32.mrb[22].mxu1 }
 0x20d   : > { %v3625_v22 = vpack.c.bf16 %v3006_v4, %v3005_v54  ;;  %v4362_v37 = vadd.f32 %v2871_v7, %v1811_v17  ;;  %v4316_v61 = vpop.f32.mrb[22].mxu0  ;;  %v1814_v45 = vpop.f32.mrb[23].mxu1 }
 0x20e   : > { %3670 = vst [vmem:[%s5730_s28 + $0x48] sm:$0xff] %v3630_v6   ;;  %v2979_v57 = vadd.f32 %v4361_v29, %v5720_v52  ;;  %v4363_v28 = vadd.f32 %v4316_v61, %v4124_v14  ;;  %v2874_v53 = vpop.f32.mrb[23].mxu0 }
 0x20f   : > { %3669 = vst [vmem:[%s5730_s28 + $0x40] sm:$0xff] %v3625_v22   ;;  %v2977_v31 = vadd.f32 %v4362_v37, %v5720_v52  ;;  %v4364_v60 = vadd.f32 %v2874_v53, %v1814_v45 }
 0x210   : > { %v2980_v10 = vadd.f32 %v4363_v28, %v5720_v52  ;;  %v3011_v34 = vmax.f32 %v2979_v57, 0.0 }
 0x211   : > { %v2978_v30 = vadd.f32 %v4364_v60, %v5720_v52  ;;  %v3009_v27 = vmax.f32 %v2977_v31, 0.0 }
 0x212   : > { %v3012_v43 = vmax.f32 %v2980_v10, 0.0  ;;  %v4127_v63 = vpop.f32.mrb[24].mxu1 }
 0x213   : > { %v3010_v47 = vmax.f32 %v2978_v30, 0.0  ;;  %v4319_v58 = vpop.f32.mrb[24].mxu0  ;;  %v1827_v21 = vpop.f32.mrb[25].mxu1 }
 0x214   : > { %v3640_v46 = vpack.c.bf16 %v3012_v43, %v3011_v34  ;;  %v4365_v15 = vadd.f32 %v4319_v58, %v4127_v63  ;;  %v2887_v5 = vpop.f32.mrb[25].mxu0  ;;  %v4128_v49 = vpop.f32.mrb[26].mxu1 }
 0x215   : > { %v3635_v42 = vpack.c.bf16 %v3010_v47, %v3009_v27  ;;  %v4366_v59 = vadd.f32 %v2887_v5, %v1827_v21  ;;  %v4320_v19 = vpop.f32.mrb[26].mxu0  ;;  %v1830_v13 = vpop.f32.mrb[27].mxu1 }
 0x216   : > { %3672 = vst [vmem:[%s5730_s28 + $0x58] sm:$0xff] %v3640_v46   ;;  %v2983_v9 = vadd.f32 %v4365_v15, %v5720_v52  ;;  %v4367_v18 = vadd.f32 %v4320_v19, %v4128_v49  ;;  %v2890_v12 = vpop.f32.mrb[27].mxu0 }
 0x217   : > { %3671 = vst [vmem:[%s5730_s28 + $0x50] sm:$0xff] %v3635_v42   ;;  %v2981_v23 = vadd.f32 %v4366_v59, %v5720_v52  ;;  %v4368_v51 = vadd.f32 %v2890_v12, %v1830_v13 }
 0x218   : > { %v2984_v62 = vadd.f32 %v4367_v18, %v5720_v52  ;;  %v3015_v2 = vmax.f32 %v2983_v9, 0.0 }
 0x219   : > { %v2982_v1 = vadd.f32 %v4368_v51, %v5720_v52  ;;  %v3013_v11 = vmax.f32 %v2981_v23, 0.0 }
 0x21a   : > { %v3016_v24 = vmax.f32 %v2984_v62, 0.0  ;;  %v4131_v56 = vpop.f32.mrb[28].mxu1 }
 0x21b   : > { %v3014_v44 = vmax.f32 %v2982_v1, 0.0  ;;  %v4323_v48 = vpop.f32.mrb[28].mxu0  ;;  %v1843_v39 = vpop.f32.mrb[29].mxu1 }
 0x21c   : > { %v3650_v0 = vpack.c.bf16 %v3016_v24, %v3015_v2  ;;  %v4369_v41 = vadd.f32 %v4323_v48, %v4131_v56  ;;  %v2903_v50 = vpop.f32.mrb[29].mxu0  ;;  %v4132_v20 = vpop.f32.mrb[30].mxu1 }
 0x21d   : > { %v3645_v26 = vpack.c.bf16 %v3014_v44, %v3013_v11  ;;  %v4370_v32 = vadd.f32 %v2903_v50, %v1843_v39  ;;  %v4324_v55 = vpop.f32.mrb[30].mxu0  ;;  %v1846_v3 = vpop.f32.mrb[31].mxu1 }
 0x21e   : > { %3674 = vst [vmem:[%s5730_s28 + $0x68] sm:$0xff] %v3650_v0   ;;  %v2987_v38 = vadd.f32 %v4369_v41, %v5720_v52  ;;  %v4371_v36 = vadd.f32 %v4324_v55, %v4132_v20  ;;  %v2906_v35 = vpop.f32.mrb[31].mxu0 }
 0x21f   : > { %3673 = vst [vmem:[%s5730_s28 + $0x60] sm:$0xff] %v3645_v26   ;;  %v2985_v40 = vadd.f32 %v4370_v32, %v5720_v52  ;;  %v4372_v8 = vadd.f32 %v2906_v35, %v1846_v3 }
 0x220   : > { %v2988_v33 = vadd.f32 %v4371_v36, %v5720_v52  ;;  %v3019_v54 = vmax.f32 %v2987_v38, 0.0 }
 0x221   : > { %v2986_v25 = vadd.f32 %v4372_v8, %v5720_v52  ;;  %v3017_v16 = vmax.f32 %v2985_v40, 0.0 }
 0x222   : > { %v3020_v4 = vmax.f32 %v2988_v33, 0.0 }
 0x223   : > { %v3018_v17 = vmax.f32 %v2986_v25, 0.0 }
 0x224   : > { %v3660_v6 = vpack.c.bf16 %v3020_v4, %v3019_v54 }
 0x225   : > { %v3655_v29 = vpack.c.bf16 %v3018_v17, %v3017_v16 }
 0x226   : > { %3676 = vst [vmem:[%s5730_s28 + $0x78] sm:$0xff] %v3660_v6  }
 0x227   : > { %3675 = vst [vmem:[%s5730_s28 + $0x70] sm:$0xff] %v3655_v29  }
 0x228 PF: > { %s13_s14 = sadd.s32 1, %s4760_s14   ;;  %s5868_s12 = smov %s4756_s13 }
 0x229   : > { %p10_p5 = scmp.ge.s32.totalorder %s13_s14, 4   ;;  %s5869_s13 = smov %s5871_s15 }
 0x22b   :  { %12 = sbr.rel (!%p10_p5) target bundleno = 2 (0x2), region = 76 }

</bundles_post_ra>
